<compile_context>
chip_gen: v5e
topology: v5e:2x2
jax: 0.10.0
libtpu: 0.0.40
codegen_flags: <defaults>
</compile_context>

<pallas_src>
import functools

import jax
import jax.numpy as jnp
from jax.experimental import pallas as pl
from jax.experimental.pallas import tpu as pltpu

BN_EPS = 1e-5


# ------------------------------ Pallas kernels ------------------------------ #

def _conv_stats_kernel(*refs, taps_d, taps_h, h_start, h_out):
    """One output depth-slice of a valid conv (banded-weight matmuls), reduced
    to per-lane sum / sum-of-squares partials for global BatchNorm stats."""
    x_refs = refs[:taps_d]
    band_ref = refs[taps_d]
    sum_ref, sq_ref = refs[taps_d + 1], refs[taps_d + 2]
    lanes = band_ref.shape[-1]
    acc = jnp.zeros((h_out, lanes), jnp.float32)
    for kd in range(taps_d):
        for kh in range(taps_h):
            lhs = x_refs[kd][0, 0, h_start + kh:h_start + kh + h_out, :]
            acc = acc + jnp.dot(lhs, band_ref[kd, kh],
                                preferred_element_type=jnp.float32)
    sum_ref[0, 0] = jnp.sum(acc, axis=0, keepdims=True)
    sq_ref[0, 0] = jnp.sum(acc * acc, axis=0, keepdims=True)


def _conv_bn_relu_kernel(x0, x1, x2, band_ref, sc_ref, sh_ref, out_ref, *,
                         h_start, h_out):
    """Conv (3 depth taps x KH row taps) -> y*scale + shift -> ReLU (cropped)."""
    lanes = band_ref.shape[-1]
    acc = jnp.zeros((h_out, lanes), jnp.float32)
    for kd, xref in enumerate((x0, x1, x2)):
        for kh in range(band_ref.shape[1]):
            lhs = xref[0, 0, h_start + kh:h_start + kh + h_out, :]
            acc = acc + jnp.dot(lhs, band_ref[kd, kh],
                                preferred_element_type=jnp.float32)
    y = acc * sc_ref[...] + sh_ref[...]
    out_ref[0, 0] = jnp.maximum(y, 0.0).astype(out_ref.dtype)


def _final_kernel(a_ref0, a_ref1, a_ref2, x_ref, band2_ref, bandr_ref,
                  sc2_ref, sh2_ref, scr_ref, shr_ref, out_ref, *,
                  h_start2, h_startr, h_out):
    """Fused epilogue: stage-2 conv + BN2, residual 1x1x1 conv + BNr, add, ReLU."""
    lanes = band2_ref.shape[-1]
    acc = jnp.zeros((h_out, lanes), jnp.float32)
    for kd, aref in enumerate((a_ref0, a_ref1, a_ref2)):
        for kh in range(band2_ref.shape[1]):
            lhs = aref[0, 0, h_start2 + kh:h_start2 + kh + h_out, :]
            acc = acc + jnp.dot(lhs, band2_ref[kd, kh],
                                preferred_element_type=jnp.float32)
    y2 = acc * sc2_ref[...] + sh2_ref[...]
    xr = x_ref[0, 0, h_startr:h_startr + h_out, :]
    yr = jnp.dot(xr, bandr_ref[0, 0], preferred_element_type=jnp.float32)
    yr = yr * scr_ref[...] + shr_ref[...]
    out_ref[0, 0] = jnp.maximum(y2 + yr, 0.0).astype(out_ref.dtype)


# ------------------------- BlockSpec / call helpers -------------------------- #

def _tap_index(dz, n, z):
    return (n, z + dz, 0, 0)


def _tap_specs(arr_shape, n_taps, d_off):
    """Depth-halo trick: the same array is passed n_taps times, each with a
    depth-block of 1 offset by the tap index (plus the fused crop offset)."""
    blk = (1, 1, arr_shape[2], arr_shape[3])
    return [pl.BlockSpec(blk, functools.partial(_tap_index, d_off + kd))
            for kd in range(n_taps)]


def _const_spec(shape):
    zeros = (0,) * len(shape)
    return pl.BlockSpec(tuple(shape), lambda n, z, _z=zeros: _z)


def _out_slab_spec(h, lanes):
    return pl.BlockSpec((1, 1, h, lanes), lambda n, z: (n, z, 0, 0))


def _stats_spec(lanes):
    return pl.BlockSpec((1, 1, 1, lanes), lambda n, z: (n, z, 0, 0))


def _compiler_params():
    # batch and output-depth axes are independent -> shard across TensorCores
    # on v7x ("parallel" is harmless on single-TC v5e/v6e); set the scoped VMEM
    # limit explicitly (per-step working set here is well under 1 MiB).
    return pltpu.CompilerParams(
        dimension_semantics=("parallel", "parallel"),
        vmem_limit_bytes=64 * 1024 * 1024)


def _cost(flops, bytes_accessed):
    return pl.CostEstimate(flops=int(flops), transcendentals=0,
                           bytes_accessed=int(bytes_accessed))


# ------------------------------ call wrappers -------------------------------- #

def _conv_stats(src, band, *, taps_d, taps_h, h_start, h_out, d_out, d_off):
    n = src.shape[0]
    lanes = band.shape[-1]
    kern = functools.partial(_conv_stats_kernel, taps_d=taps_d, taps_h=taps_h,
                             h_start=h_start, h_out=h_out)
    flops = 2 * n * d_out * taps_d * taps_h * h_out * band.shape[2] * lanes
    byts = taps_d * src.nbytes + band.nbytes + 2 * n * d_out * lanes * 4
    return pl.pallas_call(
        kern,
        out_shape=(jax.ShapeDtypeStruct((n, d_out, 1, lanes), jnp.float32),
                   jax.ShapeDtypeStruct((n, d_out, 1, lanes), jnp.float32)),
        grid_spec=pltpu.PrefetchScalarGridSpec(
            num_scalar_prefetch=0,
            grid=(n, d_out),
            in_specs=_tap_specs(src.shape, taps_d, d_off) + [_const_spec(band.shape)],
            out_specs=[_stats_spec(lanes), _stats_spec(lanes)]),
        compiler_params=_compiler_params(),
        cost_estimate=_cost(flops, byts),
    )(*([src] * taps_d), band)


def _conv_bn_relu(src, band, scale_t, shift_t, *, d_out, d_off, h_start, h_out,
                  out_dtype):
    n = src.shape[0]
    lanes = band.shape[-1]
    kern = functools.partial(_conv_bn_relu_kernel, h_start=h_start, h_out=h_out)
    itemsize = 2 if out_dtype == jnp.bfloat16 else 4
    flops = 2 * n * d_out * band.shape[0] * band.shape[1] * h_out * band.shape[2] * lanes
    byts = 3 * src.nbytes + band.nbytes + n * d_out * h_out * lanes * itemsize
    return pl.pallas_call(
        kern,
        out_shape=jax.ShapeDtypeStruct((n, d_out, h_out, lanes), out_dtype),
        grid_spec=pltpu.PrefetchScalarGridSpec(
            num_scalar_prefetch=0,
            grid=(n, d_out),
            in_specs=_tap_specs(src.shape, 3, d_off)
                     + [_const_spec(band.shape), _const_spec(scale_t.shape),
                        _const_spec(shift_t.shape)],
            out_specs=_out_slab_spec(h_out, lanes)),
        compiler_params=_compiler_params(),
        cost_estimate=_cost(flops, byts),
    )(src, src, src, band, scale_t, shift_t)


def _final(a1, x4, band2, bandr, sc2, sh2, scr, shr, *,
           d_out, d_off2, h_start2, d_offr, h_startr, h_out):
    n = a1.shape[0]
    lanes = band2.shape[-1]
    kern = functools.partial(_final_kernel, h_start2=h_start2,
                             h_startr=h_startr, h_out=h_out)
    flops = 2 * n * d_out * h_out * (9 * band2.shape[2] + bandr.shape[2]) * lanes
    byts = 3 * a1.nbytes + x4.nbytes + band2.nbytes + bandr.nbytes \
        + n * d_out * h_out * lanes * 4
    in_specs = (_tap_specs(a1.shape, 3, d_off2)
                + _tap_specs(x4.shape, 1, d_offr)
                + [_const_spec(band2.shape), _const_spec(bandr.shape),
                   _const_spec(sc2.shape), _const_spec(sh2.shape),
                   _const_spec(scr.shape), _const_spec(shr.shape)])
    return pl.pallas_call(
        kern,
        out_shape=jax.ShapeDtypeStruct((n, d_out, h_out, lanes), jnp.float32),
        grid_spec=pltpu.PrefetchScalarGridSpec(
            num_scalar_prefetch=0,
            grid=(n, d_out),
            in_specs=in_specs,
            out_specs=_out_slab_spec(h_out, lanes)),
        compiler_params=_compiler_params(),
        cost_estimate=_cost(flops, byts),
    )(a1, a1, a1, x4, band2, bandr, sc2, sh2, scr, shr)


# ------------------------------- JAX glue ------------------------------------ #

def _build_band(wt, w_in, w_out, w_offset):
    """wt: (KD, KH, KW, Cin, Cout) -> band (KD, KH, w_in*Cin, w_out*Cout) s.t.
    lhs_row (w_in, c) contributes to output (w_out_local, co) iff
    w_in == w_out_local + w_offset + kw (the kw taps + the W center crop are
    folded into the band columns)."""
    kd_, kh_, kw_, cin, cout = wt.shape
    band = jnp.zeros((kd_, kh_, w_in * cin, w_out * cout), jnp.float32)
    for wo in range(w_out):
        for kw in range(kw_):
            wi = wo + w_offset + kw
            band = band.at[:, :, wi * cin:(wi + 1) * cin,
                           wo * cout:(wo + 1) * cout].set(
                               wt[:, :, kw].astype(jnp.float32))
    return band.astype(jnp.bfloat16)


def _finish_stats(s, q, count, gamma, beta):
    """Partial (sum, sumsq) -> per-channel BN scale/shift (training-mode batch
    stats, biased variance, eps=1e-5); conv bias is cancelled by the mean."""
    cout = gamma.shape[-1]
    s = s.reshape(-1, cout).sum(axis=0)
    q = q.reshape(-1, cout).sum(axis=0)
    mean = s / count
    var = jnp.maximum(q / count - mean * mean, 0.0)
    scale = gamma.reshape(-1) * jax.lax.rsqrt(var + BN_EPS)
    shift = beta.reshape(-1) - mean * scale
    return scale, shift


def _tile_vec(v, w_count):
    # per-channel vector -> (1, w_count*C) lane layout matching the fused W*C dim
    return jnp.tile(v.astype(jnp.float32), w_count).reshape(1, -1)


def init_params(key, in_c, c1, c2):
    ks = jax.random.split(key, 6)
    return {
        # HybridConvBlock #1, normal 3x3x3 conv (the contributing branch)
        "w1": 0.1 * jax.random.normal(ks[0], (3, 3, 3, in_c, c1), jnp.float32),
        "b1": 0.05 * jax.random.normal(ks[1], (1, c1), jnp.float32),
        "g1": jnp.ones((1, c1), jnp.float32),
        "bt1": jnp.zeros((1, c1), jnp.float32),
        # HybridConvBlock #2, normal 3x3x3 conv (no activation)
        "w2": 0.1 * jax.random.normal(ks[2], (3, 3, 3, c1, c2), jnp.float32),
        "b2": 0.05 * jax.random.normal(ks[3], (1, c2), jnp.float32),
        "g2": jnp.ones((1, c2), jnp.float32),
        "bt2": jnp.zeros((1, c2), jnp.float32),
        # 'reshape' path: 1x1x1 conv
        "w3": 0.1 * jax.random.normal(ks[4], (in_c, c2), jnp.float32),
        "b3": 0.05 * jax.random.normal(ks[5], (1, c2), jnp.float32),
        "g3": jnp.ones((1, c2), jnp.float32),
        "bt3": jnp.zeros((1, c2), jnp.float32),
    }


def res_block_forward(x_ncdhw, params, dilation_list):
    d0, d1 = dilation_list
    n, cin, d, h, w = x_ncdhw.shape
    c1 = params["w1"].shape[-1]
    c2 = params["w2"].shape[-1]

    # NCDHW -> NDHWC -> (N, D, H, W*Cin), bf16 matmul operand.
    x = jnp.transpose(x_ncdhw, (0, 2, 3, 4, 1)).astype(jnp.float32)
    x4 = x.reshape(n, d, h, w * cin).astype(jnp.bfloat16)

    # ------------- stage 1: HybridConvBlock #1 (3x3x3 conv, BN, ReLU) -------- #
    do1, ho1, wo1 = d - 2, h - 2, w - 2                      # uncropped conv1 out
    dc1, hc1, wc1 = d - 2 * d0, h - 2 * d0, w - 2 * d0       # after center crop
    od1, oh1, ow1 = (do1 - dc1) // 2, (ho1 - hc1) // 2, (wo1 - wc1) // 2
    band1_full = _build_band(params["w1"], w, wo1, 0)
    band1_crop = _build_band(params["w1"], w, wc1, ow1)
    s1, q1 = _conv_stats(x4, band1_full, taps_d=3, taps_h=3, h_start=0,
                         h_out=ho1, d_out=do1, d_off=0)
    sc1, sh1 = _finish_stats(s1, q1, n * do1 * ho1 * wo1, params["g1"], params["bt1"])
    a1 = _conv_bn_relu(x4, band1_crop, _tile_vec(sc1, wc1), _tile_vec(sh1, wc1),
                       d_out=dc1, d_off=od1, h_start=oh1, h_out=hc1,
                       out_dtype=jnp.bfloat16)               # (n, dc1, hc1, wc1*c1)

    # ------------- stage 2: HybridConvBlock #2 (3x3x3 conv, BN, no act) ------ #
    do2, ho2, wo2 = dc1 - 2, hc1 - 2, wc1 - 2                # uncropped conv2 out
    fd, fh, fw = d - 2 * (d0 + d1), h - 2 * (d0 + d1), w - 2 * (d0 + d1)
    od2, oh2, ow2 = (do2 - fd) // 2, (ho2 - fh) // 2, (wo2 - fw) // 2
    band2_full = _build_band(params["w2"], wc1, wo2, 0)
    band2_crop = _build_band(params["w2"], wc1, fw, ow2)
    s2, q2 = _conv_stats(a1, band2_full, taps_d=3, taps_h=3, h_start=0,
                         h_out=ho2, d_out=do2, d_off=0)
    sc2, sh2 = _finish_stats(s2, q2, n * do2 * ho2 * wo2, params["g2"], params["bt2"])

    # ------------- residual: center-crop(x) -> 1x1x1 conv -> BN -------------- #
    odr, ohr, owr = (d - fd) // 2, (h - fh) // 2, (w - fw) // 2
    bandr = _build_band(params["w3"].reshape(1, 1, 1, cin, c2), w, fw, owr)
    sr, qr = _conv_stats(x4, bandr, taps_d=1, taps_h=1, h_start=ohr,
                         h_out=fh, d_out=fd, d_off=odr)
    scr, shr = _finish_stats(sr, qr, n * fd * fh * fw, params["g3"], params["bt3"])

    # ------------- fused epilogue: BN2 + BNres + add + ReLU ------------------ #
    out4 = _final(a1, x4, band2_crop, bandr,
                  _tile_vec(sc2, fw), _tile_vec(sh2, fw),
                  _tile_vec(scr, fw), _tile_vec(shr, fw),
                  d_out=fd, d_off2=od2, h_start2=oh2,
                  d_offr=odr, h_startr=ohr, h_out=fh)
    out = out4.reshape(n, fd, fh, fw, c2)
    return jnp.transpose(out, (0, 4, 1, 2, 3))               # back to NCDHW


# --------------------------- pure-JAX f32 reference --------------------------- #

def im2col_3d(x):
    n, d, h, w, c = x.shape
    do, ho, wo = d - 2, h - 2, w - 2
    cols = []
    for kd in range(3):
        for kh in range(3):
            for kw in range(3):
                cols.append(
                    x[:, kd:kd + do, kh:kh + ho, kw:kw + wo, :].reshape(n * do * ho * wo, c))
    return jnp.concatenate(cols, axis=1), (n, do, ho, wo)


def center_crop(x, tgt):
    _, d, h, w, _ = x.shape
    a, b, c = tgt
    od, oh, ow = (d - a) // 2, (h - b) // 2, (w - c) // 2
    return x[:, od:od + a, oh:oh + b, ow:ow + c, :]


def _conv_bn_ref(x, w, bias, g, bt, relu):
    p, (n, do, ho, wo) = im2col_3d(x)
    y = p @ w.reshape(-1, w.shape[-1]) + bias
    mean = jnp.mean(y, axis=0, keepdims=True)
    var = jnp.mean((y - mean) ** 2, axis=0, keepdims=True)
    y = (y - mean) / jnp.sqrt(var + BN_EPS) * g + bt
    if relu:
        y = jnp.maximum(y, 0.0)
    return y.reshape(n, do, ho, wo, -1)


def reference_forward(x_ncdhw, params, dilation_list):
    d0, d1 = dilation_list
    x = jnp.transpose(x_ncdhw, (0, 2, 3, 4, 1)).astype(jnp.float32)
    n, d, h, w, cin = x.shape
    y1 = _conv_bn_ref(x, params["w1"], params["b1"], params["g1"], params["bt1"], True)
    y1 = center_crop(y1, (d - 2 * d0, h - 2 * d0, w - 2 * d0))
    y2 = _conv_bn_ref(y1, params["w2"], params["b2"], params["g2"], params["bt2"], False)
    a, b, c = d - 2 * (d0 + d1), h - 2 * (d0 + d1), w - 2 * (d0 + d1)
    y2 = center_crop(y2, (a, b, c))
    ident = center_crop(x, (a, b, c)).reshape(n * a * b * c, cin)
    yi = ident @ params["w3"] + params["b3"]
    mean = jnp.mean(yi, axis=0, keepdims=True)
    var = jnp.mean((yi - mean) ** 2, axis=0, keepdims=True)
    yi = (yi - mean) / jnp.sqrt(var + BN_EPS) * params["g3"] + params["bt3"]
    out = jnp.maximum(yi.reshape(n, a, b, c, -1) + y2, 0.0)
    return jnp.transpose(out, (0, 4, 1, 2, 3))


# ------------------------------------ main ------------------------------------ #

if __name__ == "__main__":
    key = jax.random.PRNGKey(0)
    kx, kp = jax.random.split(key)

    N, CIN, S = 2, 4, 16
    C1, C2 = 8, 8
    DILATION_LIST = (1, 2)

    x = jax.random.normal(kx, (N, CIN, S, S, S), jnp.float32)   # NCDHW like PyTorch
    params = init_params(kp, CIN, C1, C2)

    fwd = jax.jit(functools.partial(res_block_forward, dilation_list=DILATION_LIST))
    out = jax.block_until_ready(fwd(x, params))

    so = S - 2 * sum(DILATION_LIST)
    assert out.shape == (N, C2, so, so, so), out.shape

    ref = reference_forward(x, params, DILATION_LIST)
    err = float(jnp.max(jnp.abs(out - ref)))
    # bf16 MXU operands vs. pure-f32 reference -> slightly looser tolerance.
    assert jnp.allclose(out, ref, atol=3e-2, rtol=3e-2), err

    print("KERNEL_OK")
</pallas_src>

<mosaic_0001>
module attributes {stable_mosaic.version = 11 : i64} {
  func.func @_conv_stats_kernel(%arg0: i32, %arg1: i32, %arg2: memref<1x1x16x64xbf16, #tpu.memory_space<vmem>>, %arg3: memref<1x1x16x64xbf16, #tpu.memory_space<vmem>>, %arg4: memref<1x1x16x64xbf16, #tpu.memory_space<vmem>>, %arg5: memref<3x3x64x112xbf16, #tpu.memory_space<vmem>>, %arg6: memref<1x1x1x112xf32, #tpu.memory_space<vmem>>, %arg7: memref<1x1x1x112xf32, #tpu.memory_space<vmem>>) attributes {dimension_semantics = [#tpu.dimension_semantics<parallel>, #tpu.dimension_semantics<parallel>], iteration_bounds = array<i64: 2, 14>, scalar_prefetch = 0 : i64, scratch_operands = 0 : i64, tpu.core_type = #tpu.core_type<tc>, window_params = [{transform_indices = @transform_0, window_bounds = array<i64: 1, 1, 16, 64>}, {transform_indices = @transform_1, window_bounds = array<i64: 1, 1, 16, 64>}, {transform_indices = @transform_2, window_bounds = array<i64: 1, 1, 16, 64>}, {pipeline_mode = #tpu.pipeline_mode<synchronous>, transform_indices = @transform_3, window_bounds = array<i64: 3, 3, 64, 112>}, {transform_indices = @transform_4, window_bounds = array<i64: 1, 1, 1, 112>}, {transform_indices = @transform_5, window_bounds = array<i64: 1, 1, 1, 112>}]} {
    %cst = arith.constant 0.000000e+00 : f32
    %0 = vector.broadcast %cst : f32 to vector<14x112xf32>
    %c0 = arith.constant 0 : index
    %c0_0 = arith.constant 0 : index
    %c0_1 = arith.constant 0 : index
    %c0_2 = arith.constant 0 : index
    %1 = vector.load %arg2[%c0, %c0_0, %c0_1, %c0_2] : memref<1x1x16x64xbf16, #tpu.memory_space<vmem>>, vector<1x1x14x64xbf16>
    %2 = vector.shape_cast %1 : vector<1x1x14x64xbf16> to vector<14x64xbf16>
    %c0_3 = arith.constant 0 : index
    %c0_4 = arith.constant 0 : index
    %c0_5 = arith.constant 0 : index
    %c0_6 = arith.constant 0 : index
    %3 = vector.load %arg5[%c0_3, %c0_4, %c0_5, %c0_6] : memref<3x3x64x112xbf16, #tpu.memory_space<vmem>>, vector<1x1x64x112xbf16>
    %4 = vector.shape_cast %3 : vector<1x1x64x112xbf16> to vector<64x112xbf16>
    %cst_7 = arith.constant dense<0.000000e+00> : vector<14x112xf32>
    %5 = tpu.matmul %2, %4, %cst_7 {dimension_numbers = #tpu.dot_dimension_numbers<[1], [0], [0], [1], [0, 0, 1, 1], [], []>} : vector<14x64xbf16>, vector<64x112xbf16>, vector<14x112xf32> -> vector<14x112xf32>
    %6 = arith.addf %0, %5 : vector<14x112xf32>
    %c0_8 = arith.constant 0 : index
    %c0_9 = arith.constant 0 : index
    %c1 = arith.constant 1 : index
    %c0_10 = arith.constant 0 : index
    %7 = vector.load %arg2[%c0_8, %c0_9, %c1, %c0_10] : memref<1x1x16x64xbf16, #tpu.memory_space<vmem>>, vector<1x1x14x64xbf16>
    %8 = vector.shape_cast %7 : vector<1x1x14x64xbf16> to vector<14x64xbf16>
    %c0_11 = arith.constant 0 : index
    %c1_12 = arith.constant 1 : index
    %c0_13 = arith.constant 0 : index
    %c0_14 = arith.constant 0 : index
    %9 = vector.load %arg5[%c0_11, %c1_12, %c0_13, %c0_14] : memref<3x3x64x112xbf16, #tpu.memory_space<vmem>>, vector<1x1x64x112xbf16>
    %10 = vector.shape_cast %9 : vector<1x1x64x112xbf16> to vector<64x112xbf16>
    %cst_15 = arith.constant dense<0.000000e+00> : vector<14x112xf32>
    %11 = tpu.matmul %8, %10, %cst_15 {dimension_numbers = #tpu.dot_dimension_numbers<[1], [0], [0], [1], [0, 0, 1, 1], [], []>} : vector<14x64xbf16>, vector<64x112xbf16>, vector<14x112xf32> -> vector<14x112xf32>
    %12 = arith.addf %6, %11 : vector<14x112xf32>
    %c0_16 = arith.constant 0 : index
    %c0_17 = arith.constant 0 : index
    %c2 = arith.constant 2 : index
    %c0_18 = arith.constant 0 : index
    %13 = vector.load %arg2[%c0_16, %c0_17, %c2, %c0_18] : memref<1x1x16x64xbf16, #tpu.memory_space<vmem>>, vector<1x1x14x64xbf16>
    %14 = vector.shape_cast %13 : vector<1x1x14x64xbf16> to vector<14x64xbf16>
    %c0_19 = arith.constant 0 : index
    %c2_20 = arith.constant 2 : index
    %c0_21 = arith.constant 0 : index
    %c0_22 = arith.constant 0 : index
    %15 = vector.load %arg5[%c0_19, %c2_20, %c0_21, %c0_22] : memref<3x3x64x112xbf16, #tpu.memory_space<vmem>>, vector<1x1x64x112xbf16>
    %16 = vector.shape_cast %15 : vector<1x1x64x112xbf16> to vector<64x112xbf16>
    %cst_23 = arith.constant dense<0.000000e+00> : vector<14x112xf32>
    %17 = tpu.matmul %14, %16, %cst_23 {dimension_numbers = #tpu.dot_dimension_numbers<[1], [0], [0], [1], [0, 0, 1, 1], [], []>} : vector<14x64xbf16>, vector<64x112xbf16>, vector<14x112xf32> -> vector<14x112xf32>
    %18 = arith.addf %12, %17 : vector<14x112xf32>
    %c0_24 = arith.constant 0 : index
    %c0_25 = arith.constant 0 : index
    %c0_26 = arith.constant 0 : index
    %c0_27 = arith.constant 0 : index
    %19 = vector.load %arg3[%c0_24, %c0_25, %c0_26, %c0_27] : memref<1x1x16x64xbf16, #tpu.memory_space<vmem>>, vector<1x1x14x64xbf16>
    %20 = vector.shape_cast %19 : vector<1x1x14x64xbf16> to vector<14x64xbf16>
    %c1_28 = arith.constant 1 : index
    %c0_29 = arith.constant 0 : index
    %c0_30 = arith.constant 0 : index
    %c0_31 = arith.constant 0 : index
    %21 = vector.load %arg5[%c1_28, %c0_29, %c0_30, %c0_31] : memref<3x3x64x112xbf16, #tpu.memory_space<vmem>>, vector<1x1x64x112xbf16>
    %22 = vector.shape_cast %21 : vector<1x1x64x112xbf16> to vector<64x112xbf16>
    %cst_32 = arith.constant dense<0.000000e+00> : vector<14x112xf32>
    %23 = tpu.matmul %20, %22, %cst_32 {dimension_numbers = #tpu.dot_dimension_numbers<[1], [0], [0], [1], [0, 0, 1, 1], [], []>} : vector<14x64xbf16>, vector<64x112xbf16>, vector<14x112xf32> -> vector<14x112xf32>
    %24 = arith.addf %18, %23 : vector<14x112xf32>
    %c0_33 = arith.constant 0 : index
    %c0_34 = arith.constant 0 : index
    %c1_35 = arith.constant 1 : index
    %c0_36 = arith.constant 0 : index
    %25 = vector.load %arg3[%c0_33, %c0_34, %c1_35, %c0_36] : memref<1x1x16x64xbf16, #tpu.memory_space<vmem>>, vector<1x1x14x64xbf16>
    %26 = vector.shape_cast %25 : vector<1x1x14x64xbf16> to vector<14x64xbf16>
    %c1_37 = arith.constant 1 : index
    %c1_38 = arith.constant 1 : index
    %c0_39 = arith.constant 0 : index
    %c0_40 = arith.constant 0 : index
    %27 = vector.load %arg5[%c1_37, %c1_38, %c0_39, %c0_40] : memref<3x3x64x112xbf16, #tpu.memory_space<vmem>>, vector<1x1x64x112xbf16>
    %28 = vector.shape_cast %27 : vector<1x1x64x112xbf16> to vector<64x112xbf16>
    %cst_41 = arith.constant dense<0.000000e+00> : vector<14x112xf32>
    %29 = tpu.matmul %26, %28, %cst_41 {dimension_numbers = #tpu.dot_dimension_numbers<[1], [0], [0], [1], [0, 0, 1, 1], [], []>} : vector<14x64xbf16>, vector<64x112xbf16>, vector<14x112xf32> -> vector<14x112xf32>
    %30 = arith.addf %24, %29 : vector<14x112xf32>
    %c0_42 = arith.constant 0 : index
    %c0_43 = arith.constant 0 : index
    %c2_44 = arith.constant 2 : index
    %c0_45 = arith.constant 0 : index
    %31 = vector.load %arg3[%c0_42, %c0_43, %c2_44, %c0_45] : memref<1x1x16x64xbf16, #tpu.memory_space<vmem>>, vector<1x1x14x64xbf16>
    %32 = vector.shape_cast %31 : vector<1x1x14x64xbf16> to vector<14x64xbf16>
    %c1_46 = arith.constant 1 : index
    %c2_47 = arith.constant 2 : index
    %c0_48 = arith.constant 0 : index
    %c0_49 = arith.constant 0 : index
    %33 = vector.load %arg5[%c1_46, %c2_47, %c0_48, %c0_49] : memref<3x3x64x112xbf16, #tpu.memory_space<vmem>>, vector<1x1x64x112xbf16>
    %34 = vector.shape_cast %33 : vector<1x1x64x112xbf16> to vector<64x112xbf16>
    %cst_50 = arith.constant dense<0.000000e+00> : vector<14x112xf32>
    %35 = tpu.matmul %32, %34, %cst_50 {dimension_numbers = #tpu.dot_dimension_numbers<[1], [0], [0], [1], [0, 0, 1, 1], [], []>} : vector<14x64xbf16>, vector<64x112xbf16>, vector<14x112xf32> -> vector<14x112xf32>
    %36 = arith.addf %30, %35 : vector<14x112xf32>
    %c0_51 = arith.constant 0 : index
    %c0_52 = arith.constant 0 : index
    %c0_53 = arith.constant 0 : index
    %c0_54 = arith.constant 0 : index
    %37 = vector.load %arg4[%c0_51, %c0_52, %c0_53, %c0_54] : memref<1x1x16x64xbf16, #tpu.memory_space<vmem>>, vector<1x1x14x64xbf16>
    %38 = vector.shape_cast %37 : vector<1x1x14x64xbf16> to vector<14x64xbf16>
    %c2_55 = arith.constant 2 : index
    %c0_56 = arith.constant 0 : index
    %c0_57 = arith.constant 0 : index
    %c0_58 = arith.constant 0 : index
    %39 = vector.load %arg5[%c2_55, %c0_56, %c0_57, %c0_58] : memref<3x3x64x112xbf16, #tpu.memory_space<vmem>>, vector<1x1x64x112xbf16>
    %40 = vector.shape_cast %39 : vector<1x1x64x112xbf16> to vector<64x112xbf16>
    %cst_59 = arith.constant dense<0.000000e+00> : vector<14x112xf32>
    %41 = tpu.matmul %38, %40, %cst_59 {dimension_numbers = #tpu.dot_dimension_numbers<[1], [0], [0], [1], [0, 0, 1, 1], [], []>} : vector<14x64xbf16>, vector<64x112xbf16>, vector<14x112xf32> -> vector<14x112xf32>
    %42 = arith.addf %36, %41 : vector<14x112xf32>
    %c0_60 = arith.constant 0 : index
    %c0_61 = arith.constant 0 : index
    %c1_62 = arith.constant 1 : index
    %c0_63 = arith.constant 0 : index
    %43 = vector.load %arg4[%c0_60, %c0_61, %c1_62, %c0_63] : memref<1x1x16x64xbf16, #tpu.memory_space<vmem>>, vector<1x1x14x64xbf16>
    %44 = vector.shape_cast %43 : vector<1x1x14x64xbf16> to vector<14x64xbf16>
    %c2_64 = arith.constant 2 : index
    %c1_65 = arith.constant 1 : index
    %c0_66 = arith.constant 0 : index
    %c0_67 = arith.constant 0 : index
    %45 = vector.load %arg5[%c2_64, %c1_65, %c0_66, %c0_67] : memref<3x3x64x112xbf16, #tpu.memory_space<vmem>>, vector<1x1x64x112xbf16>
    %46 = vector.shape_cast %45 : vector<1x1x64x112xbf16> to vector<64x112xbf16>
    %cst_68 = arith.constant dense<0.000000e+00> : vector<14x112xf32>
    %47 = tpu.matmul %44, %46, %cst_68 {dimension_numbers = #tpu.dot_dimension_numbers<[1], [0], [0], [1], [0, 0, 1, 1], [], []>} : vector<14x64xbf16>, vector<64x112xbf16>, vector<14x112xf32> -> vector<14x112xf32>
    %48 = arith.addf %42, %47 : vector<14x112xf32>
    %c0_69 = arith.constant 0 : index
    %c0_70 = arith.constant 0 : index
    %c2_71 = arith.constant 2 : index
    %c0_72 = arith.constant 0 : index
    %49 = vector.load %arg4[%c0_69, %c0_70, %c2_71, %c0_72] : memref<1x1x16x64xbf16, #tpu.memory_space<vmem>>, vector<1x1x14x64xbf16>
    %50 = vector.shape_cast %49 : vector<1x1x14x64xbf16> to vector<14x64xbf16>
    %c2_73 = arith.constant 2 : index
    %c2_74 = arith.constant 2 : index
    %c0_75 = arith.constant 0 : index
    %c0_76 = arith.constant 0 : index
    %51 = vector.load %arg5[%c2_73, %c2_74, %c0_75, %c0_76] : memref<3x3x64x112xbf16, #tpu.memory_space<vmem>>, vector<1x1x64x112xbf16>
    %52 = vector.shape_cast %51 : vector<1x1x64x112xbf16> to vector<64x112xbf16>
    %cst_77 = arith.constant dense<0.000000e+00> : vector<14x112xf32>
    %53 = tpu.matmul %50, %52, %cst_77 {dimension_numbers = #tpu.dot_dimension_numbers<[1], [0], [0], [1], [0, 0, 1, 1], [], []>} : vector<14x64xbf16>, vector<64x112xbf16>, vector<14x112xf32> -> vector<14x112xf32>
    %54 = arith.addf %48, %53 : vector<14x112xf32>
    %cst_78 = arith.constant dense<0.000000e+00> : vector<112xf32>
    %55 = vector.multi_reduction <add>, %54, %cst_78 [0] : vector<14x112xf32> to vector<112xf32>
    %56 = vector.shape_cast %55 : vector<112xf32> to vector<1x112xf32>
    %c0_79 = arith.constant 0 : index
    %c0_80 = arith.constant 0 : index
    %c0_81 = arith.constant 0 : index
    %c0_82 = arith.constant 0 : index
    %57 = vector.load %arg6[%c0_79, %c0_80, %c0_81, %c0_82] : memref<1x1x1x112xf32, #tpu.memory_space<vmem>>, vector<1x1x1x112xf32>
    %58 = vector.shape_cast %57 : vector<1x1x1x112xf32> to vector<1x112xf32>
    %59 = vector.shape_cast %56 : vector<1x112xf32> to vector<1x1x1x112xf32>
    tpu.vector_store %arg6[%c0_79, %c0_80, %c0_81, %c0_82], %59 {strides = array<i32>} : memref<1x1x1x112xf32, #tpu.memory_space<vmem>>, vector<1x1x1x112xf32>,
    %60 = arith.mulf %54, %54 : vector<14x112xf32>
    %cst_83 = arith.constant dense<0.000000e+00> : vector<112xf32>
    %61 = vector.multi_reduction <add>, %60, %cst_83 [0] : vector<14x112xf32> to vector<112xf32>
    %62 = vector.shape_cast %61 : vector<112xf32> to vector<1x112xf32>
    %c0_84 = arith.constant 0 : index
    %c0_85 = arith.constant 0 : index
    %c0_86 = arith.constant 0 : index
    %c0_87 = arith.constant 0 : index
    %63 = vector.load %arg7[%c0_84, %c0_85, %c0_86, %c0_87] : memref<1x1x1x112xf32, #tpu.memory_space<vmem>>, vector<1x1x1x112xf32>
    %64 = vector.shape_cast %63 : vector<1x1x1x112xf32> to vector<1x112xf32>
    %65 = vector.shape_cast %62 : vector<1x112xf32> to vector<1x1x1x112xf32>
    tpu.vector_store %arg7[%c0_84, %c0_85, %c0_86, %c0_87], %65 {strides = array<i32>} : memref<1x1x1x112xf32, #tpu.memory_space<vmem>>, vector<1x1x1x112xf32>,
    return
  }
  func.func @transform_0(%arg0: i32, %arg1: i32) -> (i32, i32, i32, i32) {
    %c0_i32 = arith.constant 0 : i32
    %0 = arith.addi %arg1, %c0_i32 : i32
    %c0_i32_0 = arith.constant 0 : i32
    %c0_i32_1 = arith.constant 0 : i32
    %c0_i32_2 = arith.constant 0 : i32
    return %arg0, %0, %c0_i32_0, %c0_i32_1 : i32, i32, i32, i32
  }
  func.func @transform_1(%arg0: i32, %arg1: i32) -> (i32, i32, i32, i32) {
    %c1_i32 = arith.constant 1 : i32
    %0 = arith.addi %arg1, %c1_i32 : i32
    %c0_i32 = arith.constant 0 : i32
    %c0_i32_0 = arith.constant 0 : i32
    %c0_i32_1 = arith.constant 0 : i32
    return %arg0, %0, %c0_i32, %c0_i32_0 : i32, i32, i32, i32
  }
  func.func @transform_2(%arg0: i32, %arg1: i32) -> (i32, i32, i32, i32) {
    %c2_i32 = arith.constant 2 : i32
    %0 = arith.addi %arg1, %c2_i32 : i32
    %c0_i32 = arith.constant 0 : i32
    %c0_i32_0 = arith.constant 0 : i32
    %c0_i32_1 = arith.constant 0 : i32
    return %arg0, %0, %c0_i32, %c0_i32_0 : i32, i32, i32, i32
  }
  func.func @transform_3(%arg0: i32, %arg1: i32) -> (i32, i32, i32, i32) {
    %c0_i32 = arith.constant 0 : i32
    %c0_i32_0 = arith.constant 0 : i32
    %c0_i32_1 = arith.constant 0 : i32
    %c0_i32_2 = arith.constant 0 : i32
    %c0_i32_3 = arith.constant 0 : i32
    return %c0_i32, %c0_i32_0, %c0_i32_1, %c0_i32_2 : i32, i32, i32, i32
  }
  func.func @transform_4(%arg0: i32, %arg1: i32) -> (i32, i32, i32, i32) {
    %c0_i32 = arith.constant 0 : i32
    %c0_i32_0 = arith.constant 0 : i32
    %c0_i32_1 = arith.constant 0 : i32
    return %arg0, %arg1, %c0_i32, %c0_i32_0 : i32, i32, i32, i32
  }
  func.func @transform_5(%arg0: i32, %arg1: i32) -> (i32, i32, i32, i32) {
    %c0_i32 = arith.constant 0 : i32
    %c0_i32_0 = arith.constant 0 : i32
    %c0_i32_1 = arith.constant 0 : i32
    return %arg0, %arg1, %c0_i32, %c0_i32_0 : i32, i32, i32, i32
  }
}

module attributes {stable_mosaic.version = 11 : i64} {
  func.func @_conv_bn_relu_kernel(%arg0: i32, %arg1: i32, %arg2: memref<1x1x16x64xbf16, #tpu.memory_space<vmem>>, %arg3: memref<1x1x16x64xbf16, #tpu.memory_space<vmem>>, %arg4: memref<1x1x16x64xbf16, #tpu.memory_space<vmem>>, %arg5: memref<3x3x64x112xbf16, #tpu.memory_space<vmem>>, %arg6: memref<1x112xf32, #tpu.memory_space<vmem>>, %arg7: memref<1x112xf32, #tpu.memory_space<vmem>>, %arg8: memref<1x1x14x112xbf16, #tpu.memory_space<vmem>>) attributes {dimension_semantics = [#tpu.dimension_semantics<parallel>, #tpu.dimension_semantics<parallel>], iteration_bounds = array<i64: 2, 14>, scalar_prefetch = 0 : i64, scratch_operands = 0 : i64, tpu.core_type = #tpu.core_type<tc>, window_params = [{transform_indices = @transform_0, window_bounds = array<i64: 1, 1, 16, 64>}, {transform_indices = @transform_1, window_bounds = array<i64: 1, 1, 16, 64>}, {transform_indices = @transform_2, window_bounds = array<i64: 1, 1, 16, 64>}, {pipeline_mode = #tpu.pipeline_mode<synchronous>, transform_indices = @transform_3, window_bounds = array<i64: 3, 3, 64, 112>}, {pipeline_mode = #tpu.pipeline_mode<synchronous>, transform_indices = @transform_4, window_bounds = array<i64: 1, 112>}, {pipeline_mode = #tpu.pipeline_mode<synchronous>, transform_indices = @transform_5, window_bounds = array<i64: 1, 112>}, {transform_indices = @transform_6, window_bounds = array<i64: 1, 1, 14, 112>}]} {
    %cst = arith.constant 0.000000e+00 : f32
    %0 = vector.broadcast %cst : f32 to vector<14x112xf32>
    %c0 = arith.constant 0 : index
    %c0_0 = arith.constant 0 : index
    %c0_1 = arith.constant 0 : index
    %c0_2 = arith.constant 0 : index
    %1 = vector.load %arg2[%c0, %c0_0, %c0_1, %c0_2] : memref<1x1x16x64xbf16, #tpu.memory_space<vmem>>, vector<1x1x14x64xbf16>
    %2 = vector.shape_cast %1 : vector<1x1x14x64xbf16> to vector<14x64xbf16>
    %c0_3 = arith.constant 0 : index
    %c0_4 = arith.constant 0 : index
    %c0_5 = arith.constant 0 : index
    %c0_6 = arith.constant 0 : index
    %3 = vector.load %arg5[%c0_3, %c0_4, %c0_5, %c0_6] : memref<3x3x64x112xbf16, #tpu.memory_space<vmem>>, vector<1x1x64x112xbf16>
    %4 = vector.shape_cast %3 : vector<1x1x64x112xbf16> to vector<64x112xbf16>
    %cst_7 = arith.constant dense<0.000000e+00> : vector<14x112xf32>
    %5 = tpu.matmul %2, %4, %cst_7 {dimension_numbers = #tpu.dot_dimension_numbers<[1], [0], [0], [1], [0, 0, 1, 1], [], []>} : vector<14x64xbf16>, vector<64x112xbf16>, vector<14x112xf32> -> vector<14x112xf32>
    %6 = arith.addf %0, %5 : vector<14x112xf32>
    %c0_8 = arith.constant 0 : index
    %c0_9 = arith.constant 0 : index
    %c1 = arith.constant 1 : index
    %c0_10 = arith.constant 0 : index
    %7 = vector.load %arg2[%c0_8, %c0_9, %c1, %c0_10] : memref<1x1x16x64xbf16, #tpu.memory_space<vmem>>, vector<1x1x14x64xbf16>
    %8 = vector.shape_cast %7 : vector<1x1x14x64xbf16> to vector<14x64xbf16>
    %c0_11 = arith.constant 0 : index
    %c1_12 = arith.constant 1 : index
    %c0_13 = arith.constant 0 : index
    %c0_14 = arith.constant 0 : index
    %9 = vector.load %arg5[%c0_11, %c1_12, %c0_13, %c0_14] : memref<3x3x64x112xbf16, #tpu.memory_space<vmem>>, vector<1x1x64x112xbf16>
    %10 = vector.shape_cast %9 : vector<1x1x64x112xbf16> to vector<64x112xbf16>
    %cst_15 = arith.constant dense<0.000000e+00> : vector<14x112xf32>
    %11 = tpu.matmul %8, %10, %cst_15 {dimension_numbers = #tpu.dot_dimension_numbers<[1], [0], [0], [1], [0, 0, 1, 1], [], []>} : vector<14x64xbf16>, vector<64x112xbf16>, vector<14x112xf32> -> vector<14x112xf32>
    %12 = arith.addf %6, %11 : vector<14x112xf32>
    %c0_16 = arith.constant 0 : index
    %c0_17 = arith.constant 0 : index
    %c2 = arith.constant 2 : index
    %c0_18 = arith.constant 0 : index
    %13 = vector.load %arg2[%c0_16, %c0_17, %c2, %c0_18] : memref<1x1x16x64xbf16, #tpu.memory_space<vmem>>, vector<1x1x14x64xbf16>
    %14 = vector.shape_cast %13 : vector<1x1x14x64xbf16> to vector<14x64xbf16>
    %c0_19 = arith.constant 0 : index
    %c2_20 = arith.constant 2 : index
    %c0_21 = arith.constant 0 : index
    %c0_22 = arith.constant 0 : index
    %15 = vector.load %arg5[%c0_19, %c2_20, %c0_21, %c0_22] : memref<3x3x64x112xbf16, #tpu.memory_space<vmem>>, vector<1x1x64x112xbf16>
    %16 = vector.shape_cast %15 : vector<1x1x64x112xbf16> to vector<64x112xbf16>
    %cst_23 = arith.constant dense<0.000000e+00> : vector<14x112xf32>
    %17 = tpu.matmul %14, %16, %cst_23 {dimension_numbers = #tpu.dot_dimension_numbers<[1], [0], [0], [1], [0, 0, 1, 1], [], []>} : vector<14x64xbf16>, vector<64x112xbf16>, vector<14x112xf32> -> vector<14x112xf32>
    %18 = arith.addf %12, %17 : vector<14x112xf32>
    %c0_24 = arith.constant 0 : index
    %c0_25 = arith.constant 0 : index
    %c0_26 = arith.constant 0 : index
    %c0_27 = arith.constant 0 : index
    %19 = vector.load %arg3[%c0_24, %c0_25, %c0_26, %c0_27] : memref<1x1x16x64xbf16, #tpu.memory_space<vmem>>, vector<1x1x14x64xbf16>
    %20 = vector.shape_cast %19 : vector<1x1x14x64xbf16> to vector<14x64xbf16>
    %c1_28 = arith.constant 1 : index
    %c0_29 = arith.constant 0 : index
    %c0_30 = arith.constant 0 : index
    %c0_31 = arith.constant 0 : index
    %21 = vector.load %arg5[%c1_28, %c0_29, %c0_30, %c0_31] : memref<3x3x64x112xbf16, #tpu.memory_space<vmem>>, vector<1x1x64x112xbf16>
    %22 = vector.shape_cast %21 : vector<1x1x64x112xbf16> to vector<64x112xbf16>
    %cst_32 = arith.constant dense<0.000000e+00> : vector<14x112xf32>
    %23 = tpu.matmul %20, %22, %cst_32 {dimension_numbers = #tpu.dot_dimension_numbers<[1], [0], [0], [1], [0, 0, 1, 1], [], []>} : vector<14x64xbf16>, vector<64x112xbf16>, vector<14x112xf32> -> vector<14x112xf32>
    %24 = arith.addf %18, %23 : vector<14x112xf32>
    %c0_33 = arith.constant 0 : index
    %c0_34 = arith.constant 0 : index
    %c1_35 = arith.constant 1 : index
    %c0_36 = arith.constant 0 : index
    %25 = vector.load %arg3[%c0_33, %c0_34, %c1_35, %c0_36] : memref<1x1x16x64xbf16, #tpu.memory_space<vmem>>, vector<1x1x14x64xbf16>
    %26 = vector.shape_cast %25 : vector<1x1x14x64xbf16> to vector<14x64xbf16>
    %c1_37 = arith.constant 1 : index
    %c1_38 = arith.constant 1 : index
    %c0_39 = arith.constant 0 : index
    %c0_40 = arith.constant 0 : index
    %27 = vector.load %arg5[%c1_37, %c1_38, %c0_39, %c0_40] : memref<3x3x64x112xbf16, #tpu.memory_space<vmem>>, vector<1x1x64x112xbf16>
    %28 = vector.shape_cast %27 : vector<1x1x64x112xbf16> to vector<64x112xbf16>
    %cst_41 = arith.constant dense<0.000000e+00> : vector<14x112xf32>
    %29 = tpu.matmul %26, %28, %cst_41 {dimension_numbers = #tpu.dot_dimension_numbers<[1], [0], [0], [1], [0, 0, 1, 1], [], []>} : vector<14x64xbf16>, vector<64x112xbf16>, vector<14x112xf32> -> vector<14x112xf32>
    %30 = arith.addf %24, %29 : vector<14x112xf32>
    %c0_42 = arith.constant 0 : index
    %c0_43 = arith.constant 0 : index
    %c2_44 = arith.constant 2 : index
    %c0_45 = arith.constant 0 : index
    %31 = vector.load %arg3[%c0_42, %c0_43, %c2_44, %c0_45] : memref<1x1x16x64xbf16, #tpu.memory_space<vmem>>, vector<1x1x14x64xbf16>
    %32 = vector.shape_cast %31 : vector<1x1x14x64xbf16> to vector<14x64xbf16>
    %c1_46 = arith.constant 1 : index
    %c2_47 = arith.constant 2 : index
    %c0_48 = arith.constant 0 : index
    %c0_49 = arith.constant 0 : index
    %33 = vector.load %arg5[%c1_46, %c2_47, %c0_48, %c0_49] : memref<3x3x64x112xbf16, #tpu.memory_space<vmem>>, vector<1x1x64x112xbf16>
    %34 = vector.shape_cast %33 : vector<1x1x64x112xbf16> to vector<64x112xbf16>
    %cst_50 = arith.constant dense<0.000000e+00> : vector<14x112xf32>
    %35 = tpu.matmul %32, %34, %cst_50 {dimension_numbers = #tpu.dot_dimension_numbers<[1], [0], [0], [1], [0, 0, 1, 1], [], []>} : vector<14x64xbf16>, vector<64x112xbf16>, vector<14x112xf32> -> vector<14x112xf32>
    %36 = arith.addf %30, %35 : vector<14x112xf32>
    %c0_51 = arith.constant 0 : index
    %c0_52 = arith.constant 0 : index
    %c0_53 = arith.constant 0 : index
    %c0_54 = arith.constant 0 : index
    %37 = vector.load %arg4[%c0_51, %c0_52, %c0_53, %c0_54] : memref<1x1x16x64xbf16, #tpu.memory_space<vmem>>, vector<1x1x14x64xbf16>
    %38 = vector.shape_cast %37 : vector<1x1x14x64xbf16> to vector<14x64xbf16>
    %c2_55 = arith.constant 2 : index
    %c0_56 = arith.constant 0 : index
    %c0_57 = arith.constant 0 : index
    %c0_58 = arith.constant 0 : index
    %39 = vector.load %arg5[%c2_55, %c0_56, %c0_57, %c0_58] : memref<3x3x64x112xbf16, #tpu.memory_space<vmem>>, vector<1x1x64x112xbf16>
    %40 = vector.shape_cast %39 : vector<1x1x64x112xbf16> to vector<64x112xbf16>
    %cst_59 = arith.constant dense<0.000000e+00> : vector<14x112xf32>
    %41 = tpu.matmul %38, %40, %cst_59 {dimension_numbers = #tpu.dot_dimension_numbers<[1], [0], [0], [1], [0, 0, 1, 1], [], []>} : vector<14x64xbf16>, vector<64x112xbf16>, vector<14x112xf32> -> vector<14x112xf32>
    %42 = arith.addf %36, %41 : vector<14x112xf32>
    %c0_60 = arith.constant 0 : index
    %c0_61 = arith.constant 0 : index
    %c1_62 = arith.constant 1 : index
    %c0_63 = arith.constant 0 : index
    %43 = vector.load %arg4[%c0_60, %c0_61, %c1_62, %c0_63] : memref<1x1x16x64xbf16, #tpu.memory_space<vmem>>, vector<1x1x14x64xbf16>
    %44 = vector.shape_cast %43 : vector<1x1x14x64xbf16> to vector<14x64xbf16>
    %c2_64 = arith.constant 2 : index
    %c1_65 = arith.constant 1 : index
    %c0_66 = arith.constant 0 : index
    %c0_67 = arith.constant 0 : index
    %45 = vector.load %arg5[%c2_64, %c1_65, %c0_66, %c0_67] : memref<3x3x64x112xbf16, #tpu.memory_space<vmem>>, vector<1x1x64x112xbf16>
    %46 = vector.shape_cast %45 : vector<1x1x64x112xbf16> to vector<64x112xbf16>
    %cst_68 = arith.constant dense<0.000000e+00> : vector<14x112xf32>
    %47 = tpu.matmul %44, %46, %cst_68 {dimension_numbers = #tpu.dot_dimension_numbers<[1], [0], [0], [1], [0, 0, 1, 1], [], []>} : vector<14x64xbf16>, vector<64x112xbf16>, vector<14x112xf32> -> vector<14x112xf32>
    %48 = arith.addf %42, %47 : vector<14x112xf32>
    %c0_69 = arith.constant 0 : index
    %c0_70 = arith.constant 0 : index
    %c2_71 = arith.constant 2 : index
    %c0_72 = arith.constant 0 : index
    %49 = vector.load %arg4[%c0_69, %c0_70, %c2_71, %c0_72] : memref<1x1x16x64xbf16, #tpu.memory_space<vmem>>, vector<1x1x14x64xbf16>
    %50 = vector.shape_cast %49 : vector<1x1x14x64xbf16> to vector<14x64xbf16>
    %c2_73 = arith.constant 2 : index
    %c2_74 = arith.constant 2 : index
    %c0_75 = arith.constant 0 : index
    %c0_76 = arith.constant 0 : index
    %51 = vector.load %arg5[%c2_73, %c2_74, %c0_75, %c0_76] : memref<3x3x64x112xbf16, #tpu.memory_space<vmem>>, vector<1x1x64x112xbf16>
    %52 = vector.shape_cast %51 : vector<1x1x64x112xbf16> to vector<64x112xbf16>
    %cst_77 = arith.constant dense<0.000000e+00> : vector<14x112xf32>
    %53 = tpu.matmul %50, %52, %cst_77 {dimension_numbers = #tpu.dot_dimension_numbers<[1], [0], [0], [1], [0, 0, 1, 1], [], []>} : vector<14x64xbf16>, vector<64x112xbf16>, vector<14x112xf32> -> vector<14x112xf32>
    %54 = arith.addf %48, %53 : vector<14x112xf32>
    %c0_78 = arith.constant 0 : index
    %c0_79 = arith.constant 0 : index
    %55 = vector.load %arg6[%c0_78, %c0_79] : memref<1x112xf32, #tpu.memory_space<vmem>>, vector<1x112xf32>
    %56 = vector.broadcast %55 : vector<1x112xf32> to vector<14x112xf32>
    %57 = arith.mulf %54, %56 : vector<14x112xf32>
    %c0_80 = arith.constant 0 : index
    %c0_81 = arith.constant 0 : index
    %58 = vector.load %arg7[%c0_80, %c0_81] : memref<1x112xf32, #tpu.memory_space<vmem>>, vector<1x112xf32>
    %59 = vector.broadcast %58 : vector<1x112xf32> to vector<14x112xf32>
    %60 = arith.addf %57, %59 : vector<14x112xf32>
    %cst_82 = arith.constant 0.000000e+00 : f32
    %61 = vector.broadcast %cst_82 : f32 to vector<14x112xf32>
    %62 = arith.maximumf %60, %61 : vector<14x112xf32>
    %63 = arith.truncf %62 : vector<14x112xf32> to vector<14x112xbf16>
    %c0_83 = arith.constant 0 : index
    %c0_84 = arith.constant 0 : index
    %c0_85 = arith.constant 0 : index
    %c0_86 = arith.constant 0 : index
    %64 = vector.load %arg8[%c0_83, %c0_84, %c0_85, %c0_86] : memref<1x1x14x112xbf16, #tpu.memory_space<vmem>>, vector<1x1x14x112xbf16>
    %65 = vector.shape_cast %64 : vector<1x1x14x112xbf16> to vector<14x112xbf16>
    %66 = vector.shape_cast %63 : vector<14x112xbf16> to vector<1x1x14x112xbf16>
    tpu.vector_store %arg8[%c0_83, %c0_84, %c0_85, %c0_86], %66 {strides = array<i32>} : memref<1x1x14x112xbf16, #tpu.memory_space<vmem>>, vector<1x1x14x112xbf16>,
    return
  }
  func.func @transform_0(%arg0: i32, %arg1: i32) -> (i32, i32, i32, i32) {
    %c0_i32 = arith.constant 0 : i32
    %0 = arith.addi %arg1, %c0_i32 : i32
    %c0_i32_0 = arith.constant 0 : i32
    %c0_i32_1 = arith.constant 0 : i32
    %c0_i32_2 = arith.constant 0 : i32
    return %arg0, %0, %c0_i32_0, %c0_i32_1 : i32, i32, i32, i32
  }
  func.func @transform_1(%arg0: i32, %arg1: i32) -> (i32, i32, i32, i32) {
    %c1_i32 = arith.constant 1 : i32
    %0 = arith.addi %arg1, %c1_i32 : i32
    %c0_i32 = arith.constant 0 : i32
    %c0_i32_0 = arith.constant 0 : i32
    %c0_i32_1 = arith.constant 0 : i32
    return %arg0, %0, %c0_i32, %c0_i32_0 : i32, i32, i32, i32
  }
  func.func @transform_2(%arg0: i32, %arg1: i32) -> (i32, i32, i32, i32) {
    %c2_i32 = arith.constant 2 : i32
    %0 = arith.addi %arg1, %c2_i32 : i32
    %c0_i32 = arith.constant 0 : i32
    %c0_i32_0 = arith.constant 0 : i32
    %c0_i32_1 = arith.constant 0 : i32
    return %arg0, %0, %c0_i32, %c0_i32_0 : i32, i32, i32, i32
  }
  func.func @transform_3(%arg0: i32, %arg1: i32) -> (i32, i32, i32, i32) {
    %c0_i32 = arith.constant 0 : i32
    %c0_i32_0 = arith.constant 0 : i32
    %c0_i32_1 = arith.constant 0 : i32
    %c0_i32_2 = arith.constant 0 : i32
    %c0_i32_3 = arith.constant 0 : i32
    return %c0_i32, %c0_i32_0, %c0_i32_1, %c0_i32_2 : i32, i32, i32, i32
  }
  func.func @transform_4(%arg0: i32, %arg1: i32) -> (i32, i32) {
    %c0_i32 = arith.constant 0 : i32
    %c0_i32_0 = arith.constant 0 : i32
    %c0_i32_1 = arith.constant 0 : i32
    return %c0_i32, %c0_i32_0 : i32, i32
  }
  func.func @transform_5(%arg0: i32, %arg1: i32) -> (i32, i32) {
    %c0_i32 = arith.constant 0 : i32
    %c0_i32_0 = arith.constant 0 : i32
    %c0_i32_1 = arith.constant 0 : i32
    return %c0_i32, %c0_i32_0 : i32, i32
  }
  func.func @transform_6(%arg0: i32, %arg1: i32) -> (i32, i32, i32, i32) {
    %c0_i32 = arith.constant 0 : i32
    %c0_i32_0 = arith.constant 0 : i32
    %c0_i32_1 = arith.constant 0 : i32
    return %arg0, %arg1, %c0_i32, %c0_i32_0 : i32, i32, i32, i32
  }
}

module attributes {stable_mosaic.version = 11 : i64} {
  func.func @_conv_stats_kernel(%arg0: i32, %arg1: i32, %arg2: memref<1x1x14x112xbf16, #tpu.memory_space<vmem>>, %arg3: memref<1x1x14x112xbf16, #tpu.memory_space<vmem>>, %arg4: memref<1x1x14x112xbf16, #tpu.memory_space<vmem>>, %arg5: memref<3x3x112x96xbf16, #tpu.memory_space<vmem>>, %arg6: memref<1x1x1x96xf32, #tpu.memory_space<vmem>>, %arg7: memref<1x1x1x96xf32, #tpu.memory_space<vmem>>) attributes {dimension_semantics = [#tpu.dimension_semantics<parallel>, #tpu.dimension_semantics<parallel>], iteration_bounds = array<i64: 2, 12>, scalar_prefetch = 0 : i64, scratch_operands = 0 : i64, tpu.core_type = #tpu.core_type<tc>, window_params = [{transform_indices = @transform_0, window_bounds = array<i64: 1, 1, 14, 112>}, {transform_indices = @transform_1, window_bounds = array<i64: 1, 1, 14, 112>}, {transform_indices = @transform_2, window_bounds = array<i64: 1, 1, 14, 112>}, {pipeline_mode = #tpu.pipeline_mode<synchronous>, transform_indices = @transform_3, window_bounds = array<i64: 3, 3, 112, 96>}, {transform_indices = @transform_4, window_bounds = array<i64: 1, 1, 1, 96>}, {transform_indices = @transform_5, window_bounds = array<i64: 1, 1, 1, 96>}]} {
    %cst = arith.constant 0.000000e+00 : f32
    %0 = vector.broadcast %cst : f32 to vector<12x96xf32>
    %c0 = arith.constant 0 : index
    %c0_0 = arith.constant 0 : index
    %c0_1 = arith.constant 0 : index
    %c0_2 = arith.constant 0 : index
    %1 = vector.load %arg2[%c0, %c0_0, %c0_1, %c0_2] : memref<1x1x14x112xbf16, #tpu.memory_space<vmem>>, vector<1x1x12x112xbf16>
    %2 = vector.shape_cast %1 : vector<1x1x12x112xbf16> to vector<12x112xbf16>
    %c0_3 = arith.constant 0 : index
    %c0_4 = arith.constant 0 : index
    %c0_5 = arith.constant 0 : index
    %c0_6 = arith.constant 0 : index
    %3 = vector.load %arg5[%c0_3, %c0_4, %c0_5, %c0_6] : memref<3x3x112x96xbf16, #tpu.memory_space<vmem>>, vector<1x1x112x96xbf16>
    %4 = vector.shape_cast %3 : vector<1x1x112x96xbf16> to vector<112x96xbf16>
    %cst_7 = arith.constant dense<0.000000e+00> : vector<12x96xf32>
    %5 = tpu.matmul %2, %4, %cst_7 {dimension_numbers = #tpu.dot_dimension_numbers<[1], [0], [0], [1], [0, 0, 1, 1], [], []>} : vector<12x112xbf16>, vector<112x96xbf16>, vector<12x96xf32> -> vector<12x96xf32>
    %6 = arith.addf %0, %5 : vector<12x96xf32>
    %c0_8 = arith.constant 0 : index
    %c0_9 = arith.constant 0 : index
    %c1 = arith.constant 1 : index
    %c0_10 = arith.constant 0 : index
    %7 = vector.load %arg2[%c0_8, %c0_9, %c1, %c0_10] : memref<1x1x14x112xbf16, #tpu.memory_space<vmem>>, vector<1x1x12x112xbf16>
    %8 = vector.shape_cast %7 : vector<1x1x12x112xbf16> to vector<12x112xbf16>
    %c0_11 = arith.constant 0 : index
    %c1_12 = arith.constant 1 : index
    %c0_13 = arith.constant 0 : index
    %c0_14 = arith.constant 0 : index
    %9 = vector.load %arg5[%c0_11, %c1_12, %c0_13, %c0_14] : memref<3x3x112x96xbf16, #tpu.memory_space<vmem>>, vector<1x1x112x96xbf16>
    %10 = vector.shape_cast %9 : vector<1x1x112x96xbf16> to vector<112x96xbf16>
    %cst_15 = arith.constant dense<0.000000e+00> : vector<12x96xf32>
    %11 = tpu.matmul %8, %10, %cst_15 {dimension_numbers = #tpu.dot_dimension_numbers<[1], [0], [0], [1], [0, 0, 1, 1], [], []>} : vector<12x112xbf16>, vector<112x96xbf16>, vector<12x96xf32> -> vector<12x96xf32>
    %12 = arith.addf %6, %11 : vector<12x96xf32>
    %c0_16 = arith.constant 0 : index
    %c0_17 = arith.constant 0 : index
    %c2 = arith.constant 2 : index
    %c0_18 = arith.constant 0 : index
    %13 = vector.load %arg2[%c0_16, %c0_17, %c2, %c0_18] : memref<1x1x14x112xbf16, #tpu.memory_space<vmem>>, vector<1x1x12x112xbf16>
    %14 = vector.shape_cast %13 : vector<1x1x12x112xbf16> to vector<12x112xbf16>
    %c0_19 = arith.constant 0 : index
    %c2_20 = arith.constant 2 : index
    %c0_21 = arith.constant 0 : index
    %c0_22 = arith.constant 0 : index
    %15 = vector.load %arg5[%c0_19, %c2_20, %c0_21, %c0_22] : memref<3x3x112x96xbf16, #tpu.memory_space<vmem>>, vector<1x1x112x96xbf16>
    %16 = vector.shape_cast %15 : vector<1x1x112x96xbf16> to vector<112x96xbf16>
    %cst_23 = arith.constant dense<0.000000e+00> : vector<12x96xf32>
    %17 = tpu.matmul %14, %16, %cst_23 {dimension_numbers = #tpu.dot_dimension_numbers<[1], [0], [0], [1], [0, 0, 1, 1], [], []>} : vector<12x112xbf16>, vector<112x96xbf16>, vector<12x96xf32> -> vector<12x96xf32>
    %18 = arith.addf %12, %17 : vector<12x96xf32>
    %c0_24 = arith.constant 0 : index
    %c0_25 = arith.constant 0 : index
    %c0_26 = arith.constant 0 : index
    %c0_27 = arith.constant 0 : index
    %19 = vector.load %arg3[%c0_24, %c0_25, %c0_26, %c0_27] : memref<1x1x14x112xbf16, #tpu.memory_space<vmem>>, vector<1x1x12x112xbf16>
    %20 = vector.shape_cast %19 : vector<1x1x12x112xbf16> to vector<12x112xbf16>
    %c1_28 = arith.constant 1 : index
    %c0_29 = arith.constant 0 : index
    %c0_30 = arith.constant 0 : index
    %c0_31 = arith.constant 0 : index
    %21 = vector.load %arg5[%c1_28, %c0_29, %c0_30, %c0_31] : memref<3x3x112x96xbf16, #tpu.memory_space<vmem>>, vector<1x1x112x96xbf16>
    %22 = vector.shape_cast %21 : vector<1x1x112x96xbf16> to vector<112x96xbf16>
    %cst_32 = arith.constant dense<0.000000e+00> : vector<12x96xf32>
    %23 = tpu.matmul %20, %22, %cst_32 {dimension_numbers = #tpu.dot_dimension_numbers<[1], [0], [0], [1], [0, 0, 1, 1], [], []>} : vector<12x112xbf16>, vector<112x96xbf16>, vector<12x96xf32> -> vector<12x96xf32>
    %24 = arith.addf %18, %23 : vector<12x96xf32>
    %c0_33 = arith.constant 0 : index
    %c0_34 = arith.constant 0 : index
    %c1_35 = arith.constant 1 : index
    %c0_36 = arith.constant 0 : index
    %25 = vector.load %arg3[%c0_33, %c0_34, %c1_35, %c0_36] : memref<1x1x14x112xbf16, #tpu.memory_space<vmem>>, vector<1x1x12x112xbf16>
    %26 = vector.shape_cast %25 : vector<1x1x12x112xbf16> to vector<12x112xbf16>
    %c1_37 = arith.constant 1 : index
    %c1_38 = arith.constant 1 : index
    %c0_39 = arith.constant 0 : index
    %c0_40 = arith.constant 0 : index
    %27 = vector.load %arg5[%c1_37, %c1_38, %c0_39, %c0_40] : memref<3x3x112x96xbf16, #tpu.memory_space<vmem>>, vector<1x1x112x96xbf16>
    %28 = vector.shape_cast %27 : vector<1x1x112x96xbf16> to vector<112x96xbf16>
    %cst_41 = arith.constant dense<0.000000e+00> : vector<12x96xf32>
    %29 = tpu.matmul %26, %28, %cst_41 {dimension_numbers = #tpu.dot_dimension_numbers<[1], [0], [0], [1], [0, 0, 1, 1], [], []>} : vector<12x112xbf16>, vector<112x96xbf16>, vector<12x96xf32> -> vector<12x96xf32>
    %30 = arith.addf %24, %29 : vector<12x96xf32>
    %c0_42 = arith.constant 0 : index
    %c0_43 = arith.constant 0 : index
    %c2_44 = arith.constant 2 : index
    %c0_45 = arith.constant 0 : index
    %31 = vector.load %arg3[%c0_42, %c0_43, %c2_44, %c0_45] : memref<1x1x14x112xbf16, #tpu.memory_space<vmem>>, vector<1x1x12x112xbf16>
    %32 = vector.shape_cast %31 : vector<1x1x12x112xbf16> to vector<12x112xbf16>
    %c1_46 = arith.constant 1 : index
    %c2_47 = arith.constant 2 : index
    %c0_48 = arith.constant 0 : index
    %c0_49 = arith.constant 0 : index
    %33 = vector.load %arg5[%c1_46, %c2_47, %c0_48, %c0_49] : memref<3x3x112x96xbf16, #tpu.memory_space<vmem>>, vector<1x1x112x96xbf16>
    %34 = vector.shape_cast %33 : vector<1x1x112x96xbf16> to vector<112x96xbf16>
    %cst_50 = arith.constant dense<0.000000e+00> : vector<12x96xf32>
    %35 = tpu.matmul %32, %34, %cst_50 {dimension_numbers = #tpu.dot_dimension_numbers<[1], [0], [0], [1], [0, 0, 1, 1], [], []>} : vector<12x112xbf16>, vector<112x96xbf16>, vector<12x96xf32> -> vector<12x96xf32>
    %36 = arith.addf %30, %35 : vector<12x96xf32>
    %c0_51 = arith.constant 0 : index
    %c0_52 = arith.constant 0 : index
    %c0_53 = arith.constant 0 : index
    %c0_54 = arith.constant 0 : index
    %37 = vector.load %arg4[%c0_51, %c0_52, %c0_53, %c0_54] : memref<1x1x14x112xbf16, #tpu.memory_space<vmem>>, vector<1x1x12x112xbf16>
    %38 = vector.shape_cast %37 : vector<1x1x12x112xbf16> to vector<12x112xbf16>
    %c2_55 = arith.constant 2 : index
    %c0_56 = arith.constant 0 : index
    %c0_57 = arith.constant 0 : index
    %c0_58 = arith.constant 0 : index
    %39 = vector.load %arg5[%c2_55, %c0_56, %c0_57, %c0_58] : memref<3x3x112x96xbf16, #tpu.memory_space<vmem>>, vector<1x1x112x96xbf16>
    %40 = vector.shape_cast %39 : vector<1x1x112x96xbf16> to vector<112x96xbf16>
    %cst_59 = arith.constant dense<0.000000e+00> : vector<12x96xf32>
    %41 = tpu.matmul %38, %40, %cst_59 {dimension_numbers = #tpu.dot_dimension_numbers<[1], [0], [0], [1], [0, 0, 1, 1], [], []>} : vector<12x112xbf16>, vector<112x96xbf16>, vector<12x96xf32> -> vector<12x96xf32>
    %42 = arith.addf %36, %41 : vector<12x96xf32>
    %c0_60 = arith.constant 0 : index
    %c0_61 = arith.constant 0 : index
    %c1_62 = arith.constant 1 : index
    %c0_63 = arith.constant 0 : index
    %43 = vector.load %arg4[%c0_60, %c0_61, %c1_62, %c0_63] : memref<1x1x14x112xbf16, #tpu.memory_space<vmem>>, vector<1x1x12x112xbf16>
    %44 = vector.shape_cast %43 : vector<1x1x12x112xbf16> to vector<12x112xbf16>
    %c2_64 = arith.constant 2 : index
    %c1_65 = arith.constant 1 : index
    %c0_66 = arith.constant 0 : index
    %c0_67 = arith.constant 0 : index
    %45 = vector.load %arg5[%c2_64, %c1_65, %c0_66, %c0_67] : memref<3x3x112x96xbf16, #tpu.memory_space<vmem>>, vector<1x1x112x96xbf16>
    %46 = vector.shape_cast %45 : vector<1x1x112x96xbf16> to vector<112x96xbf16>
    %cst_68 = arith.constant dense<0.000000e+00> : vector<12x96xf32>
    %47 = tpu.matmul %44, %46, %cst_68 {dimension_numbers = #tpu.dot_dimension_numbers<[1], [0], [0], [1], [0, 0, 1, 1], [], []>} : vector<12x112xbf16>, vector<112x96xbf16>, vector<12x96xf32> -> vector<12x96xf32>
    %48 = arith.addf %42, %47 : vector<12x96xf32>
    %c0_69 = arith.constant 0 : index
    %c0_70 = arith.constant 0 : index
    %c2_71 = arith.constant 2 : index
    %c0_72 = arith.constant 0 : index
    %49 = vector.load %arg4[%c0_69, %c0_70, %c2_71, %c0_72] : memref<1x1x14x112xbf16, #tpu.memory_space<vmem>>, vector<1x1x12x112xbf16>
    %50 = vector.shape_cast %49 : vector<1x1x12x112xbf16> to vector<12x112xbf16>
    %c2_73 = arith.constant 2 : index
    %c2_74 = arith.constant 2 : index
    %c0_75 = arith.constant 0 : index
    %c0_76 = arith.constant 0 : index
    %51 = vector.load %arg5[%c2_73, %c2_74, %c0_75, %c0_76] : memref<3x3x112x96xbf16, #tpu.memory_space<vmem>>, vector<1x1x112x96xbf16>
    %52 = vector.shape_cast %51 : vector<1x1x112x96xbf16> to vector<112x96xbf16>
    %cst_77 = arith.constant dense<0.000000e+00> : vector<12x96xf32>
    %53 = tpu.matmul %50, %52, %cst_77 {dimension_numbers = #tpu.dot_dimension_numbers<[1], [0], [0], [1], [0, 0, 1, 1], [], []>} : vector<12x112xbf16>, vector<112x96xbf16>, vector<12x96xf32> -> vector<12x96xf32>
    %54 = arith.addf %48, %53 : vector<12x96xf32>
    %cst_78 = arith.constant dense<0.000000e+00> : vector<96xf32>
    %55 = vector.multi_reduction <add>, %54, %cst_78 [0] : vector<12x96xf32> to vector<96xf32>
    %56 = vector.shape_cast %55 : vector<96xf32> to vector<1x96xf32>
    %c0_79 = arith.constant 0 : index
    %c0_80 = arith.constant 0 : index
    %c0_81 = arith.constant 0 : index
    %c0_82 = arith.constant 0 : index
    %57 = vector.load %arg6[%c0_79, %c0_80, %c0_81, %c0_82] : memref<1x1x1x96xf32, #tpu.memory_space<vmem>>, vector<1x1x1x96xf32>
    %58 = vector.shape_cast %57 : vector<1x1x1x96xf32> to vector<1x96xf32>
    %59 = vector.shape_cast %56 : vector<1x96xf32> to vector<1x1x1x96xf32>
    tpu.vector_store %arg6[%c0_79, %c0_80, %c0_81, %c0_82], %59 {strides = array<i32>} : memref<1x1x1x96xf32, #tpu.memory_space<vmem>>, vector<1x1x1x96xf32>,
    %60 = arith.mulf %54, %54 : vector<12x96xf32>
    %cst_83 = arith.constant dense<0.000000e+00> : vector<96xf32>
    %61 = vector.multi_reduction <add>, %60, %cst_83 [0] : vector<12x96xf32> to vector<96xf32>
    %62 = vector.shape_cast %61 : vector<96xf32> to vector<1x96xf32>
    %c0_84 = arith.constant 0 : index
    %c0_85 = arith.constant 0 : index
    %c0_86 = arith.constant 0 : index
    %c0_87 = arith.constant 0 : index
    %63 = vector.load %arg7[%c0_84, %c0_85, %c0_86, %c0_87] : memref<1x1x1x96xf32, #tpu.memory_space<vmem>>, vector<1x1x1x96xf32>
    %64 = vector.shape_cast %63 : vector<1x1x1x96xf32> to vector<1x96xf32>
    %65 = vector.shape_cast %62 : vector<1x96xf32> to vector<1x1x1x96xf32>
    tpu.vector_store %arg7[%c0_84, %c0_85, %c0_86, %c0_87], %65 {strides = array<i32>} : memref<1x1x1x96xf32, #tpu.memory_space<vmem>>, vector<1x1x1x96xf32>,
    return
  }
  func.func @transform_0(%arg0: i32, %arg1: i32) -> (i32, i32, i32, i32) {
    %c0_i32 = arith.constant 0 : i32
    %0 = arith.addi %arg1, %c0_i32 : i32
    %c0_i32_0 = arith.constant 0 : i32
    %c0_i32_1 = arith.constant 0 : i32
    %c0_i32_2 = arith.constant 0 : i32
    return %arg0, %0, %c0_i32_0, %c0_i32_1 : i32, i32, i32, i32
  }
  func.func @transform_1(%arg0: i32, %arg1: i32) -> (i32, i32, i32, i32) {
    %c1_i32 = arith.constant 1 : i32
    %0 = arith.addi %arg1, %c1_i32 : i32
    %c0_i32 = arith.constant 0 : i32
    %c0_i32_0 = arith.constant 0 : i32
    %c0_i32_1 = arith.constant 0 : i32
    return %arg0, %0, %c0_i32, %c0_i32_0 : i32, i32, i32, i32
  }
  func.func @transform_2(%arg0: i32, %arg1: i32) -> (i32, i32, i32, i32) {
    %c2_i32 = arith.constant 2 : i32
    %0 = arith.addi %arg1, %c2_i32 : i32
    %c0_i32 = arith.constant 0 : i32
    %c0_i32_0 = arith.constant 0 : i32
    %c0_i32_1 = arith.constant 0 : i32
    return %arg0, %0, %c0_i32, %c0_i32_0 : i32, i32, i32, i32
  }
  func.func @transform_3(%arg0: i32, %arg1: i32) -> (i32, i32, i32, i32) {
    %c0_i32 = arith.constant 0 : i32
    %c0_i32_0 = arith.constant 0 : i32
    %c0_i32_1 = arith.constant 0 : i32
    %c0_i32_2 = arith.constant 0 : i32
    %c0_i32_3 = arith.constant 0 : i32
    return %c0_i32, %c0_i32_0, %c0_i32_1, %c0_i32_2 : i32, i32, i32, i32
  }
  func.func @transform_4(%arg0: i32, %arg1: i32) -> (i32, i32, i32, i32) {
    %c0_i32 = arith.constant 0 : i32
    %c0_i32_0 = arith.constant 0 : i32
    %c0_i32_1 = arith.constant 0 : i32
    return %arg0, %arg1, %c0_i32, %c0_i32_0 : i32, i32, i32, i32
  }
  func.func @transform_5(%arg0: i32, %arg1: i32) -> (i32, i32, i32, i32) {
    %c0_i32 = arith.constant 0 : i32
    %c0_i32_0 = arith.constant 0 : i32
    %c0_i32_1 = arith.constant 0 : i32
    return %arg0, %arg1, %c0_i32, %c0_i32_0 : i32, i32, i32, i32
  }
}

module attributes {stable_mosaic.version = 11 : i64} {
  func.func @_conv_stats_kernel(%arg0: i32, %arg1: i32, %arg2: memref<1x1x16x64xbf16, #tpu.memory_space<vmem>>, %arg3: memref<1x1x64x80xbf16, #tpu.memory_space<vmem>>, %arg4: memref<1x1x1x80xf32, #tpu.memory_space<vmem>>, %arg5: memref<1x1x1x80xf32, #tpu.memory_space<vmem>>) attributes {dimension_semantics = [#tpu.dimension_semantics<parallel>, #tpu.dimension_semantics<parallel>], iteration_bounds = array<i64: 2, 10>, scalar_prefetch = 0 : i64, scratch_operands = 0 : i64, tpu.core_type = #tpu.core_type<tc>, window_params = [{transform_indices = @transform_0, window_bounds = array<i64: 1, 1, 16, 64>}, {pipeline_mode = #tpu.pipeline_mode<synchronous>, transform_indices = @transform_1, window_bounds = array<i64: 1, 1, 64, 80>}, {transform_indices = @transform_2, window_bounds = array<i64: 1, 1, 1, 80>}, {transform_indices = @transform_3, window_bounds = array<i64: 1, 1, 1, 80>}]} {
    %cst = arith.constant 0.000000e+00 : f32
    %0 = vector.broadcast %cst : f32 to vector<10x80xf32>
    %c0 = arith.constant 0 : index
    %c0_0 = arith.constant 0 : index
    %c3 = arith.constant 3 : index
    %c0_1 = arith.constant 0 : index
    %1 = vector.load %arg2[%c0, %c0_0, %c3, %c0_1] : memref<1x1x16x64xbf16, #tpu.memory_space<vmem>>, vector<1x1x10x64xbf16>
    %2 = vector.shape_cast %1 : vector<1x1x10x64xbf16> to vector<10x64xbf16>
    %c0_2 = arith.constant 0 : index
    %c0_3 = arith.constant 0 : index
    %c0_4 = arith.constant 0 : index
    %c0_5 = arith.constant 0 : index
    %3 = vector.load %arg3[%c0_2, %c0_3, %c0_4, %c0_5] : memref<1x1x64x80xbf16, #tpu.memory_space<vmem>>, vector<1x1x64x80xbf16>
    %4 = vector.shape_cast %3 : vector<1x1x64x80xbf16> to vector<64x80xbf16>
    %cst_6 = arith.constant dense<0.000000e+00> : vector<10x80xf32>
    %5 = tpu.matmul %2, %4, %cst_6 {dimension_numbers = #tpu.dot_dimension_numbers<[1], [0], [0], [1], [0, 0, 1, 1], [], []>} : vector<10x64xbf16>, vector<64x80xbf16>, vector<10x80xf32> -> vector<10x80xf32>
    %6 = arith.addf %0, %5 : vector<10x80xf32>
    %cst_7 = arith.constant dense<0.000000e+00> : vector<80xf32>
    %7 = vector.multi_reduction <add>, %6, %cst_7 [0] : vector<10x80xf32> to vector<80xf32>
    %8 = vector.shape_cast %7 : vector<80xf32> to vector<1x80xf32>
    %c0_8 = arith.constant 0 : index
    %c0_9 = arith.constant 0 : index
    %c0_10 = arith.constant 0 : index
    %c0_11 = arith.constant 0 : index
    %9 = vector.load %arg4[%c0_8, %c0_9, %c0_10, %c0_11] : memref<1x1x1x80xf32, #tpu.memory_space<vmem>>, vector<1x1x1x80xf32>
    %10 = vector.shape_cast %9 : vector<1x1x1x80xf32> to vector<1x80xf32>
    %11 = vector.shape_cast %8 : vector<1x80xf32> to vector<1x1x1x80xf32>
    tpu.vector_store %arg4[%c0_8, %c0_9, %c0_10, %c0_11], %11 {strides = array<i32>} : memref<1x1x1x80xf32, #tpu.memory_space<vmem>>, vector<1x1x1x80xf32>,
    %12 = arith.mulf %6, %6 : vector<10x80xf32>
    %cst_12 = arith.constant dense<0.000000e+00> : vector<80xf32>
    %13 = vector.multi_reduction <add>, %12, %cst_12 [0] : vector<10x80xf32> to vector<80xf32>
    %14 = vector.shape_cast %13 : vector<80xf32> to vector<1x80xf32>
    %c0_13 = arith.constant 0 : index
    %c0_14 = arith.constant 0 : index
    %c0_15 = arith.constant 0 : index
    %c0_16 = arith.constant 0 : index
    %15 = vector.load %arg5[%c0_13, %c0_14, %c0_15, %c0_16] : memref<1x1x1x80xf32, #tpu.memory_space<vmem>>, vector<1x1x1x80xf32>
    %16 = vector.shape_cast %15 : vector<1x1x1x80xf32> to vector<1x80xf32>
    %17 = vector.shape_cast %14 : vector<1x80xf32> to vector<1x1x1x80xf32>
    tpu.vector_store %arg5[%c0_13, %c0_14, %c0_15, %c0_16], %17 {strides = array<i32>} : memref<1x1x1x80xf32, #tpu.memory_space<vmem>>, vector<1x1x1x80xf32>,
    return
  }
  func.func @transform_0(%arg0: i32, %arg1: i32) -> (i32, i32, i32, i32) {
    %c3_i32 = arith.constant 3 : i32
    %0 = arith.addi %arg1, %c3_i32 : i32
    %c0_i32 = arith.constant 0 : i32
    %c0_i32_0 = arith.constant 0 : i32
    %c0_i32_1 = arith.constant 0 : i32
    return %arg0, %0, %c0_i32, %c0_i32_0 : i32, i32, i32, i32
  }
  func.func @transform_1(%arg0: i32, %arg1: i32) -> (i32, i32, i32, i32) {
    %c0_i32 = arith.constant 0 : i32
    %c0_i32_0 = arith.constant 0 : i32
    %c0_i32_1 = arith.constant 0 : i32
    %c0_i32_2 = arith.constant 0 : i32
    %c0_i32_3 = arith.constant 0 : i32
    return %c0_i32, %c0_i32_0, %c0_i32_1, %c0_i32_2 : i32, i32, i32, i32
  }
  func.func @transform_2(%arg0: i32, %arg1: i32) -> (i32, i32, i32, i32) {
    %c0_i32 = arith.constant 0 : i32
    %c0_i32_0 = arith.constant 0 : i32
    %c0_i32_1 = arith.constant 0 : i32
    return %arg0, %arg1, %c0_i32, %c0_i32_0 : i32, i32, i32, i32
  }
  func.func @transform_3(%arg0: i32, %arg1: i32) -> (i32, i32, i32, i32) {
    %c0_i32 = arith.constant 0 : i32
    %c0_i32_0 = arith.constant 0 : i32
    %c0_i32_1 = arith.constant 0 : i32
    return %arg0, %arg1, %c0_i32, %c0_i32_0 : i32, i32, i32, i32
  }
}

module attributes {stable_mosaic.version = 11 : i64} {
  func.func @_final_kernel(%arg0: i32, %arg1: i32, %arg2: memref<1x1x14x112xbf16, #tpu.memory_space<vmem>>, %arg3: memref<1x1x14x112xbf16, #tpu.memory_space<vmem>>, %arg4: memref<1x1x14x112xbf16, #tpu.memory_space<vmem>>, %arg5: memref<1x1x16x64xbf16, #tpu.memory_space<vmem>>, %arg6: memref<3x3x112x80xbf16, #tpu.memory_space<vmem>>, %arg7: memref<1x1x64x80xbf16, #tpu.memory_space<vmem>>, %arg8: memref<1x80xf32, #tpu.memory_space<vmem>>, %arg9: memref<1x80xf32, #tpu.memory_space<vmem>>, %arg10: memref<1x80xf32, #tpu.memory_space<vmem>>, %arg11: memref<1x80xf32, #tpu.memory_space<vmem>>, %arg12: memref<1x1x10x80xf32, #tpu.memory_space<vmem>>) attributes {dimension_semantics = [#tpu.dimension_semantics<parallel>, #tpu.dimension_semantics<parallel>], iteration_bounds = array<i64: 2, 10>, scalar_prefetch = 0 : i64, scratch_operands = 0 : i64, tpu.core_type = #tpu.core_type<tc>, window_params = [{transform_indices = @transform_0, window_bounds = array<i64: 1, 1, 14, 112>}, {transform_indices = @transform_1, window_bounds = array<i64: 1, 1, 14, 112>}, {transform_indices = @transform_2, window_bounds = array<i64: 1, 1, 14, 112>}, {transform_indices = @transform_3, window_bounds = array<i64: 1, 1, 16, 64>}, {pipeline_mode = #tpu.pipeline_mode<synchronous>, transform_indices = @transform_4, window_bounds = array<i64: 3, 3, 112, 80>}, {pipeline_mode = #tpu.pipeline_mode<synchronous>, transform_indices = @transform_5, window_bounds = array<i64: 1, 1, 64, 80>}, {pipeline_mode = #tpu.pipeline_mode<synchronous>, transform_indices = @transform_6, window_bounds = array<i64: 1, 80>}, {pipeline_mode = #tpu.pipeline_mode<synchronous>, transform_indices = @transform_7, window_bounds = array<i64: 1, 80>}, {pipeline_mode = #tpu.pipeline_mode<synchronous>, transform_indices = @transform_8, window_bounds = array<i64: 1, 80>}, {pipeline_mode = #tpu.pipeline_mode<synchronous>, transform_indices = @transform_9, window_bounds = array<i64: 1, 80>}, {transform_indices = @transform_10, window_bounds = array<i64: 1, 1, 10, 80>}]} {
    %cst = arith.constant 0.000000e+00 : f32
    %0 = vector.broadcast %cst : f32 to vector<10x80xf32>
    %c0 = arith.constant 0 : index
    %c0_0 = arith.constant 0 : index
    %c1 = arith.constant 1 : index
    %c0_1 = arith.constant 0 : index
    %1 = vector.load %arg2[%c0, %c0_0, %c1, %c0_1] : memref<1x1x14x112xbf16, #tpu.memory_space<vmem>>, vector<1x1x10x112xbf16>
    %2 = vector.shape_cast %1 : vector<1x1x10x112xbf16> to vector<10x112xbf16>
    %c0_2 = arith.constant 0 : index
    %c0_3 = arith.constant 0 : index
    %c0_4 = arith.constant 0 : index
    %c0_5 = arith.constant 0 : index
    %3 = vector.load %arg6[%c0_2, %c0_3, %c0_4, %c0_5] : memref<3x3x112x80xbf16, #tpu.memory_space<vmem>>, vector<1x1x112x80xbf16>
    %4 = vector.shape_cast %3 : vector<1x1x112x80xbf16> to vector<112x80xbf16>
    %cst_6 = arith.constant dense<0.000000e+00> : vector<10x80xf32>
    %5 = tpu.matmul %2, %4, %cst_6 {dimension_numbers = #tpu.dot_dimension_numbers<[1], [0], [0], [1], [0, 0, 1, 1], [], []>} : vector<10x112xbf16>, vector<112x80xbf16>, vector<10x80xf32> -> vector<10x80xf32>
    %6 = arith.addf %0, %5 : vector<10x80xf32>
    %c0_7 = arith.constant 0 : index
    %c0_8 = arith.constant 0 : index
    %c2 = arith.constant 2 : index
    %c0_9 = arith.constant 0 : index
    %7 = vector.load %arg2[%c0_7, %c0_8, %c2, %c0_9] : memref<1x1x14x112xbf16, #tpu.memory_space<vmem>>, vector<1x1x10x112xbf16>
    %8 = vector.shape_cast %7 : vector<1x1x10x112xbf16> to vector<10x112xbf16>
    %c0_10 = arith.constant 0 : index
    %c1_11 = arith.constant 1 : index
    %c0_12 = arith.constant 0 : index
    %c0_13 = arith.constant 0 : index
    %9 = vector.load %arg6[%c0_10, %c1_11, %c0_12, %c0_13] : memref<3x3x112x80xbf16, #tpu.memory_space<vmem>>, vector<1x1x112x80xbf16>
    %10 = vector.shape_cast %9 : vector<1x1x112x80xbf16> to vector<112x80xbf16>
    %cst_14 = arith.constant dense<0.000000e+00> : vector<10x80xf32>
    %11 = tpu.matmul %8, %10, %cst_14 {dimension_numbers = #tpu.dot_dimension_numbers<[1], [0], [0], [1], [0, 0, 1, 1], [], []>} : vector<10x112xbf16>, vector<112x80xbf16>, vector<10x80xf32> -> vector<10x80xf32>
    %12 = arith.addf %6, %11 : vector<10x80xf32>
    %c0_15 = arith.constant 0 : index
    %c0_16 = arith.constant 0 : index
    %c3 = arith.constant 3 : index
    %c0_17 = arith.constant 0 : index
    %13 = vector.load %arg2[%c0_15, %c0_16, %c3, %c0_17] : memref<1x1x14x112xbf16, #tpu.memory_space<vmem>>, vector<1x1x10x112xbf16>
    %14 = vector.shape_cast %13 : vector<1x1x10x112xbf16> to vector<10x112xbf16>
    %c0_18 = arith.constant 0 : index
    %c2_19 = arith.constant 2 : index
    %c0_20 = arith.constant 0 : index
    %c0_21 = arith.constant 0 : index
    %15 = vector.load %arg6[%c0_18, %c2_19, %c0_20, %c0_21] : memref<3x3x112x80xbf16, #tpu.memory_space<vmem>>, vector<1x1x112x80xbf16>
    %16 = vector.shape_cast %15 : vector<1x1x112x80xbf16> to vector<112x80xbf16>
    %cst_22 = arith.constant dense<0.000000e+00> : vector<10x80xf32>
    %17 = tpu.matmul %14, %16, %cst_22 {dimension_numbers = #tpu.dot_dimension_numbers<[1], [0], [0], [1], [0, 0, 1, 1], [], []>} : vector<10x112xbf16>, vector<112x80xbf16>, vector<10x80xf32> -> vector<10x80xf32>
    %18 = arith.addf %12, %17 : vector<10x80xf32>
    %c0_23 = arith.constant 0 : index
    %c0_24 = arith.constant 0 : index
    %c1_25 = arith.constant 1 : index
    %c0_26 = arith.constant 0 : index
    %19 = vector.load %arg3[%c0_23, %c0_24, %c1_25, %c0_26] : memref<1x1x14x112xbf16, #tpu.memory_space<vmem>>, vector<1x1x10x112xbf16>
    %20 = vector.shape_cast %19 : vector<1x1x10x112xbf16> to vector<10x112xbf16>
    %c1_27 = arith.constant 1 : index
    %c0_28 = arith.constant 0 : index
    %c0_29 = arith.constant 0 : index
    %c0_30 = arith.constant 0 : index
    %21 = vector.load %arg6[%c1_27, %c0_28, %c0_29, %c0_30] : memref<3x3x112x80xbf16, #tpu.memory_space<vmem>>, vector<1x1x112x80xbf16>
    %22 = vector.shape_cast %21 : vector<1x1x112x80xbf16> to vector<112x80xbf16>
    %cst_31 = arith.constant dense<0.000000e+00> : vector<10x80xf32>
    %23 = tpu.matmul %20, %22, %cst_31 {dimension_numbers = #tpu.dot_dimension_numbers<[1], [0], [0], [1], [0, 0, 1, 1], [], []>} : vector<10x112xbf16>, vector<112x80xbf16>, vector<10x80xf32> -> vector<10x80xf32>
    %24 = arith.addf %18, %23 : vector<10x80xf32>
    %c0_32 = arith.constant 0 : index
    %c0_33 = arith.constant 0 : index
    %c2_34 = arith.constant 2 : index
    %c0_35 = arith.constant 0 : index
    %25 = vector.load %arg3[%c0_32, %c0_33, %c2_34, %c0_35] : memref<1x1x14x112xbf16, #tpu.memory_space<vmem>>, vector<1x1x10x112xbf16>
    %26 = vector.shape_cast %25 : vector<1x1x10x112xbf16> to vector<10x112xbf16>
    %c1_36 = arith.constant 1 : index
    %c1_37 = arith.constant 1 : index
    %c0_38 = arith.constant 0 : index
    %c0_39 = arith.constant 0 : index
    %27 = vector.load %arg6[%c1_36, %c1_37, %c0_38, %c0_39] : memref<3x3x112x80xbf16, #tpu.memory_space<vmem>>, vector<1x1x112x80xbf16>
    %28 = vector.shape_cast %27 : vector<1x1x112x80xbf16> to vector<112x80xbf16>
    %cst_40 = arith.constant dense<0.000000e+00> : vector<10x80xf32>
    %29 = tpu.matmul %26, %28, %cst_40 {dimension_numbers = #tpu.dot_dimension_numbers<[1], [0], [0], [1], [0, 0, 1, 1], [], []>} : vector<10x112xbf16>, vector<112x80xbf16>, vector<10x80xf32> -> vector<10x80xf32>
    %30 = arith.addf %24, %29 : vector<10x80xf32>
    %c0_41 = arith.constant 0 : index
    %c0_42 = arith.constant 0 : index
    %c3_43 = arith.constant 3 : index
    %c0_44 = arith.constant 0 : index
    %31 = vector.load %arg3[%c0_41, %c0_42, %c3_43, %c0_44] : memref<1x1x14x112xbf16, #tpu.memory_space<vmem>>, vector<1x1x10x112xbf16>
    %32 = vector.shape_cast %31 : vector<1x1x10x112xbf16> to vector<10x112xbf16>
    %c1_45 = arith.constant 1 : index
    %c2_46 = arith.constant 2 : index
    %c0_47 = arith.constant 0 : index
    %c0_48 = arith.constant 0 : index
    %33 = vector.load %arg6[%c1_45, %c2_46, %c0_47, %c0_48] : memref<3x3x112x80xbf16, #tpu.memory_space<vmem>>, vector<1x1x112x80xbf16>
    %34 = vector.shape_cast %33 : vector<1x1x112x80xbf16> to vector<112x80xbf16>
    %cst_49 = arith.constant dense<0.000000e+00> : vector<10x80xf32>
    %35 = tpu.matmul %32, %34, %cst_49 {dimension_numbers = #tpu.dot_dimension_numbers<[1], [0], [0], [1], [0, 0, 1, 1], [], []>} : vector<10x112xbf16>, vector<112x80xbf16>, vector<10x80xf32> -> vector<10x80xf32>
    %36 = arith.addf %30, %35 : vector<10x80xf32>
    %c0_50 = arith.constant 0 : index
    %c0_51 = arith.constant 0 : index
    %c1_52 = arith.constant 1 : index
    %c0_53 = arith.constant 0 : index
    %37 = vector.load %arg4[%c0_50, %c0_51, %c1_52, %c0_53] : memref<1x1x14x112xbf16, #tpu.memory_space<vmem>>, vector<1x1x10x112xbf16>
    %38 = vector.shape_cast %37 : vector<1x1x10x112xbf16> to vector<10x112xbf16>
    %c2_54 = arith.constant 2 : index
    %c0_55 = arith.constant 0 : index
    %c0_56 = arith.constant 0 : index
    %c0_57 = arith.constant 0 : index
    %39 = vector.load %arg6[%c2_54, %c0_55, %c0_56, %c0_57] : memref<3x3x112x80xbf16, #tpu.memory_space<vmem>>, vector<1x1x112x80xbf16>
    %40 = vector.shape_cast %39 : vector<1x1x112x80xbf16> to vector<112x80xbf16>
    %cst_58 = arith.constant dense<0.000000e+00> : vector<10x80xf32>
    %41 = tpu.matmul %38, %40, %cst_58 {dimension_numbers = #tpu.dot_dimension_numbers<[1], [0], [0], [1], [0, 0, 1, 1], [], []>} : vector<10x112xbf16>, vector<112x80xbf16>, vector<10x80xf32> -> vector<10x80xf32>
    %42 = arith.addf %36, %41 : vector<10x80xf32>
    %c0_59 = arith.constant 0 : index
    %c0_60 = arith.constant 0 : index
    %c2_61 = arith.constant 2 : index
    %c0_62 = arith.constant 0 : index
    %43 = vector.load %arg4[%c0_59, %c0_60, %c2_61, %c0_62] : memref<1x1x14x112xbf16, #tpu.memory_space<vmem>>, vector<1x1x10x112xbf16>
    %44 = vector.shape_cast %43 : vector<1x1x10x112xbf16> to vector<10x112xbf16>
    %c2_63 = arith.constant 2 : index
    %c1_64 = arith.constant 1 : index
    %c0_65 = arith.constant 0 : index
    %c0_66 = arith.constant 0 : index
    %45 = vector.load %arg6[%c2_63, %c1_64, %c0_65, %c0_66] : memref<3x3x112x80xbf16, #tpu.memory_space<vmem>>, vector<1x1x112x80xbf16>
    %46 = vector.shape_cast %45 : vector<1x1x112x80xbf16> to vector<112x80xbf16>
    %cst_67 = arith.constant dense<0.000000e+00> : vector<10x80xf32>
    %47 = tpu.matmul %44, %46, %cst_67 {dimension_numbers = #tpu.dot_dimension_numbers<[1], [0], [0], [1], [0, 0, 1, 1], [], []>} : vector<10x112xbf16>, vector<112x80xbf16>, vector<10x80xf32> -> vector<10x80xf32>
    %48 = arith.addf %42, %47 : vector<10x80xf32>
    %c0_68 = arith.constant 0 : index
    %c0_69 = arith.constant 0 : index
    %c3_70 = arith.constant 3 : index
    %c0_71 = arith.constant 0 : index
    %49 = vector.load %arg4[%c0_68, %c0_69, %c3_70, %c0_71] : memref<1x1x14x112xbf16, #tpu.memory_space<vmem>>, vector<1x1x10x112xbf16>
    %50 = vector.shape_cast %49 : vector<1x1x10x112xbf16> to vector<10x112xbf16>
    %c2_72 = arith.constant 2 : index
    %c2_73 = arith.constant 2 : index
    %c0_74 = arith.constant 0 : index
    %c0_75 = arith.constant 0 : index
    %51 = vector.load %arg6[%c2_72, %c2_73, %c0_74, %c0_75] : memref<3x3x112x80xbf16, #tpu.memory_space<vmem>>, vector<1x1x112x80xbf16>
    %52 = vector.shape_cast %51 : vector<1x1x112x80xbf16> to vector<112x80xbf16>
    %cst_76 = arith.constant dense<0.000000e+00> : vector<10x80xf32>
    %53 = tpu.matmul %50, %52, %cst_76 {dimension_numbers = #tpu.dot_dimension_numbers<[1], [0], [0], [1], [0, 0, 1, 1], [], []>} : vector<10x112xbf16>, vector<112x80xbf16>, vector<10x80xf32> -> vector<10x80xf32>
    %54 = arith.addf %48, %53 : vector<10x80xf32>
    %c0_77 = arith.constant 0 : index
    %c0_78 = arith.constant 0 : index
    %55 = vector.load %arg8[%c0_77, %c0_78] : memref<1x80xf32, #tpu.memory_space<vmem>>, vector<1x80xf32>
    %56 = vector.broadcast %55 : vector<1x80xf32> to vector<10x80xf32>
    %57 = arith.mulf %54, %56 : vector<10x80xf32>
    %c0_79 = arith.constant 0 : index
    %c0_80 = arith.constant 0 : index
    %58 = vector.load %arg9[%c0_79, %c0_80] : memref<1x80xf32, #tpu.memory_space<vmem>>, vector<1x80xf32>
    %59 = vector.broadcast %58 : vector<1x80xf32> to vector<10x80xf32>
    %60 = arith.addf %57, %59 : vector<10x80xf32>
    %c0_81 = arith.constant 0 : index
    %c0_82 = arith.constant 0 : index
    %c3_83 = arith.constant 3 : index
    %c0_84 = arith.constant 0 : index
    %61 = vector.load %arg5[%c0_81, %c0_82, %c3_83, %c0_84] : memref<1x1x16x64xbf16, #tpu.memory_space<vmem>>, vector<1x1x10x64xbf16>
    %62 = vector.shape_cast %61 : vector<1x1x10x64xbf16> to vector<10x64xbf16>
    %c0_85 = arith.constant 0 : index
    %c0_86 = arith.constant 0 : index
    %c0_87 = arith.constant 0 : index
    %c0_88 = arith.constant 0 : index
    %63 = vector.load %arg7[%c0_85, %c0_86, %c0_87, %c0_88] : memref<1x1x64x80xbf16, #tpu.memory_space<vmem>>, vector<1x1x64x80xbf16>
    %64 = vector.shape_cast %63 : vector<1x1x64x80xbf16> to vector<64x80xbf16>
    %cst_89 = arith.constant dense<0.000000e+00> : vector<10x80xf32>
    %65 = tpu.matmul %62, %64, %cst_89 {dimension_numbers = #tpu.dot_dimension_numbers<[1], [0], [0], [1], [0, 0, 1, 1], [], []>} : vector<10x64xbf16>, vector<64x80xbf16>, vector<10x80xf32> -> vector<10x80xf32>
    %c0_90 = arith.constant 0 : index
    %c0_91 = arith.constant 0 : index
    %66 = vector.load %arg10[%c0_90, %c0_91] : memref<1x80xf32, #tpu.memory_space<vmem>>, vector<1x80xf32>
    %67 = vector.broadcast %66 : vector<1x80xf32> to vector<10x80xf32>
    %68 = arith.mulf %65, %67 : vector<10x80xf32>
    %c0_92 = arith.constant 0 : index
    %c0_93 = arith.constant 0 : index
    %69 = vector.load %arg11[%c0_92, %c0_93] : memref<1x80xf32, #tpu.memory_space<vmem>>, vector<1x80xf32>
    %70 = vector.broadcast %69 : vector<1x80xf32> to vector<10x80xf32>
    %71 = arith.addf %68, %70 : vector<10x80xf32>
    %72 = arith.addf %60, %71 : vector<10x80xf32>
    %cst_94 = arith.constant 0.000000e+00 : f32
    %73 = vector.broadcast %cst_94 : f32 to vector<10x80xf32>
    %74 = arith.maximumf %72, %73 : vector<10x80xf32>
    %c0_95 = arith.constant 0 : index
    %c0_96 = arith.constant 0 : index
    %c0_97 = arith.constant 0 : index
    %c0_98 = arith.constant 0 : index
    %75 = vector.load %arg12[%c0_95, %c0_96, %c0_97, %c0_98] : memref<1x1x10x80xf32, #tpu.memory_space<vmem>>, vector<1x1x10x80xf32>
    %76 = vector.shape_cast %75 : vector<1x1x10x80xf32> to vector<10x80xf32>
    %77 = vector.shape_cast %74 : vector<10x80xf32> to vector<1x1x10x80xf32>
    tpu.vector_store %arg12[%c0_95, %c0_96, %c0_97, %c0_98], %77 {strides = array<i32>} : memref<1x1x10x80xf32, #tpu.memory_space<vmem>>, vector<1x1x10x80xf32>,
    return
  }
  func.func @transform_0(%arg0: i32, %arg1: i32) -> (i32, i32, i32, i32) {
    %c1_i32 = arith.constant 1 : i32
    %0 = arith.addi %arg1, %c1_i32 : i32
    %c0_i32 = arith.constant 0 : i32
    %c0_i32_0 = arith.constant 0 : i32
    %c0_i32_1 = arith.constant 0 : i32
    return %arg0, %0, %c0_i32, %c0_i32_0 : i32, i32, i32, i32
  }
  func.func @transform_1(%arg0: i32, %arg1: i32) -> (i32, i32, i32, i32) {
    %c2_i32 = arith.constant 2 : i32
    %0 = arith.addi %arg1, %c2_i32 : i32
    %c0_i32 = arith.constant 0 : i32
    %c0_i32_0 = arith.constant 0 : i32
    %c0_i32_1 = arith.constant 0 : i32
    return %arg0, %0, %c0_i32, %c0_i32_0 : i32, i32, i32, i32
  }
  func.func @transform_2(%arg0: i32, %arg1: i32) -> (i32, i32, i32, i32) {
    %c3_i32 = arith.constant 3 : i32
    %0 = arith.addi %arg1, %c3_i32 : i32
    %c0_i32 = arith.constant 0 : i32
    %c0_i32_0 = arith.constant 0 : i32
    %c0_i32_1 = arith.constant 0 : i32
    return %arg0, %0, %c0_i32, %c0_i32_0 : i32, i32, i32, i32
  }
  func.func @transform_3(%arg0: i32, %arg1: i32) -> (i32, i32, i32, i32) {
    %c3_i32 = arith.constant 3 : i32
    %0 = arith.addi %arg1, %c3_i32 : i32
    %c0_i32 = arith.constant 0 : i32
    %c0_i32_0 = arith.constant 0 : i32
    %c0_i32_1 = arith.constant 0 : i32
    return %arg0, %0, %c0_i32, %c0_i32_0 : i32, i32, i32, i32
  }
  func.func @transform_4(%arg0: i32, %arg1: i32) -> (i32, i32, i32, i32) {
    %c0_i32 = arith.constant 0 : i32
    %c0_i32_0 = arith.constant 0 : i32
    %c0_i32_1 = arith.constant 0 : i32
    %c0_i32_2 = arith.constant 0 : i32
    %c0_i32_3 = arith.constant 0 : i32
    return %c0_i32, %c0_i32_0, %c0_i32_1, %c0_i32_2 : i32, i32, i32, i32
  }
  func.func @transform_5(%arg0: i32, %arg1: i32) -> (i32, i32, i32, i32) {
    %c0_i32 = arith.constant 0 : i32
    %c0_i32_0 = arith.constant 0 : i32
    %c0_i32_1 = arith.constant 0 : i32
    %c0_i32_2 = arith.constant 0 : i32
    %c0_i32_3 = arith.constant 0 : i32
    return %c0_i32, %c0_i32_0, %c0_i32_1, %c0_i32_2 : i32, i32, i32, i32
  }
  func.func @transform_6(%arg0: i32, %arg1: i32) -> (i32, i32) {
    %c0_i32 = arith.constant 0 : i32
    %c0_i32_0 = arith.constant 0 : i32
    %c0_i32_1 = arith.constant 0 : i32
    return %c0_i32, %c0_i32_0 : i32, i32
  }
  func.func @transform_7(%arg0: i32, %arg1: i32) -> (i32, i32) {
    %c0_i32 = arith.constant 0 : i32
    %c0_i32_0 = arith.constant 0 : i32
    %c0_i32_1 = arith.constant 0 : i32
    return %c0_i32, %c0_i32_0 : i32, i32
  }
  func.func @transform_8(%arg0: i32, %arg1: i32) -> (i32, i32) {
    %c0_i32 = arith.constant 0 : i32
    %c0_i32_0 = arith.constant 0 : i32
    %c0_i32_1 = arith.constant 0 : i32
    return %c0_i32, %c0_i32_0 : i32, i32
  }
  func.func @transform_9(%arg0: i32, %arg1: i32) -> (i32, i32) {
    %c0_i32 = arith.constant 0 : i32
    %c0_i32_0 = arith.constant 0 : i32
    %c0_i32_1 = arith.constant 0 : i32
    return %c0_i32, %c0_i32_0 : i32, i32
  }
  func.func @transform_10(%arg0: i32, %arg1: i32) -> (i32, i32, i32, i32) {
    %c0_i32 = arith.constant 0 : i32
    %c0_i32_0 = arith.constant 0 : i32
    %c0_i32_1 = arith.constant 0 : i32
    return %arg0, %arg1, %c0_i32, %c0_i32_0 : i32, i32, i32, i32
  }
}

</mosaic_0001>

<bundles_post_ra>
// kernel: tile.33
= control target key start
LH: loop header
LB: loop body
LE: loop exit
PB: predicated region body
PF: predicated region fallthrough
CT: control target
= control target key end

     0   :  { %s28_s0 = inlined_call_operand.vmem [shape: f32[8], index: 0, kind: input, shape index: {}]   ;;  %s29_s1 = inlined_call_operand.vmem [shape: f32[14,8], index: 1, kind: output, shape index: {}]  }
   0x1   :  { %v4_v0 = vld [vmem:[%s28_s0] ss:$0 sm:$0xff] }
   0x2   :  { %5 = vst [vmem:[%s29_s1] sm:$0xff] %v4_v0 }
   0x3   :  { %8 = vst [vmem:[%s29_s1 + $0x8] sm:$0xff] %v4_v0 }

// kernel: tile.34
= control target key start
LH: loop header
LB: loop body
LE: loop exit
PB: predicated region body
PF: predicated region fallthrough
CT: control target
= control target key end

     0   :  { %s115_s10 = smov 104   ;;  %s116_s11 = smov 88   ;;  %vm3_vm0 = vcmask 64512   ;;  %vm9_vm1 = vcmask 917312   ;;  %vm15_vm2 = vcmask 851712   ;;  %vm21_vm3 = vcmask 786112   ;;  %s183_s0 = inlined_call_operand.vmem [shape: f32[14,8], index: 0, kind: input, shape index: {}]   ;;  %s184_s1 = inlined_call_operand.vmem [shape: f32[1,112], index: 1, kind: output, shape index: {}]  }
   0x1   :  { %v89_v0 = vld [vmem:[%s183_s0 + $0xd] sm:$0x1]   ;;  %v91_v1 = vld [vmem:[%s183_s0 + $0xb] sm:$0x1]   ;;  %v93_v2 = vld [vmem:[%s183_s0 + $0x9] sm:$0x1]  }
   0x2   :  { %7 = vrot.lane.b32.xlu0 %v89_v0, %s115_s10  ;;  %19 = vrot.lane.b32.xlu1 %v91_v1, %s116_s11  ;;  %s117_s14 = smov 72   ;;  %v90_v3 = vld [vmem:[%s183_s0 + $0xc] sm:$0x1]   ;;  %v92_v4 = vld [vmem:[%s183_s0 + $0xa] sm:$0x1]   ;;  %s118_s19 = smov 96  }
   0x3   :  { %31 = vrot.lane.b32.xlu2 %v93_v2, %s117_s14  ;;  %s119_s20 = smov 80   ;;  %v94_v5 = vld [vmem:[%s183_s0 + $0x8] sm:$0x1]   ;;  %s120_s23 = smov 64   ;;  %v95_v6 = vld [vmem:[%s183_s0 + $0x7] sm:$0x1]  }
   0x4   :  { %v96_v7 = vld [vmem:[%s183_s0 + $0x6] sm:$0x1]   ;;  %s121_s28 = smov 56   ;;  %s122_s29 = smov 48   ;;  %v97_v8 = vld [vmem:[%s183_s0 + $0x5] sm:$0x1]  }
   0x5   :  { %s123_s3 = smov 40   ;;  %v98_v9 = vld [vmem:[%s183_s0 + $0x4] sm:$0x1]   ;;  %v99_v10 = vld [vmem:[%s183_s0 + $0x3] sm:$0x1]   ;;  %s124_s8 = smov 32  }
   0x6   :  { %s125_s9 = smov 24   ;;  %v100_v11 = vld [vmem:[%s183_s0 + $0x2] sm:$0x1]   ;;  %s126_s12 = smov 16   ;;  %v101_v12 = vld [vmem:[%s183_s0 + $0x1] sm:$0x1]  }
   0x7   :  { %s127_s15 = smov 8   ;;  %v2_v13 = vld [vmem:[%s183_s0] sm:$0x1]   ;;  %vm27_vm4 = vcmask 720512   ;;  %vm33_vm5 = vcmask 654912   ;;  %vm39_vm6 = vcmask 589312  }
   0x8   :  { %4 = vst.msk [vmem:[#allocation0] sm:$0x1] %vm3_vm0, %v2_v13   ;;  %vm45_vm7 = vcmask 523712   ;;  %vm51_vm8 = vcmask 458112   ;;  %vm57_vm9 = vcmask 392512   ;;  %vm63_vm10 = vcmask 326912  }
   0x9   :  { %vm69_vm11 = vcmask 261312   ;;  %vm75_vm12 = vcmask 195712   ;;  %vm81_vm13 = vcmask 130112  }
   0xa   :  { %13 = vrot.lane.b32.xlu0 %v90_v3, %s118_s19  ;;  %25 = vrot.lane.b32.xlu1 %v92_v4, %s119_s20 }
   0xb   :  { %37 = vrot.lane.b32.xlu2 %v94_v5, %s120_s23 }
  0x12   :  { %43 = vrot.lane.b32.xlu0 %v95_v6, %s121_s28  ;;  %49 = vrot.lane.b32.xlu1 %v96_v7, %s122_s29 }
  0x13   :  { %55 = vrot.lane.b32.xlu2 %v97_v8, %s123_s3 }
  0x1a   :  { %61 = vrot.lane.b32.xlu0 %v98_v9, %s124_s8  ;;  %67 = vrot.lane.b32.xlu1 %v99_v10, %s125_s9 }
  0x1b   :  { %73 = vrot.lane.b32.xlu2 %v100_v11, %s126_s12 }
  0x22   :  { %79 = vrot.lane.b32.xlu0 %v101_v12, %s127_s15 }
  0x5d   :  { %v32_v14 = vpop.permute.xlu2 %31  }
  0x65   :  { %v38_v15 = vpop.permute.xlu2 %37  }
  0x6d   :  { %v56_v16 = vpop.permute.xlu2 %55  }
  0x74   :  { %v8_v17 = vpop.permute.xlu0 %7   ;;  %v20_v18 = vpop.permute.xlu1 %19  }
  0x75   :  { %10 = vst.msk [vmem:[#allocation0] sm:$0x1] %vm9_vm1, %v8_v17   ;;  %v74_v19 = vpop.permute.xlu2 %73  }
  0x7c   :  { %v14_v20 = vpop.permute.xlu0 %13   ;;  %v26_v21 = vpop.permute.xlu1 %25  }
  0x7d   :  { %16 = vst.msk [vmem:[#allocation0] sm:$0x1] %vm15_vm2, %v14_v20  }
  0x7e   :  { %22 = vst.msk [vmem:[#allocation0] sm:$0x1] %vm21_vm3, %v20_v18  }
  0x7f   :  { %28 = vst.msk [vmem:[#allocation0] sm:$0x1] %vm27_vm4, %v26_v21  }
  0x80   :  { %34 = vst.msk [vmem:[#allocation0] sm:$0x1] %vm33_vm5, %v32_v14  }
  0x81   :  { %40 = vst.msk [vmem:[#allocation0] sm:$0x1] %vm39_vm6, %v38_v15  }
  0x84   :  { %v44_v22 = vpop.permute.xlu0 %43   ;;  %v50_v23 = vpop.permute.xlu1 %49  }
  0x85   :  { %46 = vst.msk [vmem:[#allocation0] sm:$0x1] %vm45_vm7, %v44_v22  }
  0x86   :  { %52 = vst.msk [vmem:[#allocation0] sm:$0x1] %vm51_vm8, %v50_v23  }
  0x87   :  { %58 = vst.msk [vmem:[#allocation0] sm:$0x1] %vm57_vm9, %v56_v16  }
  0x8c   :  { %v62_v24 = vpop.permute.xlu0 %61   ;;  %v68_v25 = vpop.permute.xlu1 %67  }
  0x8d   :  { %64 = vst.msk [vmem:[#allocation0] sm:$0x1] %vm63_vm10, %v62_v24  }
  0x8e   :  { %70 = vst.msk [vmem:[#allocation0] sm:$0x1] %vm69_vm11, %v68_v25  }
  0x8f   :  { %76 = vst.msk [vmem:[#allocation0] sm:$0x1] %vm75_vm12, %v74_v19  }
  0x94   :  { %v80_v26 = vpop.permute.xlu0 %79  }
  0x95   :  { %82 = vst.msk [vmem:[#allocation0] sm:$0x1] %vm81_vm13, %v80_v26  }
  0x9c   :  { %v85_v27 = vld [vmem:[#allocation0] sm:$0x1] }
  0x9d   :  { %88 = vst [vmem:[%s184_s1] sm:$0x1] %v85_v27 }

// kernel: res_block_forward.5
= control target key start
LH: loop header
LB: loop body
LE: loop exit
PB: predicated region body
PF: predicated region fallthrough
CT: control target
= control target key end

     0   :  { %s1487_s18 = smov 0   ;;  %s1489_s19 = smov 0   ;;  %s1708_s0 = inlined_call_operand.vmem [shape: bf16[2,16,16,64], index: 0, kind: input, shape index: {}, may-alias: {0,1,2}]   ;;  %s1709_s1 = inlined_call_operand.vmem [shape: bf16[2,16,16,64], index: 1, kind: input, shape index: {}, may-alias: {0,1,2}]   ;;  %s1710_s2 = inlined_call_operand.vmem [shape: bf16[2,16,16,64], index: 2, kind: input, shape index: {}, may-alias: {0,1,2}]   ;;  %s1711_s3 = inlined_call_operand.vmem [shape: bf16[3,3,64,112], index: 3, kind: input, shape index: {}]   ;;  %s1712_s4 = inlined_call_operand.vmem [shape: f32[2,14,1,112], index: 4, kind: output, shape index: {0}]   ;;  %s1713_s5 = inlined_call_operand.vmem [shape: f32[2,14,1,112], index: 5, kind: output, shape index: {1}]  }
   0x1   :  { %s1491_s20 = smov 0   ;;  %s1493_s21 = smov 0  }
   0x2   :  { %s1495_s22 = smov 0  }
   0x3 LB: > { %s25_s23 = sadd.s32 1, %s1447_s20  ;;  %s28_s24 = sadd.s32 1, %s1451_s21  ;;  %s1455_s22 = sphi %s1495_s22, %s16_s22   ;;  %s1451_s21 = sphi %s1493_s21, %s1719_s21   ;;  %s1447_s20 = sphi %s1491_s20, %s1718_s20   ;;  %s1443_s19 = sphi %s1489_s19, %s1717_s19   ;;  %s1439_s18 = sphi %s1487_s18, %s1716_s18  }
   0x4   : > { %p26_p0 = scmp.ge.s32.totalorder %s25_s23, 14  ;;  %p1087_p1 = scmp.ge.s32.totalorder %s1455_s22, 1 }
   0x5   : > { %p252_p2 = scmp.lt.s32.totalorder %s1455_s22, 29 }
   0x6   : > { %s1721_s23 = smov (%p26_p0, %s25_s23), 0  ;;  %s1723_s24 = smov (!%p26_p0, %s28_s24), %s1451_s21 }
   0x7   : > { %p253_p3 = pnand %p1087_p1, %p252_p2  ;;  %p30_p4 = scmp.ge.s32.totalorder %s1723_s24, 2 }
   0x8   : > { %p313_p5 = scmp.lt.s32.totalorder (!%p253_p3), %s1443_s19, 1  ;;  %p315_p6 = scmp.lt.s32.totalorder (!%p253_p3), %s1439_s18, 15 }
   0x9   : > { %s1725_s24 = smov (%p30_p4, %s1723_s24), 0  ;;  %256 = sbr.rel (%p253_p3) target bundleno = 217 (0xd9), region = 36 }
   0xa   : > { %s322_s8 = sadd.s32 (!%p253_p3), 1, %s1439_s18  ;;  %s333_s9 = sadd.s32 (!%p253_p3), 2, %s1439_s18 }
   0xb   : > { %p1554_p7 = scmp.lt.s32.totalorder (!%p253_p3), %s322_s8, 15  ;;  %p1567_p8 = scmp.lt.s32.totalorder (!%p253_p3), %s333_s9, 15 }
   0xc   : > { %p346_p9 = scmp.lt.s32.totalorder (!%p253_p3), %s1439_s18, 13 }
   0xe   : > { %v1327_v0 = vld [vmem:[%s1711_s3 + $0x58] sm:$0xff]  ;;  %v1326_v4 = vld [vmem:[%s1711_s3 + $0x50] sm:$0xff]  ;;  %s1727_s19 = smov (!%p313_p5, %s1443_s19), 1  ;;  %v1325_v8 = vld [vmem:[%s1711_s3 + $0x48] sm:$0xff]  ;;  %s1729_s8 = smov (!%p1554_p7, %s322_s8), 15  ;;  %vm415_vm0 = vcmask 523264  }
   0xf   : > { %v1323_v1 = vld [vmem:[%s1711_s3 + $0x38] sm:$0xff]  ;;  %522 = vmatpush.bf16.msra.mxu2 %v1327_v0  ;;  %v1322_v5 = vld [vmem:[%s1711_s3 + $0x30] sm:$0xff]  ;;  %s316_s25 = scalar_select %p315_p6, %s1439_s18, 15  ;;  %v1321_v9 = vld [vmem:[%s1711_s3 + $0x28] sm:$0xff]  ;;  %vm892_vm1 = vcmask 916480   ;;  %vm894_vm2 = vcmask 914432  }
  0x10   : > { %v1319_v2 = vld [vmem:[%s1711_s3 + $0x18] sm:$0xff]  ;;  %423 = vmatpush.bf16.msra.mxu0 %v1323_v1  ;;  %v1318_v6 = vld [vmem:[%s1711_s3 + $0x10] sm:$0xff]  ;;  %s1550_s26 = sshll.u32 %s1727_s19, 5  ;;  %v1317_v10 = vld [vmem:[%s1711_s3 + $0x8] sm:$0xff]  ;;  %s1731_s9 = smov (!%p1567_p8, %s333_s9), 15  ;;  %vm903_vm3 = vcmask 909312  }
  0x11   : > { %v1331_v3 = vld [vmem:[%s1711_s3 + $0x78] sm:$0xff]  ;;  %467 = vmatpush.bf16.msra.mxu1 %v1319_v2  ;;  %v1330_v7 = vld [vmem:[%s1711_s3 + $0x70] sm:$0xff]  ;;  %s1088_s27 = sshll.u32 %s316_s25, 1  ;;  %v1329_v11 = vld [vmem:[%s1711_s3 + $0x68] sm:$0xff]  ;;  %s1091_s14 = sshll.u32 %s1729_s8, 1 }
  0x12   : > { %581 = vmatpush.bf16.msra.mxu3 %v1331_v3  ;;  %s319_s10 = sadd.s32 %s1550_s26, %s1088_s27  ;;  %v1324_v17 = vld [vmem:[%s1711_s3 + $0x40] sm:$0xff]  ;;  %s329_s15 = sadd.s32 %s1091_s14, %s1550_s26  ;;  %v1335_v22 = vld [vmem:[%s1711_s3 + $0x98] sm:$0xff]  ;;  %v1334_v38 = vld [vmem:[%s1711_s3 + $0x90] sm:$0xff] }
  0x13   : > { %523 = vmatpush.bf16.msra.mxu2 %v1326_v4  ;;  %s1090_s16 = sshll.u32 %s319_s10, 2  ;;  %v1320_v18 = vld [vmem:[%s1711_s3 + $0x20] sm:$0xff]  ;;  %v1343_v23 = vld [vmem:[%s1711_s3 + $0xd8] sm:$0xff]  ;;  %s1093_s29 = sshll.u32 %s329_s15, 2  ;;  %v1342_v39 = vld [vmem:[%s1711_s3 + $0xd0] sm:$0xff] }
  0x14   : > { %424 = vmatpush.bf16.msra.mxu0 %v1322_v5  ;;  %s321_s27 = scalar_lea.vmem %s1708_s0, %s1090_s16  ;;  %v1316_v19 = vld [vmem:[%s1711_s3] sm:$0xff]  ;;  %v1347_v24 = vld [vmem:[%s1711_s3 + $0xf8] sm:$0xff]  ;;  %s331_s12 = scalar_lea.vmem %s1709_s1, %s1093_s29  ;;  %v1346_v42 = vld [vmem:[%s1711_s3 + $0xf0] sm:$0xff] }
  0x15   : > { %468 = vmatpush.bf16.msra.mxu1 %v1318_v6  ;;  %v369_v12 = vld [vmem:[%s321_s27] sm:$0xff]   ;;  %v1339_v33 = vld [vmem:[%s1711_s3 + $0xb8] sm:$0xff]  ;;  %v1338_v43 = vld [vmem:[%s1711_s3 + $0xb0] sm:$0xff]  ;;  %s1733_s18 = smov (!%p346_p9, %s1439_s18), 13 }
  0x16   : > { %582 = vmatpush.bf16.msra.mxu3 %v1330_v7  ;;  %v1428_v13 = vld [vmem:[%s321_s27] sm:$0xf0]  ;;  %v1395_v14 = vld [vmem:[%s321_s27] sm:$0xf]   ;;  %v385_v26 = vshrl.u32 %v369_v12, 16  ;;  %v387_v27 = vshll.u32 %v369_v12, 16 }
  0x17   : > { %v1429_v15 = vld [vmem:[%s321_s27] sm:$0xe]  ;;  %v1427_v16 = vld [vmem:[%s321_s27] sm:$0x70]  ;;  %524 = vmatpush.bf16.msra.mxu2 %v1325_v8  ;;  %s1094_s27 = sshll.u32 %s1731_s9, 1  ;;  %v1333_v45 = vld [vmem:[%s1711_s3 + $0x88] sm:$0xff] }
  0x18   : > { %425 = vmatpush.bf16.msra.mxu0 %v1321_v9  ;;  %v1328_v20 = vld [vmem:[%s1711_s3 + $0x60] sm:$0xff]  ;;  %v1430_v21 = vor.u32 %v1429_v15, %v1428_v13  ;;  %s340_s7 = sadd.s32 %s1094_s27, %s1550_s26  ;;  %v1396_v28 = vor.u32 %v1427_v16, %v1395_v14  ;;  %v389_v34 = vrot.slane %v387_v27, 1  ;;  %v1341_v46 = vld [vmem:[%s1711_s3 + $0xc8] sm:$0xff]  ;;  %v1351_v55 = vld [vmem:[%s1711_s3 + $0x118] sm:$0xff] }
  0x19   : > { %469 = vmatpush.bf16.msra.mxu1 %v1317_v10  ;;  %s1096_s28 = sshll.u32 %s340_s7, 2  ;;  %v534_v29 = vld [vmem:[%s331_s12] sm:$0xff]   ;;  %v1345_v47 = vld [vmem:[%s1711_s3 + $0xe8] sm:$0xff]  ;;  %v1350_v0 = vld [vmem:[%s1711_s3 + $0x110] sm:$0xff] }
  0x1a   : > { %583 = vmatpush.bf16.msra.mxu3 %v1329_v11  ;;  %v490_v25 = vrot.slane %v1430_v21, 1  ;;  %v1433_v30 = vld [vmem:[%s331_s12] sm:$0xf]   ;;  %v1397_v31 = vld [vmem:[%s331_s12] sm:$0xf0]  ;;  %s1620_s15 = scalar_lea.vmem %s1710_s2, %s1096_s28  ;;  %v390_v40 = vor.u32 %v389_v34, %v385_v26  ;;  %v1337_v49 = vld [vmem:[%s1711_s3 + $0xa8] sm:$0xff] }
  0x1b   : > { %525 = vmatpush.bf16.msra.mxu2 %v1324_v17  ;;  %v1436_v32 = vld [vmem:[%s331_s12] sm:$0x70]  ;;  %v1402_v37 = vld [vmem:[%s1620_s15] sm:$0xf]   ;;  %v609_v50 = vshll.u32 %v534_v29, 16  ;;  %v607_v58 = vshrl.u32 %v534_v29, 16 }
  0x1c   : > { %426 = vmatpush.bf16.msra.mxu0 %v1320_v18  ;;  %v713_v35 = vld [vmem:[%s1620_s15] sm:$0xff]   ;;  %v1434_v41 = vor.u32 %v1436_v32, %v1433_v30  ;;  %v1349_v3 = vld [vmem:[%s1711_s3 + $0x108] sm:$0xff] }
  0x1d   : > { %470 = vmatpush.bf16.msra.mxu1 %v1316_v19  ;;  %v1404_v36 = vld [vmem:[%s1620_s15] sm:$0xf0]  ;;  %v1398_v44 = vld [vmem:[%s331_s12] sm:$0xe]  ;;  %v788_v51 = vshll.u32 %v713_v35, 16  ;;  %v611_v59 = vrot.slane %v609_v50, 1 }
  0x1e   : > { %584 = vmatpush.bf16.msra.mxu3 %v1328_v20  ;;  %1163 = vmatmul.msk.bf16.vlgmr.msra.gmra.mxu2 %vm415_vm0, %v490_v25  ;;  %v1435_v48 = vld [vmem:[%s1620_s15] sm:$0x70]  ;;  %v1399_v56 = vor.u32 %v1398_v44, %v1397_v31  ;;  %v786_v60 = vshrl.u32 %v713_v35, 16  ;;  %v1405_v4 = vld [vmem:[%s1620_s15] sm:$0xe]  ;;  %s1352_s15 = smul.u32 14, %s1727_s19 }
  0x1f   : > { %760 = vmatpush.bf16.msrb.mxu2 %v1343_v23  ;;  %1121 = vmatmul.msk.bf16.vlgmr.msra.gmra.mxu0 %vm415_vm0, %v390_v40  ;;  %v1332_v52 = vld [vmem:[%s1711_s3 + $0x80] sm:$0xff]  ;;  %v790_v61 = vrot.slane %v788_v51, 1  ;;  %v1403_v62 = vor.u32 %v1435_v48, %v1402_v37  ;;  %v612_v1 = vor.u32 %v611_v59, %v607_v58  ;;  %v1406_v6 = vor.u32 %v1405_v4, %v1404_v36 }
  0x20   : > { %644 = vmatpush.bf16.msrb.mxu0 %v1335_v22  ;;  %1138 = vmatmul.msk.bf16.vlgmr.msra.gmra.mxu1 %vm415_vm0, %v1396_v28  ;;  %v1340_v53 = vld [vmem:[%s1711_s3 + $0xc0] sm:$0xff]  ;;  %v669_v63 = vrot.slane %v1399_v56, 1  ;;  %s349_s26 = sadd.s32 %s1352_s15, %s1733_s18 }
  0x21   : > { %701 = vmatpush.bf16.msrb.mxu1 %v1339_v33  ;;  %1188 = vmatmul.msk.bf16.vlgmr.msra.gmra.mxu3 %vm415_vm0, %v1434_v41  ;;  %v1344_v54 = vld [vmem:[%s1711_s3 + $0xe0] sm:$0xff]  ;;  %v791_v2 = vor.u32 %v790_v61, %v786_v60  ;;  %v848_v7 = vrot.slane %v1406_v6, 1  ;;  %s350_s17 = scalar_lea.vmem %s1712_s4, %s349_s26  ;;  %s357_s19 = scalar_lea.vmem %s1713_s5, %s349_s26 }
  0x22   : > { %823 = vmatpush.bf16.msrb.mxu3 %v1347_v24  ;;  %v1336_v57 = vld [vmem:[%s1711_s3 + $0xa0] sm:$0xff] }
  0x23   : > { %761 = vmatpush.bf16.msrb.mxu2 %v1342_v39  ;;  %v1348_v5 = vld [vmem:[%s1711_s3 + $0x100] sm:$0xff] }
  0x24   : > { %645 = vmatpush.bf16.msrb.mxu0 %v1334_v38 }
  0x25   : > { %702 = vmatpush.bf16.msrb.mxu1 %v1338_v43 }
  0x26   : > { %824 = vmatpush.bf16.msrb.mxu3 %v1346_v42 }
  0x27   : > { %762 = vmatpush.bf16.msrb.mxu2 %v1341_v46 }
  0x28   : > { %646 = vmatpush.bf16.msrb.mxu0 %v1333_v45 }
  0x29   : > { %703 = vmatpush.bf16.msrb.mxu1 %v1337_v49 }
  0x2a   : > { %825 = vmatpush.bf16.msrb.mxu3 %v1345_v47 }
  0x2b   : > { %763 = vmatpush.bf16.msrb.mxu2 %v1340_v53 }
  0x2c   : > { %647 = vmatpush.bf16.msrb.mxu0 %v1332_v52 }
  0x2d   : > { %704 = vmatpush.bf16.msrb.mxu1 %v1336_v57 }
  0x2e   : > { %826 = vmatpush.bf16.msrb.mxu3 %v1344_v54  ;;  %1263 = vmatmul.msk.bf16.vlgmr.msrb.gmra.mxu2 %vm415_vm0, %v1403_v62 }
  0x2f   : > { %1213 = vmatmul.msk.bf16.vlgmr.msrb.gmra.mxu0 %vm415_vm0, %v612_v1 }
  0x30   : > { %880 = vmatpush.bf16.msra.mxu0 %v1351_v55  ;;  %1238 = vmatmul.msk.bf16.vlgmr.msrb.gmra.mxu1 %vm415_vm0, %v669_v63 }
  0x31   : > { %1288 = vmatmul.msk.bf16.vlgmr.msrb.gmra.mxu3 %vm415_vm0, %v791_v2 }
  0x34   : > { %881 = vmatpush.bf16.msra.mxu0 %v1350_v0 }
  0x38   : > { %882 = vmatpush.bf16.msra.mxu0 %v1349_v3 }
  0x3c   : > { %883 = vmatpush.bf16.msra.mxu0 %v1348_v5 }
  0x3f   : > { %1313 = vmatmul.msk.bf16.vlgmr.msra.gmra.mxu0 %vm415_vm0, %v848_v7 }
  0x9c   : > { %v428_v8 = vpop.f32.mrf.mxu0 }
  0x9d   : > { %v472_v9 = vpop.f32.mrf.mxu1 }
  0x9e   : > { %v473_v15 = vadd.f32 %v472_v9, %v428_v8 }
  0xa1   : > { %v527_v10 = vpop.f32.mrf.mxu2 }
  0xa2   : > { %v532_v18 = vadd.f32 %v527_v10, %v473_v15 }
  0xa4   : > { %v586_v11 = vpop.f32.mrf.mxu3  ;;  %v430_v12 = vpop.f32.mrf.mxu0 }
  0xa5   : > { %v474_v13 = vpop.f32.mrf.mxu1  ;;  %v591_v21 = vadd.f32 %v586_v11, %v532_v18 }
  0xa6   : > { %v475_v20 = vadd.f32 %v474_v13, %v430_v12 }
  0xa9   : > { %v529_v14 = vpop.f32.mrf.mxu2 }
  0xaa   : > { %v533_v22 = vadd.f32 %v529_v14, %v475_v20 }
  0xac   : > { %v588_v16 = vpop.f32.mrf.mxu3  ;;  %v649_v17 = vpop.f32.mrf.mxu0 }
  0xad   : > { %v706_v19 = vpop.f32.mrf.mxu1  ;;  %v654_v24 = vadd.f32 %v649_v17, %v591_v21  ;;  %v592_v26 = vadd.f32 %v588_v16, %v533_v22 }
  0xaf   : > { %v711_v28 = vadd.f32 %v706_v19, %v654_v24 }
  0xb1   : > { %v765_v23 = vpop.f32.mrf.mxu2 }
  0xb2   : > { %v770_v31 = vadd.f32 %v765_v23, %v711_v28 }
  0xb4   : > { %v651_v25 = vpop.f32.mrf.mxu0  ;;  %v828_v27 = vpop.f32.mrf.mxu3 }
  0xb5   : > { %v655_v29 = vadd.f32 %v651_v25, %v592_v26  ;;  %v708_v30 = vpop.f32.mrf.mxu1  ;;  %v833_v35 = vadd.f32 %v828_v27, %v770_v31 }
  0xb7   : > { %v712_v32 = vadd.f32 %v708_v30, %v655_v29 }
  0xb9   : > { %v767_v33 = vpop.f32.mrf.mxu2 }
  0xba   : > { %v771_v36 = vadd.f32 %v767_v33, %v712_v32 }
  0xbc   : > { %v885_v34 = vpop.f32.mrf.mxu0  ;;  %v830_v37 = vpop.f32.mrf.mxu3 }
  0xbd   : > { %v890_v38 = vadd.f32 %v885_v34, %v833_v35  ;;  %v834_v39 = vadd.f32 %v830_v37, %v771_v36 }
  0xbf   : > { %v905_v41 = vmul.f32 %v890_v38, %v890_v38  ;;  %v893_v43 = vsel %vm892_vm1, %v890_v38, 0.0 }
  0xc1   : > { %v907_v47 = vsel %vm892_vm1, %v905_v41, 0.0 }
  0xc4   : > { %v887_v40 = vpop.f32.mrf.mxu0 }
  0xc5   : > { %v891_v42 = vadd.f32 %v887_v40, %v834_v39 }
  0xc7   : > { %v895_v44 = vsel %vm894_vm2, %v891_v42, 0.0  ;;  %v906_v45 = vmul.f32 %v891_v42, %v891_v42 }
  0xc8   : > { %v896_v46 = vadd.f32 %v895_v44, %v893_v43 }
  0xc9   : > { %v908_v48 = vsel %vm894_vm2, %v906_v45, 0.0 }
  0xca   : > { %v897_v49 = vrot.slane %v896_v46, 4  ;;  %v909_v50 = vadd.f32 %v908_v48, %v907_v47 }
  0xcc   : > { %v898_v51 = vadd.f32 %v897_v49, %v896_v46  ;;  %v910_v52 = vrot.slane %v909_v50, 4 }
  0xce   : > { %v899_v53 = vrot.slane %v898_v51, 2  ;;  %v911_v54 = vadd.f32 %v910_v52, %v909_v50 }
  0xd0   : > { %v900_v55 = vadd.f32 %v899_v53, %v898_v51  ;;  %v912_v56 = vrot.slane %v911_v54, 2 }
  0xd2   : > { %v901_v57 = vrot.slane %v900_v55, 1  ;;  %v913_v58 = vadd.f32 %v912_v56, %v911_v54 }
  0xd4   : > { %v902_v59 = vadd.f32 %v901_v57, %v900_v55  ;;  %v914_v60 = vrot.slane %v913_v58, 1 }
  0xd6   : > { %904 = vst.msk [vmem:[%s350_s17] sm:$0x1] %vm903_vm3, %v902_v59  ;;  %v915_v61 = vadd.f32 %v914_v60, %v913_v58 }
  0xd8   : > { %916 = vst.msk [vmem:[%s357_s19] sm:$0x1] %vm903_vm3, %v915_v61 }
  0xd9 PF: > { %s16_s22 = sadd.s32 1, %s1455_s22   ;;  %s1716_s18 = smov %s1447_s20 }
  0xda   : > { %p13_p10 = scmp.ge.s32.totalorder %s16_s22, 30   ;;  %s1717_s19 = smov %s1451_s21 }
  0xdb   : > { %s1718_s20 = smov %s1721_s23  ;;  %s1719_s21 = smov %s1725_s24 }
  0xdc   :  { %15 = sbr.rel (!%p13_p10) target bundleno = 3 (0x3), region = 92 }

// kernel: res_block_forward.6
= control target key start
LH: loop header
LB: loop body
LE: loop exit
PB: predicated region body
PF: predicated region fallthrough
CT: control target
= control target key end

     0   :  { %s1474_s21 = smov 0   ;;  %s1476_s22 = smov 0   ;;  %s1698_s0 = inlined_call_operand.vmem [shape: bf16[2,16,16,64], index: 0, kind: input, shape index: {}, may-alias: {0,1,2}]   ;;  %s1699_s1 = inlined_call_operand.vmem [shape: bf16[2,16,16,64], index: 1, kind: input, shape index: {}, may-alias: {0,1,2}]   ;;  %s1700_s2 = inlined_call_operand.vmem [shape: bf16[2,16,16,64], index: 2, kind: input, shape index: {}, may-alias: {0,1,2}]   ;;  %s1701_s3 = inlined_call_operand.vmem [shape: bf16[3,3,64,112], index: 3, kind: input, shape index: {}]   ;;  %s1702_s4 = inlined_call_operand.vmem [shape: f32[1,112], index: 4, kind: input, shape index: {}]   ;;  %s1703_s5 = inlined_call_operand.vmem [shape: f32[1,112], index: 5, kind: input, shape index: {}]   ;;  %s1704_s6 = inlined_call_operand.vmem [shape: bf16[2,14,14,112], index: 6, kind: output, shape index: {}]  }
   0x1   :  { %s1478_s23 = smov 0   ;;  %s1480_s24 = smov 0  }
   0x2   :  { %s1482_s25 = smov 0  }
   0x3 LB: > { %s25_s26 = sadd.s32 1, %s1429_s23  ;;  %s28_s27 = sadd.s32 1, %s1433_s24  ;;  %s1437_s25 = sphi %s1482_s25, %s16_s25   ;;  %s1433_s24 = sphi %s1480_s24, %s1710_s24   ;;  %s1429_s23 = sphi %s1478_s23, %s1709_s23   ;;  %s1425_s22 = sphi %s1476_s22, %s1708_s22   ;;  %s1421_s21 = sphi %s1474_s21, %s1707_s21  }
   0x4   : > { %p26_p0 = scmp.ge.s32.totalorder %s25_s26, 14  ;;  %p1065_p1 = scmp.ge.s32.totalorder %s1437_s25, 1 }
   0x5   : > { %p272_p2 = scmp.lt.s32.totalorder %s1437_s25, 29 }
   0x6   : > { %s1712_s26 = smov (%p26_p0, %s25_s26), 0  ;;  %s1714_s27 = smov (!%p26_p0, %s28_s27), %s1433_s24 }
   0x7   : > { %p273_p3 = pnand %p1065_p1, %p272_p2  ;;  %p30_p4 = scmp.ge.s32.totalorder %s1714_s27, 2 }
   0x8   : > { %p330_p5 = scmp.lt.s32.totalorder (!%p273_p3), %s1425_s22, 1  ;;  %p332_p6 = scmp.lt.s32.totalorder (!%p273_p3), %s1421_s21, 15 }
   0x9   : > { %s1716_s27 = smov (%p30_p4, %s1714_s27), 0  ;;  %276 = sbr.rel (%p273_p3) target bundleno = 208 (0xd0), region = 44 }
   0xa   : > { %s339_s12 = sadd.s32 (!%p273_p3), 1, %s1421_s21  ;;  %s350_s13 = sadd.s32 (!%p273_p3), 2, %s1421_s21 }
   0xb   : > { %p1541_p7 = scmp.lt.s32.totalorder (!%p273_p3), %s339_s12, 15  ;;  %p1554_p8 = scmp.lt.s32.totalorder (!%p273_p3), %s350_s13, 15 }
   0xc   : > { %p363_p9 = scmp.lt.s32.totalorder (!%p273_p3), %s1421_s21, 13 }
   0xe   : > { %v1307_v0 = vld [vmem:[%s1701_s3 + $0x58] sm:$0xff]  ;;  %v1306_v4 = vld [vmem:[%s1701_s3 + $0x50] sm:$0xff]  ;;  %s1718_s22 = smov (!%p330_p5, %s1425_s22), 1  ;;  %v1305_v8 = vld [vmem:[%s1701_s3 + $0x48] sm:$0xff]  ;;  %s1720_s12 = smov (!%p1541_p7, %s339_s12), 15  ;;  %vm427_vm0 = vcmask 523264  }
   0xf   : > { %v1303_v1 = vld [vmem:[%s1701_s3 + $0x38] sm:$0xff]  ;;  %534 = vmatpush.bf16.msra.mxu2 %v1307_v0  ;;  %v1302_v5 = vld [vmem:[%s1701_s3 + $0x30] sm:$0xff]  ;;  %s333_s29 = scalar_select %p332_p6, %s1421_s21, 15  ;;  %v1301_v9 = vld [vmem:[%s1701_s3 + $0x28] sm:$0xff]  ;;  %vm920_vm1 = vcmask 912384   ;;  %vm922_vm2 = vcmask 911360  }
  0x10   : > { %v1299_v2 = vld [vmem:[%s1701_s3 + $0x18] sm:$0xff]  ;;  %435 = vmatpush.bf16.msra.mxu0 %v1303_v1  ;;  %v1298_v6 = vld [vmem:[%s1701_s3 + $0x10] sm:$0xff]  ;;  %s1537_s30 = sshll.u32 %s1718_s22, 5  ;;  %v1297_v10 = vld [vmem:[%s1701_s3 + $0x8] sm:$0xff]  ;;  %s1722_s13 = smov (!%p1554_p8, %s350_s13), 15 }
  0x11   : > { %v1311_v3 = vld [vmem:[%s1701_s3 + $0x78] sm:$0xff]  ;;  %479 = vmatpush.bf16.msra.mxu1 %v1299_v2  ;;  %v1310_v7 = vld [vmem:[%s1701_s3 + $0x70] sm:$0xff]  ;;  %s1066_s7 = sshll.u32 %s333_s29, 1  ;;  %v1309_v11 = vld [vmem:[%s1701_s3 + $0x68] sm:$0xff]  ;;  %s1069_s20 = sshll.u32 %s1720_s12, 1 }
  0x12   : > { %593 = vmatpush.bf16.msra.mxu3 %v1311_v3  ;;  %s336_s15 = sadd.s32 %s1537_s30, %s1066_s7  ;;  %v1304_v17 = vld [vmem:[%s1701_s3 + $0x40] sm:$0xff]  ;;  %v1315_v22 = vld [vmem:[%s1701_s3 + $0x98] sm:$0xff]  ;;  %s1072_s10 = sshll.u32 %s1722_s13, 1  ;;  %v1314_v38 = vld [vmem:[%s1701_s3 + $0x90] sm:$0xff] }
  0x13   : > { %535 = vmatpush.bf16.msra.mxu2 %v1306_v4  ;;  %s1068_s28 = sshll.u32 %s336_s15, 2  ;;  %v1300_v18 = vld [vmem:[%s1701_s3 + $0x20] sm:$0xff]  ;;  %v1323_v23 = vld [vmem:[%s1701_s3 + $0xd8] sm:$0xff]  ;;  %s357_s17 = sadd.s32 %s1072_s10, %s1537_s30  ;;  %v1322_v39 = vld [vmem:[%s1701_s3 + $0xd0] sm:$0xff] }
  0x14   : > { %436 = vmatpush.bf16.msra.mxu0 %v1302_v5  ;;  %s338_s9 = scalar_lea.vmem %s1698_s0, %s1068_s28  ;;  %v1296_v19 = vld [vmem:[%s1701_s3] sm:$0xff]  ;;  %s346_s28 = sadd.s32 %s1069_s20, %s1537_s30  ;;  %v1327_v24 = vld [vmem:[%s1701_s3 + $0xf8] sm:$0xff]  ;;  %v1326_v42 = vld [vmem:[%s1701_s3 + $0xf0] sm:$0xff] }
  0x15   : > { %480 = vmatpush.bf16.msra.mxu1 %v1298_v6  ;;  %v381_v12 = vld [vmem:[%s338_s9] sm:$0xff]   ;;  %s1071_s11 = sshll.u32 %s346_s28, 2  ;;  %s1074_s19 = sshll.u32 %s357_s17, 2  ;;  %v1319_v33 = vld [vmem:[%s1701_s3 + $0xb8] sm:$0xff]  ;;  %v1318_v43 = vld [vmem:[%s1701_s3 + $0xb0] sm:$0xff] }
  0x16   : > { %594 = vmatpush.bf16.msra.mxu3 %v1310_v7  ;;  %v1410_v13 = vld [vmem:[%s338_s9] sm:$0xf0]  ;;  %v1377_v14 = vld [vmem:[%s338_s9] sm:$0xf]   ;;  %v397_v26 = vshrl.u32 %v381_v12, 16  ;;  %v399_v27 = vshll.u32 %v381_v12, 16  ;;  %s348_s8 = scalar_lea.vmem %s1699_s1, %s1071_s11  ;;  %s1607_s29 = scalar_lea.vmem %s1700_s2, %s1074_s19 }
  0x17   : > { %v1411_v15 = vld [vmem:[%s338_s9] sm:$0xe]  ;;  %v1409_v16 = vld [vmem:[%s338_s9] sm:$0x70]  ;;  %536 = vmatpush.bf16.msra.mxu2 %v1305_v8  ;;  %v1313_v45 = vld [vmem:[%s1701_s3 + $0x88] sm:$0xff]  ;;  %s1724_s21 = smov (!%p363_p9, %s1421_s21), 13 }
  0x18   : > { %437 = vmatpush.bf16.msra.mxu0 %v1301_v9  ;;  %v1308_v20 = vld [vmem:[%s1701_s3 + $0x60] sm:$0xff]  ;;  %v1412_v21 = vor.u32 %v1411_v15, %v1410_v13  ;;  %v1378_v28 = vor.u32 %v1409_v16, %v1377_v14  ;;  %v401_v34 = vrot.slane %v399_v27, 1  ;;  %v1321_v46 = vld [vmem:[%s1701_s3 + $0xc8] sm:$0xff]  ;;  %v1331_v55 = vld [vmem:[%s1701_s3 + $0x118] sm:$0xff]  ;;  %s1075_s7 = sshll.u32 %s1724_s21, 1 }
  0x19   : > { %481 = vmatpush.bf16.msra.mxu1 %v1297_v10  ;;  %v546_v29 = vld [vmem:[%s348_s8] sm:$0xff]   ;;  %v1325_v47 = vld [vmem:[%s1701_s3 + $0xe8] sm:$0xff]  ;;  %v1330_v0 = vld [vmem:[%s1701_s3 + $0x110] sm:$0xff] }
  0x1a   : > { %595 = vmatpush.bf16.msra.mxu3 %v1309_v11  ;;  %v502_v25 = vrot.slane %v1412_v21, 1  ;;  %v1415_v30 = vld [vmem:[%s348_s8] sm:$0xf]   ;;  %v1379_v31 = vld [vmem:[%s348_s8] sm:$0xf0]  ;;  %v402_v40 = vor.u32 %v401_v34, %v397_v26  ;;  %v1317_v49 = vld [vmem:[%s1701_s3 + $0xa8] sm:$0xff] }
  0x1b   : > { %537 = vmatpush.bf16.msra.mxu2 %v1304_v17  ;;  %v1418_v32 = vld [vmem:[%s348_s8] sm:$0x70]  ;;  %v1384_v37 = vld [vmem:[%s1607_s29] sm:$0xf]   ;;  %v621_v50 = vshll.u32 %v546_v29, 16  ;;  %v619_v58 = vshrl.u32 %v546_v29, 16 }
  0x1c   : > { %438 = vmatpush.bf16.msra.mxu0 %v1300_v18  ;;  %v725_v35 = vld [vmem:[%s1607_s29] sm:$0xff]   ;;  %v1416_v41 = vor.u32 %v1418_v32, %v1415_v30  ;;  %v1329_v3 = vld [vmem:[%s1701_s3 + $0x108] sm:$0xff] }
  0x1d   : > { %482 = vmatpush.bf16.msra.mxu1 %v1296_v19  ;;  %v1386_v36 = vld [vmem:[%s1607_s29] sm:$0xf0]  ;;  %v1380_v44 = vld [vmem:[%s348_s8] sm:$0xe]  ;;  %v800_v51 = vshll.u32 %v725_v35, 16  ;;  %v623_v59 = vrot.slane %v621_v50, 1 }
  0x1e   : > { %596 = vmatpush.bf16.msra.mxu3 %v1308_v20  ;;  %1143 = vmatmul.msk.bf16.vlgmr.msra.gmra.mxu2 %vm427_vm0, %v502_v25  ;;  %v1417_v48 = vld [vmem:[%s1607_s29] sm:$0x70]  ;;  %v1381_v56 = vor.u32 %v1380_v44, %v1379_v31  ;;  %v798_v60 = vshrl.u32 %v725_v35, 16  ;;  %v1387_v4 = vld [vmem:[%s1607_s29] sm:$0xe]  ;;  %s1332_s29 = smul.u32 28, %s1718_s22 }
  0x1f   : > { %772 = vmatpush.bf16.msrb.mxu2 %v1323_v23  ;;  %1101 = vmatmul.msk.bf16.vlgmr.msra.gmra.mxu0 %vm427_vm0, %v402_v40  ;;  %v1312_v52 = vld [vmem:[%s1701_s3 + $0x80] sm:$0xff]  ;;  %v802_v61 = vrot.slane %v800_v51, 1  ;;  %v1385_v62 = vor.u32 %v1417_v48, %v1384_v37  ;;  %v624_v1 = vor.u32 %v623_v59, %v619_v58  ;;  %v1388_v6 = vor.u32 %v1387_v4, %v1386_v36 }
  0x20   : > { %656 = vmatpush.bf16.msrb.mxu0 %v1315_v22  ;;  %1118 = vmatmul.msk.bf16.vlgmr.msra.gmra.mxu1 %vm427_vm0, %v1378_v28  ;;  %v1320_v53 = vld [vmem:[%s1701_s3 + $0xc0] sm:$0xff]  ;;  %v681_v63 = vrot.slane %v1381_v56, 1  ;;  %s367_s14 = sadd.s32 %s1332_s29, %s1075_s7 }
  0x21   : > { %713 = vmatpush.bf16.msrb.mxu1 %v1319_v33  ;;  %1168 = vmatmul.msk.bf16.vlgmr.msra.gmra.mxu3 %vm427_vm0, %v1416_v41  ;;  %v1324_v54 = vld [vmem:[%s1701_s3 + $0xe0] sm:$0xff]  ;;  %v803_v2 = vor.u32 %v802_v61, %v798_v60  ;;  %v860_v7 = vrot.slane %v1388_v6, 1  ;;  %s1076_s15 = sshll.u32 %s367_s14, 2 }
  0x22   : > { %835 = vmatpush.bf16.msrb.mxu3 %v1327_v24  ;;  %v1316_v57 = vld [vmem:[%s1701_s3 + $0xa0] sm:$0xff]  ;;  %s369_s17 = scalar_lea.vmem %s1704_s6, %s1076_s15 }
  0x23   : > { %773 = vmatpush.bf16.msrb.mxu2 %v1322_v39  ;;  %v1328_v5 = vld [vmem:[%s1701_s3 + $0x100] sm:$0xff] }
  0x24   : > { %657 = vmatpush.bf16.msrb.mxu0 %v1314_v38  ;;  %v1373_v34 = vld [vmem:[%s1702_s4] ss:$0 sm:$0xff] }
  0x25   : > { %714 = vmatpush.bf16.msrb.mxu1 %v1318_v43  ;;  %v1374_v38 = vld [vmem:[%s1703_s5] ss:$0 sm:$0xff] }
  0x26   : > { %836 = vmatpush.bf16.msrb.mxu3 %v1326_v42 }
  0x27   : > { %774 = vmatpush.bf16.msrb.mxu2 %v1321_v46 }
  0x28   : > { %658 = vmatpush.bf16.msrb.mxu0 %v1313_v45 }
  0x29   : > { %715 = vmatpush.bf16.msrb.mxu1 %v1317_v49 }
  0x2a   : > { %837 = vmatpush.bf16.msrb.mxu3 %v1325_v47 }
  0x2b   : > { %775 = vmatpush.bf16.msrb.mxu2 %v1320_v53 }
  0x2c   : > { %659 = vmatpush.bf16.msrb.mxu0 %v1312_v52 }
  0x2d   : > { %716 = vmatpush.bf16.msrb.mxu1 %v1316_v57 }
  0x2e   : > { %838 = vmatpush.bf16.msrb.mxu3 %v1324_v54  ;;  %1243 = vmatmul.msk.bf16.vlgmr.msrb.gmra.mxu2 %vm427_vm0, %v1385_v62 }
  0x2f   : > { %1193 = vmatmul.msk.bf16.vlgmr.msrb.gmra.mxu0 %vm427_vm0, %v624_v1 }
  0x30   : > { %892 = vmatpush.bf16.msra.mxu0 %v1331_v55  ;;  %1218 = vmatmul.msk.bf16.vlgmr.msrb.gmra.mxu1 %vm427_vm0, %v681_v63 }
  0x31   : > { %1268 = vmatmul.msk.bf16.vlgmr.msrb.gmra.mxu3 %vm427_vm0, %v803_v2 }
  0x34   : > { %893 = vmatpush.bf16.msra.mxu0 %v1330_v0 }
  0x38   : > { %894 = vmatpush.bf16.msra.mxu0 %v1329_v3 }
  0x3c   : > { %895 = vmatpush.bf16.msra.mxu0 %v1328_v5 }
  0x3f   : > { %1293 = vmatmul.msk.bf16.vlgmr.msra.gmra.mxu0 %vm427_vm0, %v860_v7 }
  0x9c   : > { %v440_v8 = vpop.f32.mrf.mxu0 }
  0x9d   : > { %v484_v9 = vpop.f32.mrf.mxu1 }
  0x9e   : > { %v485_v14 = vadd.f32 %v484_v9, %v440_v8 }
  0xa1   : > { %v539_v10 = vpop.f32.mrf.mxu2 }
  0xa2   : > { %v544_v16 = vadd.f32 %v539_v10, %v485_v14 }
  0xa4   : > { %v598_v11 = vpop.f32.mrf.mxu3  ;;  %v442_v12 = vpop.f32.mrf.mxu0 }
  0xa5   : > { %v486_v13 = vpop.f32.mrf.mxu1  ;;  %v603_v19 = vadd.f32 %v598_v11, %v544_v16 }
  0xa6   : > { %v487_v21 = vadd.f32 %v486_v13, %v442_v12 }
  0xa9   : > { %v541_v15 = vpop.f32.mrf.mxu2 }
  0xaa   : > { %v545_v23 = vadd.f32 %v541_v15, %v487_v21 }
  0xac   : > { %v600_v17 = vpop.f32.mrf.mxu3  ;;  %v661_v18 = vpop.f32.mrf.mxu0 }
  0xad   : > { %v718_v20 = vpop.f32.mrf.mxu1  ;;  %v666_v22 = vadd.f32 %v661_v18, %v603_v19  ;;  %v604_v27 = vadd.f32 %v600_v17, %v545_v23 }
  0xaf   : > { %v723_v25 = vadd.f32 %v718_v20, %v666_v22 }
  0xb1   : > { %v777_v24 = vpop.f32.mrf.mxu2 }
  0xb2   : > { %v782_v29 = vadd.f32 %v777_v24, %v723_v25 }
  0xb4   : > { %v663_v26 = vpop.f32.mrf.mxu0  ;;  %v840_v28 = vpop.f32.mrf.mxu3 }
  0xb5   : > { %v667_v30 = vadd.f32 %v663_v26, %v604_v27  ;;  %v720_v31 = vpop.f32.mrf.mxu1  ;;  %v845_v32 = vadd.f32 %v840_v28, %v782_v29 }
  0xb7   : > { %v724_v33 = vadd.f32 %v720_v31, %v667_v30 }
  0xb9   : > { %v779_v35 = vpop.f32.mrf.mxu2 }
  0xba   : > { %v783_v39 = vadd.f32 %v779_v35, %v724_v33 }
  0xbc   : > { %v897_v36 = vpop.f32.mrf.mxu0  ;;  %v842_v41 = vpop.f32.mrf.mxu3 }
  0xbd   : > { %v902_v37 = vadd.f32 %v897_v36, %v845_v32  ;;  %v846_v43 = vadd.f32 %v842_v41, %v783_v39 }
  0xbf   : > { %v908_v40 = vmul.f32 %v1373_v34, %v902_v37 }
  0xc1   : > { %v914_v42 = vadd.f32 %v1374_v38, %v908_v40 }
  0xc3   : > { %v916_v44 = vmax.f32 %v914_v42, 0.0 }
  0xc4   : > { %v899_v45 = vpop.f32.mrf.mxu0 }
  0xc5   : > { %v918_v46 = vpack.c.bf16 %v916_v44, %v916_v44  ;;  %v903_v47 = vadd.f32 %v899_v45, %v846_v43 }
  0xc7   : > { %921 = vst.msk [vmem:[%s369_s17] sm:$0xf] %vm920_vm1, %v918_v46  ;;  %v909_v48 = vmul.f32 %v1373_v34, %v903_v47 }
  0xc9   : > { %v915_v49 = vadd.f32 %v1374_v38, %v909_v48 }
  0xcb   : > { %v917_v50 = vmax.f32 %v915_v49, 0.0 }
  0xcd   : > { %v919_v51 = vpack.c.bf16 %v917_v50, %v917_v50 }
  0xcf   : > { %923 = vst.msk [vmem:[%s369_s17 + $0x4] sm:$0x7] %vm922_vm2, %v919_v51 }
  0xd0 PF: > { %s16_s25 = sadd.s32 1, %s1437_s25   ;;  %s1707_s21 = smov %s1429_s23 }
  0xd1   : > { %p13_p10 = scmp.ge.s32.totalorder %s16_s25, 30   ;;  %s1708_s22 = smov %s1433_s24 }
  0xd2   : > { %s1709_s23 = smov %s1712_s26  ;;  %s1710_s24 = smov %s1716_s27 }
  0xd3   :  { %15 = sbr.rel (!%p13_p10) target bundleno = 3 (0x3), region = 88 }

// kernel: tile.43
= control target key start
LH: loop header
LB: loop body
LE: loop exit
PB: predicated region body
PF: predicated region fallthrough
CT: control target
= control target key end

     0   :  { %s28_s0 = inlined_call_operand.vmem [shape: f32[8], index: 0, kind: input, shape index: {}]   ;;  %s29_s1 = inlined_call_operand.vmem [shape: f32[10,8], index: 1, kind: output, shape index: {}]  }
   0x1   :  { %v4_v0 = vld [vmem:[%s28_s0] ss:$0 sm:$0xff] }
   0x2   :  { %5 = vst [vmem:[%s29_s1] sm:$0xff] %v4_v0 }
   0x3   :  { %8 = vst [vmem:[%s29_s1 + $0x8] sm:$0xff] %v4_v0 }

// kernel: tile.44
= control target key start
LH: loop header
LB: loop body
LE: loop exit
PB: predicated region body
PF: predicated region fallthrough
CT: control target
= control target key end

     0   :  { %s83_s10 = smov 72   ;;  %s84_s11 = smov 56   ;;  %vm3_vm0 = vcmask 64512   ;;  %vm9_vm1 = vcmask 654912   ;;  %vm15_vm2 = vcmask 589312   ;;  %vm21_vm3 = vcmask 523712   ;;  %s135_s0 = inlined_call_operand.vmem [shape: f32[10,8], index: 0, kind: input, shape index: {}]   ;;  %s136_s1 = inlined_call_operand.vmem [shape: f32[1,80], index: 1, kind: output, shape index: {}]  }
   0x1   :  { %v65_v0 = vld [vmem:[%s135_s0 + $0x9] sm:$0x1]   ;;  %v67_v1 = vld [vmem:[%s135_s0 + $0x7] sm:$0x1]   ;;  %v69_v2 = vld [vmem:[%s135_s0 + $0x5] sm:$0x1]  }
   0x2   :  { %7 = vrot.lane.b32.xlu0 %v65_v0, %s83_s10  ;;  %19 = vrot.lane.b32.xlu1 %v67_v1, %s84_s11  ;;  %s85_s14 = smov 40   ;;  %v66_v3 = vld [vmem:[%s135_s0 + $0x8] sm:$0x1]   ;;  %v68_v4 = vld [vmem:[%s135_s0 + $0x6] sm:$0x1]   ;;  %s86_s19 = smov 64  }
   0x3   :  { %31 = vrot.lane.b32.xlu2 %v69_v2, %s85_s14  ;;  %s87_s20 = smov 48   ;;  %v70_v5 = vld [vmem:[%s135_s0 + $0x4] sm:$0x1]   ;;  %s88_s23 = smov 32   ;;  %v71_v6 = vld [vmem:[%s135_s0 + $0x3] sm:$0x1]  }
   0x4   :  { %v72_v7 = vld [vmem:[%s135_s0 + $0x2] sm:$0x1]   ;;  %s89_s28 = smov 24   ;;  %s90_s29 = smov 16   ;;  %v73_v8 = vld [vmem:[%s135_s0 + $0x1] sm:$0x1]  }
   0x5   :  { %s91_s3 = smov 8   ;;  %v2_v9 = vld [vmem:[%s135_s0] sm:$0x1]   ;;  %vm27_vm4 = vcmask 458112   ;;  %vm33_vm5 = vcmask 392512   ;;  %vm39_vm6 = vcmask 326912  }
   0x6   :  { %4 = vst.msk [vmem:[#allocation0] sm:$0x1] %vm3_vm0, %v2_v9   ;;  %vm45_vm7 = vcmask 261312   ;;  %vm51_vm8 = vcmask 195712   ;;  %vm57_vm9 = vcmask 130112  }
   0xa   :  { %13 = vrot.lane.b32.xlu0 %v66_v3, %s86_s19  ;;  %25 = vrot.lane.b32.xlu1 %v68_v4, %s87_s20 }
   0xb   :  { %37 = vrot.lane.b32.xlu2 %v70_v5, %s88_s23 }
  0x12   :  { %43 = vrot.lane.b32.xlu0 %v71_v6, %s89_s28  ;;  %49 = vrot.lane.b32.xlu1 %v72_v7, %s90_s29 }
  0x13   :  { %55 = vrot.lane.b32.xlu2 %v73_v8, %s91_s3 }
  0x5d   :  { %v32_v10 = vpop.permute.xlu2 %31  }
  0x65   :  { %v38_v11 = vpop.permute.xlu2 %37  }
  0x6d   :  { %v56_v12 = vpop.permute.xlu2 %55  }
  0x74   :  { %v8_v13 = vpop.permute.xlu0 %7   ;;  %v20_v14 = vpop.permute.xlu1 %19  }
  0x75   :  { %10 = vst.msk [vmem:[#allocation0] sm:$0x1] %vm9_vm1, %v8_v13  }
  0x7c   :  { %v14_v15 = vpop.permute.xlu0 %13   ;;  %v26_v16 = vpop.permute.xlu1 %25  }
  0x7d   :  { %16 = vst.msk [vmem:[#allocation0] sm:$0x1] %vm15_vm2, %v14_v15  }
  0x7e   :  { %22 = vst.msk [vmem:[#allocation0] sm:$0x1] %vm21_vm3, %v20_v14  }
  0x7f   :  { %28 = vst.msk [vmem:[#allocation0] sm:$0x1] %vm27_vm4, %v26_v16  }
  0x80   :  { %34 = vst.msk [vmem:[#allocation0] sm:$0x1] %vm33_vm5, %v32_v10  }
  0x81   :  { %40 = vst.msk [vmem:[#allocation0] sm:$0x1] %vm39_vm6, %v38_v11  }
  0x84   :  { %v44_v17 = vpop.permute.xlu0 %43   ;;  %v50_v18 = vpop.permute.xlu1 %49  }
  0x85   :  { %46 = vst.msk [vmem:[#allocation0] sm:$0x1] %vm45_vm7, %v44_v17  }
  0x86   :  { %52 = vst.msk [vmem:[#allocation0] sm:$0x1] %vm51_vm8, %v50_v18  }
  0x87   :  { %58 = vst.msk [vmem:[#allocation0] sm:$0x1] %vm57_vm9, %v56_v12  }
  0x8e   :  { %v61_v19 = vld [vmem:[#allocation0] sm:$0x1] }
  0x8f   :  { %64 = vst [vmem:[%s136_s1] sm:$0x1] %v61_v19 }

// kernel: res_block_forward.7
= control target key start
LH: loop header
LB: loop body
LE: loop exit
PB: predicated region body
PF: predicated region fallthrough
CT: control target
= control target key end

     0   :  { %s1860_s18 = smov 0   ;;  %s1862_s19 = smov 0   ;;  %s2172_s0 = inlined_call_operand.vmem [shape: bf16[2,14,14,112], index: 0, kind: input, shape index: {}, may-alias: {0,1,2}]   ;;  %s2173_s1 = inlined_call_operand.vmem [shape: bf16[2,14,14,112], index: 1, kind: input, shape index: {}, may-alias: {0,1,2}]   ;;  %s2174_s2 = inlined_call_operand.vmem [shape: bf16[2,14,14,112], index: 2, kind: input, shape index: {}, may-alias: {0,1,2}]   ;;  %s2175_s3 = inlined_call_operand.vmem [shape: bf16[3,3,112,96], index: 3, kind: input, shape index: {}]   ;;  %s2176_s4 = inlined_call_operand.vmem [shape: f32[2,12,1,96], index: 4, kind: output, shape index: {0}]   ;;  %s2177_s5 = inlined_call_operand.vmem [shape: f32[2,12,1,96], index: 5, kind: output, shape index: {1}]  }
   0x1   :  { %s1864_s20 = smov 0   ;;  %s1866_s21 = smov 0  }
   0x2   :  { %s1868_s22 = smov 0  }
   0x3 LB: > { %s25_s23 = sadd.s32 1, %s1820_s20  ;;  %s28_s24 = sadd.s32 1, %s1824_s21  ;;  %s1828_s22 = sphi %s1868_s22, %s16_s22   ;;  %s1824_s21 = sphi %s1866_s21, %s2182_s21   ;;  %s1820_s20 = sphi %s1864_s20, %s2181_s20   ;;  %s1816_s19 = sphi %s1862_s19, %s2180_s19   ;;  %s1812_s18 = sphi %s1860_s18, %s2179_s18  }
   0x4   : > { %p26_p0 = scmp.ge.s32.totalorder %s25_s23, 12  ;;  %p1303_p1 = scmp.ge.s32.totalorder %s1828_s22, 1 }
   0x5   : > { %p252_p2 = scmp.lt.s32.totalorder %s1828_s22, 25 }
   0x6   : > { %s2184_s23 = smov (%p26_p0, %s25_s23), 0  ;;  %s2186_s24 = smov (!%p26_p0, %s28_s24), %s1824_s21 }
   0x7   : > { %p253_p3 = pnand %p1303_p1, %p252_p2  ;;  %p30_p4 = scmp.ge.s32.totalorder %s2186_s24, 2 }
   0x8   : > { %p313_p5 = scmp.lt.s32.totalorder (!%p253_p3), %s1816_s19, 1  ;;  %p315_p6 = scmp.lt.s32.totalorder (!%p253_p3), %s1812_s18, 13 }
   0x9   : > { %s2188_s24 = smov (%p30_p4, %s2186_s24), 0  ;;  %256 = sbr.rel (%p253_p3) target bundleno = 252 (0xfc), region = 36 }
   0xa   : > { %s322_s8 = sadd.s32 (!%p253_p3), 1, %s1812_s18  ;;  %s333_s16 = sadd.s32 (!%p253_p3), 2, %s1812_s18 }
   0xb   : > { %p325_p7 = scmp.lt.s32.totalorder (!%p253_p3), %s322_s8, 13  ;;  %p1957_p8 = scmp.lt.s32.totalorder (!%p253_p3), %s333_s16, 13 }
   0xc   : > { %p346_p9 = scmp.lt.s32.totalorder (!%p253_p3), %s1812_s18, 11 }
   0xe   : > { %v1698_v0 = vld [vmem:[%s2175_s3 + $0x68] sm:$0xff]  ;;  %v1705_v1 = vld [vmem:[%s2175_s3 + $0xa0] sm:$0xff]  ;;  %v1691_v2 = vld [vmem:[%s2175_s3 + $0x30] sm:$0xff]  ;;  %s2190_s19 = smov (!%p313_p5, %s1816_s19), 1  ;;  %s2192_s8 = smov (!%p325_p7, %s322_s8), 13  ;;  %vm445_vm0 = vcmask 916480  }
   0xf   : > { %v1712_v3 = vld [vmem:[%s2175_s3 + $0xd8] sm:$0xff]  ;;  %450 = vmatpush.bf16.msra.mxu0 %v1698_v0  ;;  %591 = vmatpush.bf16.msra.mxu2 %v1705_v1  ;;  %v1697_v4 = vld [vmem:[%s2175_s3 + $0x60] sm:$0xff]  ;;  %v1690_v6 = vld [vmem:[%s2175_s3 + $0x28] sm:$0xff]  ;;  %s316_s17 = scalar_select %p315_p6, %s1812_s18, 13  ;;  %vm1108_vm1 = vcmask 785408   ;;  %vm1110_vm2 = vcmask 781312  }
  0x10   : > { %v1704_v5 = vld [vmem:[%s2175_s3 + $0x98] sm:$0xff]  ;;  %512 = vmatpush.bf16.msra.mxu1 %v1691_v2  ;;  %674 = vmatpush.bf16.msra.mxu3 %v1712_v3  ;;  %v1711_v7 = vld [vmem:[%s2175_s3 + $0xd0] sm:$0xff]  ;;  %s1922_s25 = smul.u32 28, %s2190_s19  ;;  %v1689_v10 = vld [vmem:[%s2175_s3 + $0x20] sm:$0xff]  ;;  %s1306_s9 = sshll.u32 %s2192_s8, 1  ;;  %vm1119_vm3 = vcmask 778240  }
  0x11   : > { %s1304_s26 = sshll.u32 %s316_s17, 1  ;;  %v1696_v8 = vld [vmem:[%s2175_s3 + $0x58] sm:$0xff]  ;;  %v1703_v9 = vld [vmem:[%s2175_s3 + $0x90] sm:$0xff]  ;;  %v1710_v11 = vld [vmem:[%s2175_s3 + $0xc8] sm:$0xff]  ;;  %s2194_s16 = smov (!%p1957_p8, %s333_s16), 13 }
  0x12   : > { %s319_s6 = sadd.s32 %s1922_s25, %s1304_s26  ;;  %v1695_v12 = vld [vmem:[%s2175_s3 + $0x50] sm:$0xff]  ;;  %v1702_v13 = vld [vmem:[%s2175_s3 + $0x88] sm:$0xff]  ;;  %v1688_v14 = vld [vmem:[%s2175_s3 + $0x18] sm:$0xff]  ;;  %s329_s10 = sadd.s32 %s1922_s25, %s1306_s9 }
  0x13   : > { %451 = vmatpush.bf16.msra.mxu0 %v1697_v4  ;;  %592 = vmatpush.bf16.msra.mxu2 %v1704_v5  ;;  %s1305_s12 = sshll.u32 %s319_s6, 2  ;;  %v1709_v15 = vld [vmem:[%s2175_s3 + $0xc0] sm:$0xff]  ;;  %v1694_v18 = vld [vmem:[%s2175_s3 + $0x48] sm:$0xff]  ;;  %v1687_v21 = vld [vmem:[%s2175_s3 + $0x10] sm:$0xff]  ;;  %s1307_s29 = sshll.u32 %s329_s10, 2 }
  0x14   : > { %513 = vmatpush.bf16.msra.mxu1 %v1690_v6  ;;  %675 = vmatpush.bf16.msra.mxu3 %v1711_v7  ;;  %s1940_s15 = scalar_lea.vmem %s2172_s0, %s1305_s12  ;;  %v1701_v19 = vld [vmem:[%s2175_s3 + $0x80] sm:$0xff]  ;;  %v1708_v22 = vld [vmem:[%s2175_s3 + $0xb8] sm:$0xff]  ;;  %s1988_s11 = scalar_lea.vmem %s2173_s1, %s1307_s29  ;;  %v1686_v29 = vld [vmem:[%s2175_s3 + $0x8] sm:$0xff] }
  0x15   : > { %v375_v16 = vld [vmem:[%s1940_s15 + $0x4] sm:$0x7]  ;;  %v359_v20 = vld [vmem:[%s1940_s15] sm:$0xf]  ;;  %v1700_v27 = vld [vmem:[%s2175_s3 + $0x78] sm:$0xff]  ;;  %s1308_s26 = sshll.u32 %s2194_s16, 1 }
  0x16   : > { %v394_v17 = vunpack.c.l.b16 %v375_v16  ;;  %v525_v23 = vld [vmem:[%s1940_s15] sm:$0xe]  ;;  %v393_v24 = vunpack.c.l.b16 %v359_v20  ;;  %v1707_v30 = vld [vmem:[%s2175_s3 + $0xb0] sm:$0xff]  ;;  %v607_v33 = vld [vmem:[%s1988_s11 + $0x4] sm:$0x3]  ;;  %s340_s14 = sadd.s32 %s1922_s25, %s1308_s26  ;;  %s2196_s18 = smov (!%p346_p9, %s1812_s18), 11 }
  0x17   : > { %452 = vmatpush.bf16.msra.mxu0 %v1696_v8  ;;  %593 = vmatpush.bf16.msra.mxu2 %v1703_v9  ;;  %v1693_v26 = vld [vmem:[%s2175_s3 + $0x40] sm:$0xff]  ;;  %v542_v28 = vunpack.c.l.b16 %v525_v23  ;;  %v1692_v35 = vld [vmem:[%s2175_s3 + $0x38] sm:$0xff]  ;;  %v1699_v36 = vld [vmem:[%s2175_s3 + $0x70] sm:$0xff]  ;;  %v626_v45 = vunpack.c.l.b16 %v607_v33  ;;  %s1309_s26 = sshll.u32 %s340_s14, 2 }
  0x18   : > { %514 = vmatpush.bf16.msra.mxu1 %v1689_v10  ;;  %676 = vmatpush.bf16.msra.mxu3 %v1710_v11  ;;  %v395_v25 = vpack.c.b16 %v394_v17, %v393_v24  ;;  %v1998_v32 = vld [vmem:[%s1988_s11] sm:$0xf]  ;;  %v360_v34 = vld [vmem:[%s1940_s15 + $0x4] sm:$0x3]  ;;  %v1719_v40 = vld [vmem:[%s2175_s3 + $0x110] sm:$0xff]  ;;  %s2045_s13 = scalar_lea.vmem %s2174_s2, %s1309_s26 }
  0x19   : > { %v543_v37 = vpack.c.b16 %v394_v17, %v542_v28  ;;  %v1733_v41 = vld [vmem:[%s2175_s3 + $0x180] sm:$0xff]  ;;  %v1706_v43 = vld [vmem:[%s2175_s3 + $0xa8] sm:$0xff]  ;;  %v625_v44 = vunpack.c.l.b16 %v1998_v32  ;;  %v464_v46 = vunpack.c.l.b16 %v360_v34  ;;  %v1740_v48 = vld [vmem:[%s2175_s3 + $0x1b8] sm:$0xff] }
  0x1a   : > { %v399_v31 = vshll.u32 %v395_v25, 16  ;;  %v397_v38 = vshrl.u32 %v395_v25, 16  ;;  %v1685_v42 = vld [vmem:[%s2175_s3] sm:$0xff]  ;;  %v1726_v47 = vld [vmem:[%s2175_s3 + $0x148] sm:$0xff]  ;;  %v1732_v52 = vld [vmem:[%s2175_s3 + $0x178] sm:$0xff] }
  0x1b   : > { %453 = vmatpush.bf16.msra.mxu0 %v1695_v12  ;;  %594 = vmatpush.bf16.msra.mxu2 %v1702_v13  ;;  %v544_v49 = vrot.slane %v543_v37, 1  ;;  %v1718_v51 = vld [vmem:[%s2175_s3 + $0x108] sm:$0xff]  ;;  %v627_v53 = vpack.c.b16 %v626_v45, %v625_v44  ;;  %v465_v54 = vpack.c.b16 %v464_v46, %v393_v24  ;;  %v1725_v55 = vld [vmem:[%s2175_s3 + $0x140] sm:$0xff]  ;;  %v1739_v56 = vld [vmem:[%s2175_s3 + $0x1b0] sm:$0xff] }
  0x1c   : > { %515 = vmatpush.bf16.msra.mxu1 %v1688_v14  ;;  %677 = vmatpush.bf16.msra.mxu3 %v1709_v15  ;;  %v401_v39 = vrot.slane %v399_v31, 1  ;;  %v1717_v57 = vld [vmem:[%s2175_s3 + $0x100] sm:$0xff]  ;;  %v1731_v58 = vld [vmem:[%s2175_s3 + $0x170] sm:$0xff]  ;;  %v1724_v60 = vld [vmem:[%s2175_s3 + $0x138] sm:$0xff] }
  0x1d   : > { %v689_v59 = vld [vmem:[%s1988_s11 + $0x4] sm:$0x7]  ;;  %v1738_v61 = vld [vmem:[%s2175_s3 + $0x1a8] sm:$0xff]  ;;  %v857_v62 = vld [vmem:[%s2045_s13] sm:$0xf] }
  0x1e   : > { %v402_v50 = vor.u32 %v401_v39, %v397_v38  ;;  %v2064_v63 = vld [vmem:[%s2045_s13 + $0x4] sm:$0x7]  ;;  %v706_v0 = vunpack.c.l.b16 %v689_v59  ;;  %v1716_v1 = vld [vmem:[%s2175_s3 + $0xf8] sm:$0xff]  ;;  %v1730_v2 = vld [vmem:[%s2175_s3 + $0x168] sm:$0xff]  ;;  %v876_v3 = vunpack.c.l.b16 %v857_v62 }
  0x1f   : > { %454 = vmatpush.bf16.msra.mxu0 %v1694_v18  ;;  %595 = vmatpush.bf16.msra.mxu2 %v1701_v19  ;;  %v957_v4 = vunpack.c.l.b16 %v2064_v63  ;;  %v1723_v5 = vld [vmem:[%s2175_s3 + $0x130] sm:$0xff]  ;;  %v1737_v6 = vld [vmem:[%s2175_s3 + $0x1a0] sm:$0xff]  ;;  %v1722_v11 = vld [vmem:[%s2175_s3 + $0x128] sm:$0xff] }
  0x20   : > { %516 = vmatpush.bf16.msra.mxu1 %v1687_v21  ;;  %678 = vmatpush.bf16.msra.mxu3 %v1708_v22  ;;  %v707_v7 = vpack.c.b16 %v706_v0, %v625_v44  ;;  %v1715_v8 = vld [vmem:[%s2175_s3 + $0xf0] sm:$0xff]  ;;  %v1729_v9 = vld [vmem:[%s2175_s3 + $0x160] sm:$0xff]  ;;  %v1736_v12 = vld [vmem:[%s2175_s3 + $0x198] sm:$0xff] }
  0x21   : > { %v958_v10 = vpack.c.b16 %v957_v4, %v876_v3  ;;  %v776_v13 = vld [vmem:[%s1988_s11] sm:$0xe]  ;;  %v1714_v15 = vld [vmem:[%s2175_s3 + $0xe8] sm:$0xff]  ;;  %v1728_v16 = vld [vmem:[%s2175_s3 + $0x158] sm:$0xff] }
  0x22   : > { %v711_v14 = vshll.u32 %v707_v7, 16  ;;  %v858_v17 = vld [vmem:[%s2045_s13 + $0x4] sm:$0x3]  ;;  %v793_v18 = vunpack.c.l.b16 %v776_v13  ;;  %v1735_v21 = vld [vmem:[%s2175_s3 + $0x190] sm:$0xff]  ;;  %v709_v22 = vshrl.u32 %v707_v7, 16  ;;  %v1720_v31 = vld [vmem:[%s2175_s3 + $0x118] sm:$0xff] }
  0x23   : > { %455 = vmatpush.bf16.msra.mxu0 %v1693_v26  ;;  %596 = vmatpush.bf16.msra.mxu2 %v1700_v27  ;;  %v962_v19 = vshll.u32 %v958_v10, 16  ;;  %v1721_v20 = vld [vmem:[%s2175_s3 + $0x120] sm:$0xff]  ;;  %v877_v24 = vunpack.c.l.b16 %v858_v17  ;;  %v1727_v26 = vld [vmem:[%s2175_s3 + $0x150] sm:$0xff]  ;;  %v1734_v32 = vld [vmem:[%s2175_s3 + $0x188] sm:$0xff] }
  0x24   : > { %517 = vmatpush.bf16.msra.mxu1 %v1686_v29  ;;  %679 = vmatpush.bf16.msra.mxu3 %v1707_v30  ;;  %v713_v23 = vrot.slane %v711_v14, 1  ;;  %v1713_v25 = vld [vmem:[%s2175_s3 + $0xe0] sm:$0xff]  ;;  %v1747_v27 = vld [vmem:[%s2175_s3 + $0x1f0] sm:$0xff]  ;;  %v794_v28 = vpack.c.b16 %v706_v0, %v793_v18  ;;  %v960_v29 = vshrl.u32 %v958_v10, 16  ;;  %v1746_v37 = vld [vmem:[%s2175_s3 + $0x1e8] sm:$0xff] }
  0x25   : > { %v964_v30 = vrot.slane %v962_v19, 1  ;;  %v878_v34 = vpack.c.b16 %v877_v24, %v876_v3  ;;  %v1745_v38 = vld [vmem:[%s2175_s3 + $0x1e0] sm:$0xff]  ;;  %v1744_v39 = vld [vmem:[%s2175_s3 + $0x1d8] sm:$0xff] }
  0x26   : > { %v714_v33 = vor.u32 %v713_v23, %v709_v22  ;;  %v1741_v45 = vld [vmem:[%s2175_s3 + $0x1c0] sm:$0xff] }
  0x27   : > { %456 = vmatpush.bf16.msra.mxu0 %v1692_v35  ;;  %597 = vmatpush.bf16.msra.mxu2 %v1699_v36  ;;  %v795_v35 = vrot.slane %v794_v28, 1  ;;  %v965_v36 = vor.u32 %v964_v30, %v960_v29 }
  0x28   : > { %518 = vmatpush.bf16.msra.mxu1 %v1685_v42  ;;  %680 = vmatpush.bf16.msra.mxu3 %v1706_v43  ;;  %v1742_v43 = vld [vmem:[%s2175_s3 + $0x1c8] sm:$0xff] }
  0x2a   : > { %1424 = vmatmul.msk.bf16.vlgmr.msra.gmra.mxu2 %vm445_vm0, %v544_v49  ;;  %1352 = vmatmul.msk.bf16.vlgmr.msra.gmra.mxu0 %vm445_vm0, %v402_v50 }
  0x2b   : > { %761 = vmatpush.bf16.msrb.mxu0 %v1719_v40  ;;  %925 = vmatpush.bf16.msrb.mxu2 %v1733_v41  ;;  %v1743_v40 = vld [vmem:[%s2175_s3 + $0x1d0] sm:$0xff]  ;;  %v1027_v41 = vld [vmem:[%s2045_s13] sm:$0xe]  ;;  %s1749_s13 = smul.u32 12, %s2190_s19 }
  0x2c   : > { %842 = vmatpush.bf16.msrb.mxu1 %v1726_v47  ;;  %1012 = vmatpush.bf16.msrb.mxu3 %v1740_v48  ;;  %v1044_v42 = vunpack.c.l.b16 %v1027_v41 }
  0x2d   : > { %1467 = vmatmul.msk.bf16.vlgmr.msra.gmra.mxu3 %vm445_vm0, %v627_v53  ;;  %1381 = vmatmul.msk.bf16.vlgmr.msra.gmra.mxu1 %vm445_vm0, %v465_v54  ;;  %s349_s28 = sadd.s32 %s1749_s13, %s2196_s18 }
  0x2e   : > { %v1045_v44 = vpack.c.b16 %v957_v4, %v1044_v42  ;;  %s350_s16 = scalar_lea.vmem %s2176_s4, %s349_s28  ;;  %s357_s19 = scalar_lea.vmem %s2177_s5, %s349_s28 }
  0x2f   : > { %762 = vmatpush.bf16.msrb.mxu0 %v1718_v51  ;;  %926 = vmatpush.bf16.msrb.mxu2 %v1732_v52 }
  0x30   : > { %843 = vmatpush.bf16.msrb.mxu1 %v1725_v55  ;;  %1013 = vmatpush.bf16.msrb.mxu3 %v1739_v56  ;;  %v1046_v46 = vrot.slane %v1045_v44, 1 }
  0x33   : > { %763 = vmatpush.bf16.msrb.mxu0 %v1717_v57  ;;  %927 = vmatpush.bf16.msrb.mxu2 %v1731_v58 }
  0x34   : > { %844 = vmatpush.bf16.msrb.mxu1 %v1724_v60  ;;  %1014 = vmatpush.bf16.msrb.mxu3 %v1738_v61 }
  0x37   : > { %764 = vmatpush.bf16.msrb.mxu0 %v1716_v1  ;;  %928 = vmatpush.bf16.msrb.mxu2 %v1730_v2 }
  0x38   : > { %845 = vmatpush.bf16.msrb.mxu1 %v1723_v5  ;;  %1015 = vmatpush.bf16.msrb.mxu3 %v1737_v6 }
  0x3b   : > { %765 = vmatpush.bf16.msrb.mxu0 %v1715_v8  ;;  %929 = vmatpush.bf16.msrb.mxu2 %v1729_v9 }
  0x3c   : > { %846 = vmatpush.bf16.msrb.mxu1 %v1722_v11  ;;  %1016 = vmatpush.bf16.msrb.mxu3 %v1736_v12 }
  0x3f   : > { %766 = vmatpush.bf16.msrb.mxu0 %v1714_v15  ;;  %930 = vmatpush.bf16.msrb.mxu2 %v1728_v16 }
  0x40   : > { %847 = vmatpush.bf16.msrb.mxu1 %v1721_v20  ;;  %1017 = vmatpush.bf16.msrb.mxu3 %v1735_v21 }
  0x43   : > { %767 = vmatpush.bf16.msrb.mxu0 %v1713_v25  ;;  %931 = vmatpush.bf16.msrb.mxu2 %v1727_v26 }
  0x44   : > { %848 = vmatpush.bf16.msrb.mxu1 %v1720_v31  ;;  %1018 = vmatpush.bf16.msrb.mxu3 %v1734_v32 }
  0x46   : > { %1510 = vmatmul.msk.bf16.vlgmr.msrb.gmra.mxu0 %vm445_vm0, %v714_v33  ;;  %1596 = vmatmul.msk.bf16.vlgmr.msrb.gmra.mxu2 %vm445_vm0, %v878_v34 }
  0x47   : > { %1093 = vmatpush.bf16.msra.mxu0 %v1747_v27  ;;  %1553 = vmatmul.msk.bf16.vlgmr.msrb.gmra.mxu1 %vm445_vm0, %v795_v35 }
  0x48   : > { %1639 = vmatmul.msk.bf16.vlgmr.msrb.gmra.mxu3 %vm445_vm0, %v965_v36 }
  0x4b   : > { %1094 = vmatpush.bf16.msra.mxu0 %v1746_v37 }
  0x4f   : > { %1095 = vmatpush.bf16.msra.mxu0 %v1745_v38 }
  0x53   : > { %1096 = vmatpush.bf16.msra.mxu0 %v1744_v39 }
  0x57   : > { %1097 = vmatpush.bf16.msra.mxu0 %v1743_v40 }
  0x5b   : > { %1098 = vmatpush.bf16.msra.mxu0 %v1742_v43 }
  0x5f   : > { %1099 = vmatpush.bf16.msra.mxu0 %v1741_v45 }
  0x62   : > { %1682 = vmatmul.msk.bf16.vlgmr.msra.gmra.mxu0 %vm445_vm0, %v1046_v46 }
  0xa7   : > { %v458_v47 = vpop.f32.mrf.mxu0 }
  0xaa   : > { %v520_v48 = vpop.f32.mrf.mxu1 }
  0xab   : > { %v521_v53 = vadd.f32 %v520_v48, %v458_v47 }
  0xad   : > { %v599_v49 = vpop.f32.mrf.mxu2 }
  0xae   : > { %v604_v56 = vadd.f32 %v599_v49, %v521_v53 }
  0xaf   : > { %v460_v50 = vpop.f32.mrf.mxu0 }
  0xb0   : > { %v682_v51 = vpop.f32.mrf.mxu3 }
  0xb1   : > { %v687_v60 = vadd.f32 %v682_v51, %v604_v56 }
  0xb2   : > { %v522_v52 = vpop.f32.mrf.mxu1 }
  0xb3   : > { %v523_v58 = vadd.f32 %v522_v52, %v460_v50 }
  0xb5   : > { %v601_v54 = vpop.f32.mrf.mxu2 }
  0xb6   : > { %v605_v62 = vadd.f32 %v601_v54, %v523_v58 }
  0xb8   : > { %v684_v57 = vpop.f32.mrf.mxu3 }
  0xb9   : > { %v688_v2 = vadd.f32 %v684_v57, %v605_v62 }
  0xc3   : > { %v769_v55 = vpop.f32.mrf.mxu0 }
  0xc4   : > { %v850_v59 = vpop.f32.mrf.mxu1  ;;  %v774_v0 = vadd.f32 %v769_v55, %v687_v60 }
  0xc6   : > { %v855_v3 = vadd.f32 %v850_v59, %v774_v0 }
  0xc9   : > { %v933_v61 = vpop.f32.mrf.mxu2 }
  0xca   : > { %v938_v6 = vadd.f32 %v933_v61, %v855_v3 }
  0xcb   : > { %v771_v63 = vpop.f32.mrf.mxu0  ;;  %v1020_v1 = vpop.f32.mrf.mxu3 }
  0xcc   : > { %v775_v4 = vadd.f32 %v771_v63, %v688_v2  ;;  %v852_v5 = vpop.f32.mrf.mxu1  ;;  %v1025_v10 = vadd.f32 %v1020_v1, %v938_v6 }
  0xce   : > { %v856_v9 = vadd.f32 %v852_v5, %v775_v4 }
  0xd1   : > { %v935_v7 = vpop.f32.mrf.mxu2 }
  0xd2   : > { %v939_v11 = vadd.f32 %v935_v7, %v856_v9 }
  0xd3   : > { %v1022_v12 = vpop.f32.mrf.mxu3 }
  0xd4   : > { %v1026_v14 = vadd.f32 %v1022_v12, %v939_v11 }
  0xdf   : > { %v1101_v8 = vpop.f32.mrf.mxu0 }
  0xe0   : > { %v1106_v13 = vadd.f32 %v1101_v8, %v1025_v10 }
  0xe2   : > { %v1121_v16 = vmul.f32 %v1106_v13, %v1106_v13  ;;  %v1109_v18 = vsel %vm1108_vm1, %v1106_v13, 0.0 }
  0xe4   : > { %v1123_v22 = vsel %vm1108_vm1, %v1121_v16, 0.0 }
  0xe7   : > { %v1103_v15 = vpop.f32.mrf.mxu0 }
  0xe8   : > { %v1107_v17 = vadd.f32 %v1103_v15, %v1026_v14 }
  0xea   : > { %v1111_v19 = vsel %vm1110_vm2, %v1107_v17, 0.0  ;;  %v1122_v20 = vmul.f32 %v1107_v17, %v1107_v17 }
  0xeb   : > { %v1112_v21 = vadd.f32 %v1111_v19, %v1109_v18 }
  0xec   : > { %v1124_v23 = vsel %vm1110_vm2, %v1122_v20, 0.0 }
  0xed   : > { %v1113_v24 = vrot.slane %v1112_v21, 4  ;;  %v1125_v25 = vadd.f32 %v1124_v23, %v1123_v22 }
  0xef   : > { %v1114_v26 = vadd.f32 %v1113_v24, %v1112_v21  ;;  %v1126_v27 = vrot.slane %v1125_v25, 4 }
  0xf1   : > { %v1115_v28 = vrot.slane %v1114_v26, 2  ;;  %v1127_v29 = vadd.f32 %v1126_v27, %v1125_v25 }
  0xf3   : > { %v1116_v30 = vadd.f32 %v1115_v28, %v1114_v26  ;;  %v1128_v31 = vrot.slane %v1127_v29, 2 }
  0xf5   : > { %v1117_v32 = vrot.slane %v1116_v30, 1  ;;  %v1129_v33 = vadd.f32 %v1128_v31, %v1127_v29 }
  0xf7   : > { %v1118_v34 = vadd.f32 %v1117_v32, %v1116_v30  ;;  %v1130_v35 = vrot.slane %v1129_v33, 1 }
  0xf9   : > { %1120 = vst.msk [vmem:[%s350_s16] sm:$0x1] %vm1119_vm3, %v1118_v34  ;;  %v1131_v36 = vadd.f32 %v1130_v35, %v1129_v33 }
  0xfb   : > { %1132 = vst.msk [vmem:[%s357_s19] sm:$0x1] %vm1119_vm3, %v1131_v36 }
  0xfc PF: > { %s16_s22 = sadd.s32 1, %s1828_s22   ;;  %s2179_s18 = smov %s1820_s20 }
  0xfd   : > { %p13_p10 = scmp.ge.s32.totalorder %s16_s22, 26   ;;  %s2180_s19 = smov %s1824_s21 }
  0xfe   : > { %s2181_s20 = smov %s2184_s23  ;;  %s2182_s21 = smov %s2188_s24 }
  0xff   :  { %15 = sbr.rel (!%p13_p10) target bundleno = 3 (0x3), region = 92 }

// kernel: res_block_forward.8
= control target key start
LH: loop header
LB: loop body
LE: loop exit
PB: predicated region body
PF: predicated region fallthrough
CT: control target
= control target key end

     0   :  { %s581_s12 = smov 0   ;;  %s583_s13 = smov 0   ;;  %s656_s0 = inlined_call_operand.vmem [shape: bf16[2,16,16,64], index: 0, kind: input, shape index: {}]   ;;  %s657_s1 = inlined_call_operand.vmem [shape: bf16[1,1,64,80], index: 1, kind: input, shape index: {}]   ;;  %s658_s2 = inlined_call_operand.vmem [shape: f32[2,10,1,80], index: 2, kind: output, shape index: {0}]   ;;  %s659_s3 = inlined_call_operand.vmem [shape: f32[2,10,1,80], index: 3, kind: output, shape index: {1}]  }
   0x1   :  { %s585_s14 = smov 0   ;;  %s587_s15 = smov 0  }
   0x2   :  { %s589_s16 = smov 0  }
   0x3 LB: > { %s23_s17 = sadd.s32 1, %s551_s14  ;;  %s26_s18 = sadd.s32 1, %s555_s15  ;;  %s559_s16 = sphi %s589_s16, %s14_s16   ;;  %s555_s15 = sphi %s587_s15, %s663_s15   ;;  %s551_s14 = sphi %s585_s14, %s662_s14   ;;  %s547_s13 = sphi %s583_s13, %s661_s13   ;;  %s543_s12 = sphi %s581_s12, %s660_s12  }
   0x4   : > { %p24_p0 = scmp.ge.s32.totalorder %s23_s17, 10  ;;  %p448_p1 = scmp.ge.s32.totalorder %s559_s16, 1 }
   0x5   : > { %p166_p2 = scmp.lt.s32.totalorder %s559_s16, 21 }
   0x6   : > { %s665_s17 = smov (%p24_p0, %s23_s17), 0  ;;  %s667_s18 = smov (!%p24_p0, %s26_s18), %s555_s15 }
   0x7   : > { %p167_p3 = pnand %p448_p1, %p166_p2  ;;  %p28_p4 = scmp.ge.s32.totalorder %s667_s18, 2 }
   0x8   : > { %s204_s21 = sadd.s32 (!%p167_p3), 3, %s543_s12  ;;  %p205_p5 = scmp.lt.s32.totalorder (!%p167_p3), %s547_s13, 1 }
   0x9   : > { %s669_s18 = smov (%p28_p4, %s667_s18), 0  ;;  %170 = sbr.rel (%p167_p3) target bundleno = 182 (0xb6), region = 28 }
   0xa   : > { %p207_p6 = scmp.lt.s32.totalorder (!%p167_p3), %s204_s21, 15  ;;  %p217_p7 = scmp.lt.s32.totalorder (!%p167_p3), %s543_s12, 9 }
   0xe   : > { %v479_v0 = vld [vmem:[%s657_s1 + $0x18] sm:$0xff]  ;;  %v478_v1 = vld [vmem:[%s657_s1 + $0x10] sm:$0xff]  ;;  %s671_s13 = smov (!%p205_p5, %s547_s13), 1  ;;  %s673_s21 = smov (!%p207_p6, %s204_s21), 15  ;;  %v477_v2 = vld [vmem:[%s657_s1 + $0x8] sm:$0xff]  ;;  %vm277_vm0 = vcmask 523264  }
   0xf   : > { %285 = vmatpush.bf16.msra.mxu0 %v479_v0  ;;  %s450_s24 = sshll.u32 %s671_s13, 5  ;;  %s449_s25 = sshll.u32 %s673_s21, 1  ;;  %v476_v5 = vld [vmem:[%s657_s1] sm:$0xff]  ;;  %vm295_vm1 = vcmask 654336   ;;  %vm297_vm2 = vcmask 648192   ;;  %vm306_vm3 = vcmask 647168  }
  0x10   : > { %s211_s28 = sadd.s32 %s450_s24, %s449_s25  ;;  %s480_s8 = smul.u32 10, %s671_s13 }
  0x11   : > { %s451_s29 = sshll.u32 %s211_s28, 2  ;;  %s675_s12 = smov (!%p217_p7, %s543_s12), 9 }
  0x12   : > { %s213_s5 = scalar_lea.vmem %s656_s0, %s451_s29  ;;  %s220_s9 = sadd.s32 %s480_s8, %s675_s12 }
  0x13   : > { %286 = vmatpush.bf16.msra.mxu0 %v478_v1  ;;  %v454_v3 = vld [vmem:[%s213_s5] sm:$0xe]  ;;  %v475_v4 = vld [vmem:[%s213_s5] sm:$0x70]  ;;  %s221_s19 = scalar_lea.vmem %s658_s2, %s220_s9  ;;  %s228_s13 = scalar_lea.vmem %s659_s3, %s220_s9 }
  0x14   : > { %v455_v6 = vor.u32 %v475_v4, %v454_v3 }
  0x16   : > { %v246_v7 = vshrl.u32 %v455_v6, 16  ;;  %v249_v8 = vshll.u32 %v455_v6, 16 }
  0x17   : > { %287 = vmatpush.bf16.msra.mxu0 %v477_v2 }
  0x18   : > { %v248_v9 = vrot.slane %v246_v7, 1  ;;  %v251_v10 = vrot.slane %v249_v8, 2 }
  0x1a   : > { %v252_v11 = vor.u32 %v251_v10, %v248_v9 }
  0x1b   : > { %288 = vmatpush.bf16.msra.mxu0 %v476_v5 }
  0x1e   : > { %472 = vmatmul.msk.bf16.vlgmr.msra.gmra.mxu0 %vm277_vm0, %v252_v11 }
  0x9b   : > { %v290_v12 = vpop.f32.mrf.mxu0 }
  0x9c   : > { %v308_v13 = vmul.f32 %v290_v12, %v290_v12  ;;  %v296_v15 = vsel %vm295_vm1, %v290_v12, 0.0 }
  0x9e   : > { %v310_v19 = vsel %vm295_vm1, %v308_v13, 0.0 }
  0xa3   : > { %v292_v14 = vpop.f32.mrf.mxu0 }
  0xa4   : > { %v298_v16 = vsel %vm297_vm2, %v292_v14, 0.0  ;;  %v309_v17 = vmul.f32 %v292_v14, %v292_v14 }
  0xa5   : > { %v299_v18 = vadd.f32 %v298_v16, %v296_v15 }
  0xa6   : > { %v311_v20 = vsel %vm297_vm2, %v309_v17, 0.0 }
  0xa7   : > { %v300_v21 = vrot.slane %v299_v18, 4  ;;  %v312_v22 = vadd.f32 %v311_v20, %v310_v19 }
  0xa9   : > { %v301_v23 = vadd.f32 %v300_v21, %v299_v18  ;;  %v313_v24 = vrot.slane %v312_v22, 4 }
  0xab   : > { %v302_v25 = vrot.slane %v301_v23, 2  ;;  %v314_v26 = vadd.f32 %v313_v24, %v312_v22 }
  0xad   : > { %v303_v27 = vadd.f32 %v302_v25, %v301_v23  ;;  %v315_v28 = vrot.slane %v314_v26, 2 }
  0xaf   : > { %v304_v29 = vrot.slane %v303_v27, 1  ;;  %v316_v30 = vadd.f32 %v315_v28, %v314_v26 }
  0xb1   : > { %v305_v31 = vadd.f32 %v304_v29, %v303_v27  ;;  %v317_v32 = vrot.slane %v316_v30, 1 }
  0xb3   : > { %307 = vst.msk [vmem:[%s221_s19] sm:$0x1] %vm306_vm3, %v305_v31  ;;  %v318_v33 = vadd.f32 %v317_v32, %v316_v30 }
  0xb5   : > { %319 = vst.msk [vmem:[%s228_s13] sm:$0x1] %vm306_vm3, %v318_v33 }
  0xb6 PF: > { %s14_s16 = sadd.s32 1, %s559_s16   ;;  %s660_s12 = smov %s551_s14 }
  0xb7   : > { %p11_p8 = scmp.ge.s32.totalorder %s14_s16, 22   ;;  %s661_s13 = smov %s555_s15 }
  0xb8   : > { %s662_s14 = smov %s665_s17  ;;  %s663_s15 = smov %s669_s18 }
  0xb9   :  { %13 = sbr.rel (!%p11_p8) target bundleno = 3 (0x3), region = 70 }

// kernel: res_block_forward.9
= control target key start
LH: loop header
LB: loop body
LE: loop exit
PB: predicated region body
PF: predicated region fallthrough
CT: control target
= control target key end

     0   :  { %s2176_s13 = smov 0   ;;  %s2178_s14 = smov 0   ;;  %s2505_s0 = inlined_call_operand.vmem [shape: bf16[2,14,14,112], index: 0, kind: input, shape index: {}, may-alias: {0,1,2}]   ;;  %s2506_s1 = inlined_call_operand.vmem [shape: bf16[2,14,14,112], index: 1, kind: input, shape index: {}, may-alias: {0,1,2}]   ;;  %s2507_s2 = inlined_call_operand.vmem [shape: bf16[2,14,14,112], index: 2, kind: input, shape index: {}, may-alias: {0,1,2}]   ;;  %s2508_s3 = inlined_call_operand.vmem [shape: bf16[2,16,16,64], index: 3, kind: input, shape index: {}]   ;;  %s2509_s4 = inlined_call_operand.vmem [shape: bf16[3,3,112,80], index: 4, kind: input, shape index: {}]   ;;  %s2510_s5 = inlined_call_operand.vmem [shape: bf16[1,1,64,80], index: 5, kind: input, shape index: {}]   ;;  %s2511_s6 = inlined_call_operand.vmem [shape: f32[1,80], index: 6, kind: input, shape index: {}]   ;;  %s2512_s7 = inlined_call_operand.vmem [shape: f32[1,80], index: 7, kind: input, shape index: {}]   ;;  %s2513_s8 = inlined_call_operand.vmem [shape: f32[1,80], index: 8, kind: input, shape index: {}]   ;;  %s2514_s9 = inlined_call_operand.vmem [shape: f32[1,80], index: 9, kind: input, shape index: {}]   ;;  %s2515_s10 = inlined_call_operand.vmem [shape: f32[2,10,10,80], index: 10, kind: output, shape index: {}]  }
   0x1   :  { %s2180_s15 = smov 0   ;;  %s2182_s16 = smov 0  }
   0x2   :  { %s2184_s17 = smov 0  }
   0x3 LB: > { %s29_s18 = sadd.s32 1, %s2111_s15  ;;  %s32_s19 = sadd.s32 1, %s2115_s16  ;;  %s2119_s17 = sphi %s2184_s17, %s20_s17   ;;  %s2115_s16 = sphi %s2182_s16, %s2523_s16   ;;  %s2111_s15 = sphi %s2180_s15, %s2522_s15   ;;  %s2107_s14 = sphi %s2178_s14, %s2521_s14   ;;  %s2103_s13 = sphi %s2176_s13, %s2520_s13  }
   0x4   : > { %p30_p0 = scmp.ge.s32.totalorder %s29_s18, 10  ;;  %p1559_p1 = scmp.ge.s32.totalorder %s2119_s17, 1 }
   0x5   : > { %p396_p2 = scmp.lt.s32.totalorder %s2119_s17, 21 }
   0x6   : > { %s2525_s18 = smov (%p30_p0, %s29_s18), 0  ;;  %s2527_s19 = smov (!%p30_p0, %s32_s19), %s2115_s16 }
   0x7   : > { %2516 = sst [smem:[#allocation2_spill]] %s2525_s18  ;;  %p397_p3 = pnand %p1559_p1, %p396_p2 }
   0x8   : > { %p34_p4 = scmp.ge.s32.totalorder %s2527_s19, 2  ;;  %s473_s26 = sadd.s32 (!%p397_p3), 1, %s2103_s13 }
   0x9   : > { %400 = sbr.rel (%p397_p3) target bundleno = 243 (0xf3), region = 60  ;;  %p474_p5 = scmp.lt.s32.totalorder (!%p397_p3), %s2107_s14, 1 }
   0xa   : > { %s2529_s19 = smov (%p34_p4, %s2527_s19), 0  ;;  %p476_p6 = scmp.lt.s32.totalorder (!%p397_p3), %s473_s26, 13 }
   0xb   : > { %2517 = sst [smem:[#allocation3_spill]] %s2529_s19  ;;  %s484_s29 = sadd.s32 (!%p397_p3), 2, %s2103_s13 }
   0xc   : > { %p487_p7 = scmp.lt.s32.totalorder (!%p397_p3), %s484_s29, 13  ;;  %s2256_s30 = sadd.s32 (!%p397_p3), 3, %s2103_s13 }
   0xd   : > { %p498_p8 = scmp.lt.s32.totalorder (!%p397_p3), %s2256_s30, 13  ;;  %p509_p9 = scmp.lt.s32.totalorder (!%p397_p3), %s2256_s30, 15 }
   0xe   : > { %v1980_v0 = vld [vmem:[%s2509_s4 + $0x68] sm:$0xff]  ;;  %v1987_v1 = vld [vmem:[%s2509_s4 + $0xa0] sm:$0xff]  ;;  %v1973_v2 = vld [vmem:[%s2509_s4 + $0x30] sm:$0xff]  ;;  %s2531_s14 = smov (!%p474_p5, %s2107_s14), 1  ;;  %s2533_s26 = smov (!%p476_p6, %s473_s26), 13  ;;  %vm607_vm0 = vcmask 916480  }
   0xf   : > { %v1994_v3 = vld [vmem:[%s2509_s4 + $0xd8] sm:$0xff]  ;;  %612 = vmatpush.bf16.msra.mxu0 %v1980_v0  ;;  %767 = vmatpush.bf16.msra.mxu2 %v1987_v1  ;;  %v1979_v4 = vld [vmem:[%s2509_s4 + $0x60] sm:$0xff]  ;;  %v1972_v6 = vld [vmem:[%s2509_s4 + $0x28] sm:$0xff]  ;;  %s2237_s25 = smul.u32 28, %s2531_s14  ;;  %s1560_s27 = sshll.u32 %s2533_s26, 1  ;;  %vm1359_vm1 = vcmask 523264  }
  0x10   : > { %v1986_v5 = vld [vmem:[%s2509_s4 + $0x98] sm:$0xff]  ;;  %681 = vmatpush.bf16.msra.mxu1 %v1973_v2  ;;  %857 = vmatpush.bf16.msra.mxu3 %v1994_v3  ;;  %v1993_v7 = vld [vmem:[%s2509_s4 + $0xd0] sm:$0xff]  ;;  %v1971_v10 = vld [vmem:[%s2509_s4 + $0x20] sm:$0xff]  ;;  %s2535_s29 = smov (!%p487_p7, %s484_s29), 13  ;;  %p519_p10 = scmp.lt.s32.totalorder %s2103_s13, 9  ;;  %vm1393_vm2 = vcmask 654336  }
  0x11   : > { %v1978_v8 = vld [vmem:[%s2509_s4 + $0x58] sm:$0xff]  ;;  %v1985_v9 = vld [vmem:[%s2509_s4 + $0x90] sm:$0xff]  ;;  %s480_s20 = sadd.s32 %s2237_s25, %s1560_s27  ;;  %v1992_v11 = vld [vmem:[%s2509_s4 + $0xc8] sm:$0xff]  ;;  %s1562_s23 = sshll.u32 %s2535_s29, 1  ;;  %vm1395_vm3 = vcmask 648192  }
  0x12   : > { %s1561_s24 = sshll.u32 %s480_s20, 2  ;;  %v1977_v12 = vld [vmem:[%s2509_s4 + $0x50] sm:$0xff]  ;;  %v1984_v13 = vld [vmem:[%s2509_s4 + $0x88] sm:$0xff]  ;;  %v1970_v14 = vld [vmem:[%s2509_s4 + $0x18] sm:$0xff]  ;;  %s491_s26 = sadd.s32 %s2237_s25, %s1562_s23 }
  0x13   : > { %613 = vmatpush.bf16.msra.mxu0 %v1979_v4  ;;  %768 = vmatpush.bf16.msra.mxu2 %v1986_v5  ;;  %s482_s28 = scalar_lea.vmem %s2505_s0, %s1561_s24  ;;  %v1991_v15 = vld [vmem:[%s2509_s4 + $0xc0] sm:$0xff]  ;;  %v1976_v18 = vld [vmem:[%s2509_s4 + $0x48] sm:$0xff]  ;;  %s1563_s21 = sshll.u32 %s491_s26, 2  ;;  %v1969_v22 = vld [vmem:[%s2509_s4 + $0x10] sm:$0xff] }
  0x14   : > { %682 = vmatpush.bf16.msra.mxu1 %v1972_v6  ;;  %858 = vmatpush.bf16.msra.mxu3 %v1993_v7  ;;  %v543_v16 = vld [vmem:[%s482_s28] sm:$0xe]  ;;  %v694_v17 = vld [vmem:[%s482_s28 + $0x4] sm:$0x7]  ;;  %s2284_s22 = scalar_lea.vmem %s2506_s1, %s1563_s21  ;;  %v1990_v25 = vld [vmem:[%s2509_s4 + $0xb8] sm:$0xff]  ;;  %s2539_s13 = smov (!%p519_p10, %s2103_s13), 9 }
  0x15   : > { %v1983_v19 = vld [vmem:[%s2509_s4 + $0x80] sm:$0xff]  ;;  %v561_v20 = vunpack.c.l.b16 %v543_v16  ;;  %v711_v21 = vunpack.c.l.b16 %v694_v17  ;;  %s499_s26 = scalar_select %p498_p8, %s2256_s30, 13  ;;  %v1982_v35 = vld [vmem:[%s2509_s4 + $0x78] sm:$0xff]  ;;  %v1968_v39 = vld [vmem:[%s2509_s4 + $0x8] sm:$0xff] }
  0x16   : > { %v528_v23 = vld [vmem:[%s482_s28 + $0x4] sm:$0x3]  ;;  %v527_v24 = vld [vmem:[%s482_s28] sm:$0xf]  ;;  %v1989_v40 = vld [vmem:[%s2509_s4 + $0xb0] sm:$0xff]  ;;  %s2537_s30 = smov (!%p509_p9, %s2256_s30), 15 }
  0x17   : > { %614 = vmatpush.bf16.msra.mxu0 %v1978_v8  ;;  %769 = vmatpush.bf16.msra.mxu2 %v1985_v9  ;;  %v712_v26 = vpack.c.b16 %v711_v21, %v561_v20  ;;  %v782_v27 = vld [vmem:[%s2284_s22] sm:$0xf]  ;;  %v2291_v28 = vld [vmem:[%s2284_s22 + $0x4] sm:$0x3]  ;;  %v562_v29 = vunpack.c.l.b16 %v528_v23  ;;  %v626_v30 = vunpack.c.l.b16 %v527_v24  ;;  %s1564_s19 = sshll.u32 %s499_s26, 1  ;;  %v1974_v43 = vld [vmem:[%s2509_s4 + $0x38] sm:$0xff] }
  0x18   : > { %683 = vmatpush.bf16.msra.mxu1 %v1971_v10  ;;  %859 = vmatpush.bf16.msra.mxu3 %v1992_v11  ;;  %v801_v31 = vunpack.c.l.b16 %v782_v27  ;;  %v802_v32 = vunpack.c.l.b16 %v2291_v28  ;;  %v1975_v34 = vld [vmem:[%s2509_s4 + $0x40] sm:$0xff]  ;;  %v1981_v44 = vld [vmem:[%s2509_s4 + $0x70] sm:$0xff]  ;;  %s502_s26 = sadd.s32 %s2237_s25, %s1564_s19  ;;  %v1988_v51 = vld [vmem:[%s2509_s4 + $0xa8] sm:$0xff]  ;;  %s1566_s11 = sshll.u32 %s2537_s30, 1 }
  0x19   : > { %v627_v33 = vpack.c.b16 %v562_v29, %v626_v30  ;;  %v714_v36 = vshrl.u32 %v712_v26, 16  ;;  %v717_v37 = vshll.u32 %v712_v26, 16  ;;  %v2001_v45 = vld [vmem:[%s2509_s4 + $0x110] sm:$0xff]  ;;  %v2015_v46 = vld [vmem:[%s2509_s4 + $0x180] sm:$0xff]  ;;  %v563_v49 = vpack.c.b16 %v562_v29, %v561_v20  ;;  %v2008_v56 = vld [vmem:[%s2509_s4 + $0x148] sm:$0xff]  ;;  %s1565_s19 = sshll.u32 %s502_s26, 2 }
  0x1a   : > { %v803_v38 = vpack.c.b16 %v802_v32, %v801_v31  ;;  %v1967_v50 = vld [vmem:[%s2509_s4] sm:$0xff]  ;;  %v2022_v57 = vld [vmem:[%s2509_s4 + $0x1b8] sm:$0xff]  ;;  %v2000_v60 = vld [vmem:[%s2509_s4 + $0x108] sm:$0xff]  ;;  %s2345_s23 = scalar_lea.vmem %s2507_s2, %s1565_s19  ;;  %s1567_s25 = sshll.u32 %s2531_s14, 5 }
  0x1b   : > { %615 = vmatpush.bf16.msra.mxu0 %v1977_v12  ;;  %770 = vmatpush.bf16.msra.mxu2 %v1984_v13  ;;  %v631_v42 = vshll.u32 %v627_v33, 16  ;;  %v716_v47 = vrot.slane %v714_v36, 1  ;;  %v719_v48 = vrot.slane %v717_v37, 2  ;;  %v629_v53 = vshrl.u32 %v627_v33, 16  ;;  %v2014_v61 = vld [vmem:[%s2509_s4 + $0x178] sm:$0xff]  ;;  %v2007_v0 = vld [vmem:[%s2509_s4 + $0x140] sm:$0xff]  ;;  %s513_s29 = sadd.s32 %s1567_s25, %s1566_s11 }
  0x1c   : > { %684 = vmatpush.bf16.msra.mxu1 %v1970_v14  ;;  %860 = vmatpush.bf16.msra.mxu3 %v1991_v15  ;;  %v807_v41 = vshll.u32 %v803_v38, 16  ;;  %v805_v52 = vshrl.u32 %v803_v38, 16  ;;  %v564_v59 = vrot.slane %v563_v49, 1  ;;  %v2021_v1 = vld [vmem:[%s2509_s4 + $0x1b0] sm:$0xff]  ;;  %v1999_v2 = vld [vmem:[%s2509_s4 + $0x100] sm:$0xff]  ;;  %v2006_v6 = vld [vmem:[%s2509_s4 + $0x138] sm:$0xff] }
  0x1d   : > { %v633_v55 = vrot.slane %v631_v42, 1  ;;  %v720_v58 = vor.u32 %v719_v48, %v716_v47  ;;  %v2013_v3 = vld [vmem:[%s2509_s4 + $0x170] sm:$0xff]  ;;  %v1041_v4 = vld [vmem:[%s2345_s23] sm:$0xf]  ;;  %v1042_v5 = vld [vmem:[%s2345_s23 + $0x4] sm:$0x3] }
  0x1e   : > { %v809_v54 = vrot.slane %v807_v41, 1  ;;  %v2020_v7 = vld [vmem:[%s2509_s4 + $0x1a8] sm:$0xff]  ;;  %v872_v8 = vld [vmem:[%s2284_s22] sm:$0xe]  ;;  %v953_v9 = vld [vmem:[%s2284_s22 + $0x4] sm:$0x7]  ;;  %v1060_v10 = vunpack.c.l.b16 %v1041_v4  ;;  %v1061_v11 = vunpack.c.l.b16 %v1042_v5 }
  0x1f   : > { %616 = vmatpush.bf16.msra.mxu0 %v1976_v18  ;;  %771 = vmatpush.bf16.msra.mxu2 %v1983_v19  ;;  %v634_v63 = vor.u32 %v633_v55, %v629_v53  ;;  %v1998_v12 = vld [vmem:[%s2509_s4 + $0xf8] sm:$0xff]  ;;  %v2012_v13 = vld [vmem:[%s2509_s4 + $0x168] sm:$0xff]  ;;  %v889_v14 = vunpack.c.l.b16 %v872_v8  ;;  %v970_v15 = vunpack.c.l.b16 %v953_v9  ;;  %v2005_v16 = vld [vmem:[%s2509_s4 + $0x130] sm:$0xff]  ;;  %s1568_s25 = sshll.u32 %s513_s29, 2  ;;  %s2036_s19 = smul.u32 20, %s2531_s14 }
  0x20   : > { %685 = vmatpush.bf16.msra.mxu1 %v1969_v22  ;;  %861 = vmatpush.bf16.msra.mxu3 %v1990_v25  ;;  %v810_v62 = vor.u32 %v809_v54, %v805_v52  ;;  %v2019_v17 = vld [vmem:[%s2509_s4 + $0x1a0] sm:$0xff]  ;;  %v1062_v18 = vpack.c.b16 %v1061_v11, %v1060_v10  ;;  %v1997_v19 = vld [vmem:[%s2509_s4 + $0xf0] sm:$0xff]  ;;  %v2004_v22 = vld [vmem:[%s2509_s4 + $0x128] sm:$0xff]  ;;  %s515_s18 = scalar_lea.vmem %s2508_s3, %s1568_s25  ;;  %s1569_s20 = sshll.u32 %s2539_s13, 1 }
  0x21   : > { %v2011_v20 = vld [vmem:[%s2509_s4 + $0x160] sm:$0xff]  ;;  %v971_v21 = vpack.c.b16 %v970_v15, %v889_v14  ;;  %v2018_v23 = vld [vmem:[%s2509_s4 + $0x198] sm:$0xff]  ;;  %v1996_v26 = vld [vmem:[%s2509_s4 + $0xe8] sm:$0xff]  ;;  %s523_s14 = sadd.s32 %s2036_s19, %s1569_s20 }
  0x22   : > { %v2400_v24 = vld [vmem:[%s2345_s23] sm:$0xe]  ;;  %v1066_v25 = vshll.u32 %v1062_v18, 16  ;;  %v2010_v27 = vld [vmem:[%s2509_s4 + $0x158] sm:$0xff]  ;;  %v1064_v36 = vshrl.u32 %v1062_v18, 16  ;;  %v2028_v49 = vld [vmem:[%s2509_s4 + $0x1e8] sm:$0xff] }
  0x23   : > { %617 = vmatpush.bf16.msra.mxu0 %v1975_v34  ;;  %772 = vmatpush.bf16.msra.mxu2 %v1982_v35  ;;  %v973_v29 = vshrl.u32 %v971_v21, 16  ;;  %v976_v30 = vshll.u32 %v971_v21, 16  ;;  %v1148_v31 = vunpack.c.l.b16 %v2400_v24  ;;  %v2003_v33 = vld [vmem:[%s2509_s4 + $0x120] sm:$0xff]  ;;  %v2017_v34 = vld [vmem:[%s2509_s4 + $0x190] sm:$0xff]  ;;  %v890_v35 = vpack.c.b16 %v802_v32, %v889_v14  ;;  %v2002_v42 = vld [vmem:[%s2509_s4 + $0x118] sm:$0xff]  ;;  %s1570_s24 = sshll.u32 %s523_s14, 3 }
  0x24   : > { %686 = vmatpush.bf16.msra.mxu1 %v1968_v39  ;;  %862 = vmatpush.bf16.msra.mxu3 %v1989_v40  ;;  %v1068_v37 = vrot.slane %v1066_v25, 1  ;;  %v1995_v38 = vld [vmem:[%s2509_s4 + $0xe0] sm:$0xff]  ;;  %v2009_v39 = vld [vmem:[%s2509_s4 + $0x150] sm:$0xff]  ;;  %v2024_v5 = vld [vmem:[%s2509_s4 + $0x1c8] sm:$0xff]  ;;  %s525_s27 = scalar_lea.vmem %s2515_s10, %s1570_s24 }
  0x25   : > { %v2029_v40 = vld [vmem:[%s2509_s4 + $0x1f0] sm:$0xff]  ;;  %v975_v41 = vrot.slane %v973_v29, 1  ;;  %v978_v28 = vrot.slane %v976_v30, 2  ;;  %v1149_v32 = vpack.c.b16 %v1061_v11, %v1148_v31  ;;  %v1212_v54 = vld [vmem:[%s2345_s23 + $0x4] sm:$0x7] }
  0x26   : > { %v2033_v52 = vld [vmem:[%s2510_s5 + $0x10] sm:$0xff]  ;;  %v2027_v55 = vld [vmem:[%s2509_s4 + $0x1e0] sm:$0xff] }
  0x27   : > { %618 = vmatpush.bf16.msra.mxu0 %v1974_v43  ;;  %773 = vmatpush.bf16.msra.mxu2 %v1981_v44  ;;  %v2016_v43 = vld [vmem:[%s2509_s4 + $0x188] sm:$0xff]  ;;  %v891_v44 = vrot.slane %v890_v35, 1  ;;  %v979_v47 = vor.u32 %v978_v28, %v975_v41  ;;  %v1150_v48 = vrot.slane %v1149_v32, 1  ;;  %v2023_v8 = vld [vmem:[%s2509_s4 + $0x1c0] sm:$0xff] }
  0x28   : > { %687 = vmatpush.bf16.msra.mxu1 %v1967_v50  ;;  %863 = vmatpush.bf16.msra.mxu3 %v1988_v51  ;;  %v1946_v50 = vld [vmem:[%s515_s18] sm:$0xe]  ;;  %v2030_v51 = vld [vmem:[%s515_s18] sm:$0x70]  ;;  %v2077_v35 = vld [vmem:[%s2513_s8] ss:$0 sm:$0xff] }
  0x29   : > { %v1947_v53 = vor.u32 %v2030_v51, %v1946_v50  ;;  %v2079_v41 = vld [vmem:[%s2511_s6] ss:$0 sm:$0xff] }
  0x2a   : > { %1685 = vmatmul.msk.bf16.vlgmr.msra.gmra.mxu2 %vm607_vm0, %v720_v58  ;;  %1613 = vmatmul.msk.bf16.vlgmr.msra.gmra.mxu0 %vm607_vm0, %v564_v59 }
  0x2b   : > { %938 = vmatpush.bf16.msrb.mxu0 %v2001_v45  ;;  %1116 = vmatpush.bf16.msrb.mxu2 %v2015_v46  ;;  %v1069_v45 = vor.u32 %v1068_v37, %v1064_v36  ;;  %v2034_v46 = vld [vmem:[%s2510_s5 + $0x18] sm:$0xff]  ;;  %v1328_v58 = vshrl.u32 %v1947_v53, 16  ;;  %v1331_v59 = vshll.u32 %v1947_v53, 16 }
  0x2c   : > { %1026 = vmatpush.bf16.msrb.mxu1 %v2008_v56  ;;  %1197 = vmatpush.bf16.msrb.mxu3 %v2022_v57  ;;  %v2032_v56 = vld [vmem:[%s2510_s5 + $0x8] sm:$0xff]  ;;  %v1229_v57 = vunpack.c.l.b16 %v1212_v54 }
  0x2d   : > { %1728 = vmatmul.msk.bf16.vlgmr.msra.gmra.mxu3 %vm607_vm0, %v810_v62  ;;  %1642 = vmatmul.msk.bf16.vlgmr.msra.gmra.mxu1 %vm607_vm0, %v634_v63  ;;  %v1330_v63 = vrot.slane %v1328_v58, 1 }
  0x2e   : > { %v1230_v62 = vpack.c.b16 %v1229_v57, %v1148_v31 }
  0x2f   : > { %939 = vmatpush.bf16.msrb.mxu0 %v2000_v60  ;;  %1117 = vmatpush.bf16.msrb.mxu2 %v2014_v61  ;;  %v2026_v60 = vld [vmem:[%s2509_s4 + $0x1d8] sm:$0xff]  ;;  %v2031_v61 = vld [vmem:[%s2510_s5] sm:$0xff] }
  0x30   : > { %1027 = vmatpush.bf16.msrb.mxu1 %v2007_v0  ;;  %1198 = vmatpush.bf16.msrb.mxu3 %v2021_v1  ;;  %v1333_v0 = vrot.slane %v1331_v59, 2  ;;  %v2025_v1 = vld [vmem:[%s2509_s4 + $0x1d0] sm:$0xff] }
  0x32   : > { %v1334_v4 = vor.u32 %v1333_v0, %v1330_v63 }
  0x33   : > { %940 = vmatpush.bf16.msrb.mxu0 %v1999_v2  ;;  %1118 = vmatpush.bf16.msrb.mxu2 %v2013_v3  ;;  %v1232_v2 = vshrl.u32 %v1230_v62, 16  ;;  %v1235_v3 = vshll.u32 %v1230_v62, 16 }
  0x34   : > { %1028 = vmatpush.bf16.msrb.mxu1 %v2006_v6  ;;  %1199 = vmatpush.bf16.msrb.mxu3 %v2020_v7 }
  0x35   : > { %v1234_v6 = vrot.slane %v1232_v2, 1  ;;  %v1237_v7 = vrot.slane %v1235_v3, 2 }
  0x37   : > { %941 = vmatpush.bf16.msrb.mxu0 %v1998_v12  ;;  %1119 = vmatpush.bf16.msrb.mxu2 %v2012_v13  ;;  %v1238_v9 = vor.u32 %v1237_v7, %v1234_v6 }
  0x38   : > { %1029 = vmatpush.bf16.msrb.mxu1 %v2005_v16  ;;  %1200 = vmatpush.bf16.msrb.mxu3 %v2019_v17 }
  0x3b   : > { %942 = vmatpush.bf16.msrb.mxu0 %v1997_v19  ;;  %1120 = vmatpush.bf16.msrb.mxu2 %v2011_v20 }
  0x3c   : > { %1030 = vmatpush.bf16.msrb.mxu1 %v2004_v22  ;;  %1201 = vmatpush.bf16.msrb.mxu3 %v2018_v23 }
  0x3f   : > { %943 = vmatpush.bf16.msrb.mxu0 %v1996_v26  ;;  %1121 = vmatpush.bf16.msrb.mxu2 %v2010_v27 }
  0x40   : > { %1031 = vmatpush.bf16.msrb.mxu1 %v2003_v33  ;;  %1202 = vmatpush.bf16.msrb.mxu3 %v2017_v34 }
  0x43   : > { %944 = vmatpush.bf16.msrb.mxu0 %v1995_v38  ;;  %1122 = vmatpush.bf16.msrb.mxu2 %v2009_v39 }
  0x44   : > { %1032 = vmatpush.bf16.msrb.mxu1 %v2002_v42  ;;  %1203 = vmatpush.bf16.msrb.mxu3 %v2016_v43 }
  0x46   : > { %1771 = vmatmul.msk.bf16.vlgmr.msrb.gmra.mxu0 %vm607_vm0, %v891_v44  ;;  %1857 = vmatmul.msk.bf16.vlgmr.msrb.gmra.mxu2 %vm607_vm0, %v1069_v45  ;;  %v2080_v44 = vld [vmem:[%s2512_s7] ss:$0 sm:$0xff] }
  0x47   : > { %1285 = vmatpush.bf16.msra.mxu0 %v2029_v40  ;;  %1814 = vmatmul.msk.bf16.vlgmr.msrb.gmra.mxu1 %vm607_vm0, %v979_v47  ;;  %v2078_v40 = vld [vmem:[%s2514_s9] ss:$0 sm:$0xff] }
  0x48   : > { %1367 = vmatpush.bf16.msra.mxu1 %v2034_v46  ;;  %1900 = vmatmul.msk.bf16.vlgmr.msrb.gmra.mxu3 %vm607_vm0, %v1150_v48 }
  0x4b   : > { %1286 = vmatpush.bf16.msra.mxu0 %v2028_v49 }
  0x4c   : > { %1368 = vmatpush.bf16.msra.mxu1 %v2033_v52 }
  0x4f   : > { %1287 = vmatpush.bf16.msra.mxu0 %v2027_v55 }
  0x50   : > { %1369 = vmatpush.bf16.msra.mxu1 %v2032_v56 }
  0x53   : > { %1288 = vmatpush.bf16.msra.mxu0 %v2026_v60 }
  0x54   : > { %1370 = vmatpush.bf16.msra.mxu1 %v2031_v61 }
  0x57   : > { %1289 = vmatpush.bf16.msra.mxu0 %v2025_v1  ;;  %1964 = vmatmul.msk.bf16.vlgmr.msra.gmra.mxu1 %vm1359_vm1, %v1334_v4 }
  0x5b   : > { %1290 = vmatpush.bf16.msra.mxu0 %v2024_v5 }
  0x5f   : > { %1291 = vmatpush.bf16.msra.mxu0 %v2023_v8 }
  0x62   : > { %1943 = vmatmul.msk.bf16.vlgmr.msra.gmra.mxu0 %vm607_vm0, %v1238_v9 }
  0xa7   : > { %v620_v11 = vpop.f32.mrf.mxu0 }
  0xaa   : > { %v689_v10 = vpop.f32.mrf.mxu1 }
  0xab   : > { %v690_v17 = vadd.f32 %v689_v10, %v620_v11 }
  0xad   : > { %v775_v13 = vpop.f32.mrf.mxu2 }
  0xae   : > { %v780_v18 = vadd.f32 %v775_v13, %v690_v17 }
  0xaf   : > { %v622_v14 = vpop.f32.mrf.mxu0 }
  0xb0   : > { %v865_v15 = vpop.f32.mrf.mxu3 }
  0xb1   : > { %v870_v21 = vadd.f32 %v865_v15, %v780_v18 }
  0xb2   : > { %v691_v12 = vpop.f32.mrf.mxu1 }
  0xb3   : > { %v692_v24 = vadd.f32 %v691_v12, %v622_v14 }
  0xb5   : > { %v777_v19 = vpop.f32.mrf.mxu2 }
  0xb6   : > { %v781_v27 = vadd.f32 %v777_v19, %v692_v24 }
  0xb8   : > { %v867_v22 = vpop.f32.mrf.mxu3 }
  0xb9   : > { %v871_v33 = vadd.f32 %v867_v22, %v781_v27 }
  0xc3   : > { %v946_v20 = vpop.f32.mrf.mxu0 }
  0xc4   : > { %v1034_v16 = vpop.f32.mrf.mxu1  ;;  %v951_v25 = vadd.f32 %v946_v20, %v870_v21 }
  0xc6   : > { %v1039_v30 = vadd.f32 %v1034_v16, %v951_v25 }
  0xc9   : > { %v1124_v26 = vpop.f32.mrf.mxu2 }
  0xca   : > { %v1129_v34 = vadd.f32 %v1124_v26, %v1039_v30 }
  0xcb   : > { %v948_v29 = vpop.f32.mrf.mxu0  ;;  %v1205_v31 = vpop.f32.mrf.mxu3 }
  0xcc   : > { %v1036_v23 = vpop.f32.mrf.mxu1  ;;  %v952_v37 = vadd.f32 %v948_v29, %v871_v33  ;;  %v1210_v38 = vadd.f32 %v1205_v31, %v1129_v34 }
  0xce   : > { %v1040_v42 = vadd.f32 %v1036_v23, %v952_v37 }
  0xd1   : > { %v1126_v28 = vpop.f32.mrf.mxu2 }
  0xd2   : > { %v1130_v45 = vadd.f32 %v1126_v28, %v1040_v42 }
  0xd3   : > { %v1207_v48 = vpop.f32.mrf.mxu3 }
  0xd4   : > { %v1372_v36 = vpop.f32.mrf.mxu1  ;;  %v1211_v51 = vadd.f32 %v1207_v48, %v1130_v45 }
  0xd5   : > { %v1381_v39 = vmul.f32 %v2077_v35, %v1372_v36 }
  0xd7   : > { %v1387_v46 = vadd.f32 %v2078_v40, %v1381_v39 }
  0xdc   : > { %v1374_v50 = vpop.f32.mrf.mxu1 }
  0xdd   : > { %v1382_v55 = vmul.f32 %v2077_v35, %v1374_v50 }
  0xdf   : > { %v1293_v32 = vpop.f32.mrf.mxu0  ;;  %v1388_v58 = vadd.f32 %v2078_v40, %v1382_v55 }
  0xe0   : > { %v1298_v43 = vadd.f32 %v1293_v32, %v1210_v38 }
  0xe2   : > { %v1304_v47 = vmul.f32 %v2079_v41, %v1298_v43 }
  0xe4   : > { %v1310_v49 = vadd.f32 %v2080_v44, %v1304_v47 }
  0xe6   : > { %v1389_v52 = vadd.f32 %v1387_v46, %v1310_v49 }
  0xe7   : > { %v1295_v53 = vpop.f32.mrf.mxu0 }
  0xe8   : > { %v1391_v54 = vmax.f32 %v1389_v52, 0.0  ;;  %v1299_v56 = vadd.f32 %v1295_v53, %v1211_v51 }
  0xea   : > { %1394 = vst.msk [vmem:[%s525_s27] sm:$0xff] %vm1393_vm2, %v1391_v54  ;;  %v1305_v57 = vmul.f32 %v2079_v41, %v1299_v56 }
  0xec   : > { %v1311_v59 = vadd.f32 %v2080_v44, %v1305_v57 }
  0xee   : > { %v1390_v60 = vadd.f32 %v1388_v58, %v1311_v59 }
  0xf0   : > { %v1392_v61 = vmax.f32 %v1390_v60, 0.0 }
  0xf2   : > { %1396 = vst.msk [vmem:[%s525_s27 + $0x8] sm:$0x3] %vm1395_vm3, %v1392_v61 }
  0xf3 PF: > { %s20_s17 = sadd.s32 1, %s2119_s17   ;;  %s2518_s11 = sld [smem:[#allocation2_spill]] }
  0xf4   : > { %p17_p11 = scmp.ge.s32.totalorder %s20_s17, 22   ;;  %s2519_s25 = sld [smem:[#allocation3_spill]] }
  0xf5   : > { %s2520_s13 = smov %s2111_s15  ;;  %s2521_s14 = smov %s2115_s16 }
  0xf6   :  { %19 = sbr.rel (!%p17_p11) target bundleno = 3 (0x3), region = 107 }
  0xf9   : > { %s2522_s15 = smov %s2518_s11 }
  0xfa   : > { %s2523_s16 = smov %s2519_s25 }

</bundles_post_ra>
